<compile_context>
chip_gen: v6e
topology: v6e:2x2x1
jax: 0.10.0
libtpu: 0.0.40
codegen_flags: <defaults>
</compile_context>

<pallas_src>
import functools

import jax
import jax.numpy as jnp
from jax import lax
from jax.experimental import pallas as pl
from jax.experimental.pallas import tpu as pltpu

_REF_PREC = jax.lax.Precision.HIGHEST


def _node_block_kernel(blo_ref, bcnt_ref, recv_ref, nodes_ref, edges_ref, *rest,
                       n_linear, reducer, mlp_precision):
  """One (node-tile, edge-block-step) grid step of NodeBlock.forward.

  blo_ref:   (nt,)    i32  first edge block of each node tile (SMEM, prefetched)
  bcnt_ref:  (nt,)    i32  number of edge blocks of each node tile
  recv_ref:  (1, TE)  i32  receivers of this edge block (padded edges = -1)
  nodes_ref: (TN, Dn) f32  node features of this node tile
  edges_ref: (TE, De) bf16 edge features of this edge block (receiver-sorted)
  rest:      w0_nodes, w0_agg, b0, (w, b) * (n_linear-1), out_ref, agg_ref, cnt_ref
  """
  n_params = 2 * n_linear + 1
  wb = rest[:n_params]
  out_ref = rest[n_params]
  agg_ref = rest[n_params + 1]     # (TN, De) f32 running scatter accumulator
  cnt_ref = rest[n_params + 2]     # (TN, 1)  f32 per-node edge count (mean only)

  i = pl.program_id(0)             # node tile ("parallel")
  k = pl.program_id(1)             # edge-block step for this tile ("arbitrary")
  tn = agg_ref.shape[0]

  @pl.when(k == 0)
  def _init():
    agg_ref[...] = jnp.zeros_like(agg_ref)
    if reducer == 'mean':
      cnt_ref[...] = jnp.zeros_like(cnt_ref)

  # Only the first bcnt[i] steps carry real edge blocks for this node tile;
  # later steps re-point at the tile's last block and are skipped here.
  @pl.when(k < bcnt_ref[i])
  def _accumulate():
    recv = recv_ref[...]                                             # (1, TE)
    row_ids = i * tn + lax.broadcasted_iota(jnp.int32, (tn, 1), 0)   # (TN, 1)
    # scatter-(sum|mean) as a one-hot assignment matmul on the MXU; 0/1 is
    # exact in bf16, edges are already bf16 -> native bf16 MXU pass, f32 acc.
    onehot = (row_ids == recv).astype(jnp.bfloat16)                  # (TN, TE)
    agg_ref[...] += jnp.dot(onehot, edges_ref[...],
                            preferred_element_type=jnp.float32)
    if reducer == 'mean':
      cnt_ref[...] += jnp.sum(onehot.astype(jnp.float32), axis=1, keepdims=True)

  @pl.when(k == pl.num_programs(1) - 1)
  def _finalize():
    agg = agg_ref[...]
    if reducer == 'mean':
      agg = agg / jnp.maximum(cnt_ref[...], 1.0)
    # First MLP layer on cat([nodes, agg], dim=1): concat folded into two
    # matmuls against the host-split weight (no lane concat, no ref slicing).
    h = (jnp.dot(nodes_ref[...], wb[0][...],
                 preferred_element_type=jnp.float32, precision=mlp_precision)
         + jnp.dot(agg, wb[1][...],
                   preferred_element_type=jnp.float32, precision=mlp_precision)
         + wb[2][...])
    if n_linear > 1:
      h = jnp.maximum(h, 0.0)                         # relu
    for l in range(1, n_linear):
      w = wb[2 * l + 1][...]
      b = wb[2 * l + 2][...]
      h = jnp.dot(h, w, preferred_element_type=jnp.float32,
                  precision=mlp_precision) + b
      if l < n_linear - 1:
        h = jnp.maximum(h, 0.0)                       # relu on hidden layers only
    out_ref[...] = h.astype(out_ref.dtype)


def node_block_forward(nodes, edges, receivers, weights, biases, *,
                       reducer='sum', node_tile=128, edge_tile=512,
                       max_edge_blocks=None,
                       mlp_precision=jax.lax.Precision.HIGHEST):
  """Pallas implementation of NodeBlock.forward (returns updated node features).

  nodes:     f32 [N, Dn]
  edges:     f32 [E, De]
  receivers: i32 [E]            receiver node index per edge, in [0, N)
  weights:   list of f32 [d_in, d_out] for each Linear of build_mlp
  biases:    list of f32 [d_out]
  max_edge_blocks: static upper bound on edge blocks per node tile (required
             under jit; if None it is derived from the concrete receivers).
  """
  if reducer not in ('sum', 'mean'):
    raise NotImplementedError(reducer)   # TODO(synk): 'max'/'min' reducers

  nodes = jnp.asarray(nodes, jnp.float32)
  edges = jnp.asarray(edges, jnp.float32)
  receivers = jnp.asarray(receivers, jnp.int32)
  assert len(weights) == len(biases)
  n_linear = len(weights)

  N, Dn = nodes.shape
  E, De = edges.shape
  Dout = weights[-1].shape[1]
  assert weights[0].shape[0] == Dn + De

  # ---- receiver-sorted (CSR-style) edge layout ------------------------------
  order = jnp.argsort(receivers)
  edges_s = jnp.take(edges, order, axis=0).astype(jnp.bfloat16)
  recv_s = jnp.take(receivers, order)

  n_pad = -N % node_tile
  e_pad = -E % edge_tile
  Np, Ep = N + n_pad, E + e_pad
  nt = Np // node_tile
  num_eb = Ep // edge_tile

  nodes_p = jnp.pad(nodes, ((0, n_pad), (0, 0)))
  edges_p = jnp.pad(edges_s, ((0, e_pad), (0, 0)))
  recv_p = jnp.pad(recv_s, (0, e_pad), constant_values=-1).reshape(1, -1)

  # Per-node-tile edge ranges on the sorted receivers, in edge-block units.
  boundaries = (node_tile * jnp.arange(nt + 1)).astype(jnp.int32)
  pos = jnp.searchsorted(recv_s, boundaries, side='left')       # (nt+1,) in [0, E]
  lo, hi = pos[:-1], pos[1:]
  blo_raw = lo // edge_tile
  bhi = (hi + edge_tile - 1) // edge_tile
  bcnt = jnp.where(hi > lo, bhi - blo_raw, 0).astype(jnp.int32)
  blo = jnp.minimum(blo_raw, num_eb - 1).astype(jnp.int32)      # valid even if empty

  if max_edge_blocks is None:
    kmax = max(1, int(jnp.max(bcnt)))      # concrete receivers; pass a static bound under jit
  else:
    kmax = max(1, int(max_edge_blocks))
  kmax = min(kmax, num_eb)

  # ---- MLP parameters: pad output dim to a lane-dense multiple of 128, then
  # ---- split the first-layer weight into nodes / agg parts on the host.
  dout_p = -(-Dout // 128) * 128
  weights = [jnp.asarray(w, jnp.float32) for w in weights]
  biases = [jnp.asarray(b, jnp.float32) for b in biases]
  weights[-1] = jnp.pad(weights[-1], ((0, 0), (0, dout_p - Dout)))
  biases[-1] = jnp.pad(biases[-1], (0, dout_p - Dout))

  w0 = weights[0]
  wb_flat = [w0[:Dn, :], w0[Dn:, :], biases[0].reshape(1, -1)]
  for l in range(1, n_linear):
    wb_flat.append(weights[l])
    wb_flat.append(biases[l].reshape(1, -1))

  # ---- BlockSpecs -----------------------------------------------------------
  def _edge_block(i, k, blo_ref, bcnt_ref):
    # Steps beyond this tile's range re-point at its last block (no extra DMA);
    # the kernel guards the compute with k < bcnt[i].
    kk = jnp.minimum(k, jnp.maximum(bcnt_ref[i] - 1, 0))
    return blo_ref[i] + kk

  in_specs = [
      pl.BlockSpec((1, edge_tile),
                   lambda i, k, blo, bcnt: (0, _edge_block(i, k, blo, bcnt))),
      pl.BlockSpec((node_tile, Dn), lambda i, k, *_: (i, 0)),
      pl.BlockSpec((edge_tile, De),
                   lambda i, k, blo, bcnt: (_edge_block(i, k, blo, bcnt), 0)),
  ]
  for arr in wb_flat:
    in_specs.append(pl.BlockSpec(arr.shape, lambda i, k, *_: (0, 0)))

  # ---- VMEM limit derived from the actual footprint (portable to v7x 64 MiB).
  footprint = (
      2 * edge_tile * De * 2            # bf16 edge tile, double-buffered
      + 2 * edge_tile * 4               # receiver row
      + 2 * node_tile * Dn * 4          # node tile
      + 2 * node_tile * dout_p * 4      # output tile
      + 2 * sum(int(a.size) * 4 for a in wb_flat)   # MLP params
      + node_tile * De * 4 + node_tile * 4          # scratch accumulators
  )
  vmem_limit = int(min(64 * 1024 * 1024, max(4 * footprint, 16 * 1024 * 1024)))

  kernel = functools.partial(_node_block_kernel, n_linear=n_linear,
                             reducer=reducer, mlp_precision=mlp_precision)

  out = pl.pallas_call(
      kernel,
      out_shape=jax.ShapeDtypeStruct((Np, dout_p), jnp.float32),
      grid_spec=pltpu.PrefetchScalarGridSpec(
          num_scalar_prefetch=2,
          grid=(nt, kmax),
          in_specs=in_specs,
          out_specs=pl.BlockSpec((node_tile, dout_p), lambda i, k, *_: (i, 0)),
          scratch_shapes=[
              pltpu.VMEM((node_tile, De), jnp.float32),   # receiver_agg acc
              pltpu.VMEM((node_tile, 1), jnp.float32),    # per-node edge count
          ]),
      compiler_params=pltpu.CompilerParams(
          dimension_semantics=("parallel", "arbitrary"),
          vmem_limit_bytes=vmem_limit),
  )(blo, bcnt, recv_p, nodes_p, edges_p, *wb_flat)
  return out[:N, :Dout]


def _reference(nodes, edges, receivers, weights, biases, reducer='sum'):
  """Pure-JAX reference mirroring NodeBlock.forward (exact f32)."""
  N = nodes.shape[0]
  agg = jnp.zeros((N, edges.shape[1]), jnp.float32).at[receivers].add(edges)
  if reducer == 'mean':
    cnt = jnp.zeros((N, 1), jnp.float32).at[receivers].add(1.0)
    agg = agg / jnp.maximum(cnt, 1.0)
  h = jnp.concatenate([nodes, agg], axis=1)
  n_linear = len(weights)
  for l, (w, b) in enumerate(zip(weights, biases)):
    h = jnp.dot(h, w, precision=_REF_PREC) + b
    if l < n_linear - 1:
      h = jnp.maximum(h, 0.0)
  return h


if __name__ == "__main__":
  key = jax.random.PRNGKey(0)

  # Small graph consistent with the module: N nodes, E directed edges.
  # N=512 gives 4 node tiles (>=2 so both v7x TensorCores get work).
  N, Dn = 512, 64
  E, De = 2048, 64
  units, layers, Dout = 128, 2, 64   # build_mlp(in_dim=Dn+De, units, layers, out_dim)

  k_nodes, k_edges, k_recv, *k_w = jax.random.split(key, 3 + 2 * (layers + 1))
  nodes = jax.random.normal(k_nodes, (N, Dn), dtype=jnp.float32)
  edges = jax.random.normal(k_edges, (E, De), dtype=jnp.float32)
  receivers = jax.random.randint(k_recv, (E,), 0, N, dtype=jnp.int32)

  dims = [Dn + De] + [units] * layers + [Dout]
  weights, biases = [], []
  for li in range(layers + 1):
    weights.append(0.1 * jax.random.normal(k_w[2 * li], (dims[li], dims[li + 1]),
                                           dtype=jnp.float32))
    biases.append(0.1 * jax.random.normal(k_w[2 * li + 1], (dims[li + 1],),
                                          dtype=jnp.float32))

  out = node_block_forward(nodes, edges, receivers, weights, biases,
                           reducer='sum')   # NodeBlock default reducer
  out = jax.block_until_ready(out)

  ref = _reference(nodes, edges, receivers, weights, biases, reducer='sum')
  assert out.shape == (N, Dout), out.shape
  max_err = float(jnp.max(jnp.abs(out - ref)))
  # Tolerance accounts for the bf16 rounding of edge features inside the
  # native-bf16 scatter matmul (f32 accumulation); MLP dots are exact f32.
  assert jnp.allclose(out, ref, atol=2e-2, rtol=2e-2), f"mismatch {max_err}"

  print("KERNEL_OK")
</pallas_src>

<mosaic_0001>
module attributes {stable_mosaic.version = 11 : i64} {
  func.func @_node_block_kernel(%arg0: i32, %arg1: i32, %arg2: memref<4xi32, #tpu.memory_space<smem>>, %arg3: memref<4xi32, #tpu.memory_space<smem>>, %arg4: memref<1x512xi32, #tpu.memory_space<vmem>>, %arg5: memref<128x64xf32, #tpu.memory_space<vmem>>, %arg6: memref<512x64xbf16, #tpu.memory_space<vmem>>, %arg7: memref<64x128xf32, #tpu.memory_space<vmem>>, %arg8: memref<64x128xf32, #tpu.memory_space<vmem>>, %arg9: memref<1x128xf32, #tpu.memory_space<vmem>>, %arg10: memref<128x128xf32, #tpu.memory_space<vmem>>, %arg11: memref<1x128xf32, #tpu.memory_space<vmem>>, %arg12: memref<128x128xf32, #tpu.memory_space<vmem>>, %arg13: memref<1x128xf32, #tpu.memory_space<vmem>>, %arg14: memref<128x128xf32, #tpu.memory_space<vmem>>, %arg15: memref<128x64xf32, #tpu.memory_space<vmem>>, %arg16: memref<128x1xf32, #tpu.memory_space<vmem>>) attributes {dimension_semantics = [#tpu.dimension_semantics<parallel>, #tpu.dimension_semantics<arbitrary>], iteration_bounds = array<i64: 4, 3>, scalar_prefetch = 2 : i64, scratch_operands = 2 : i64, tpu.core_type = #tpu.core_type<tc>, window_params = [{transform_indices = @transform_0, window_bounds = array<i64: 1, 512>}, {transform_indices = @transform_1, window_bounds = array<i64: 128, 64>}, {transform_indices = @transform_2, window_bounds = array<i64: 512, 64>}, {pipeline_mode = #tpu.pipeline_mode<synchronous>, transform_indices = @transform_3, window_bounds = array<i64: 64, 128>}, {pipeline_mode = #tpu.pipeline_mode<synchronous>, transform_indices = @transform_4, window_bounds = array<i64: 64, 128>}, {pipeline_mode = #tpu.pipeline_mode<synchronous>, transform_indices = @transform_5, window_bounds = array<i64: 1, 128>}, {pipeline_mode = #tpu.pipeline_mode<synchronous>, transform_indices = @transform_6, window_bounds = array<i64: 128, 128>}, {pipeline_mode = #tpu.pipeline_mode<synchronous>, transform_indices = @transform_7, window_bounds = array<i64: 1, 128>}, {pipeline_mode = #tpu.pipeline_mode<synchronous>, transform_indices = @transform_8, window_bounds = array<i64: 128, 128>}, {pipeline_mode = #tpu.pipeline_mode<synchronous>, transform_indices = @transform_9, window_bounds = array<i64: 1, 128>}, {transform_indices = @transform_10, window_bounds = array<i64: 128, 128>}]} {
    %c0_i32 = arith.constant 0 : i32
    %0 = arith.cmpi eq, %arg1, %c0_i32 : i32
    %1 = arith.extui %0 : i1 to i32
    %c0_i32_0 = arith.constant 0 : i32
    %2 = arith.cmpi ne, %1, %c0_i32_0 : i32
    scf.if %2 {
      %cst = arith.constant 0.000000e+00 : f32
      %11 = vector.broadcast %cst : f32 to vector<128x64xf32>
      %c0 = arith.constant 0 : index
      %c0_3 = arith.constant 0 : index
      %12 = vector.load %arg15[%c0, %c0_3] : memref<128x64xf32, #tpu.memory_space<vmem>>, vector<128x64xf32>
      tpu.vector_store %arg15[%c0, %c0_3], %11 {strides = array<i32>} : memref<128x64xf32, #tpu.memory_space<vmem>>, vector<128x64xf32>,
    } else {
    }
    %3 = arith.index_cast %arg0 : i32 to index
    %4 = memref.load %arg3[%3] : memref<4xi32, #tpu.memory_space<smem>>
    %5 = arith.cmpi slt, %arg1, %4 : i32
    %6 = arith.extui %5 : i1 to i32
    %c0_i32_1 = arith.constant 0 : i32
    %7 = arith.cmpi ne, %6, %c0_i32_1 : i32
    scf.if %7 {
      %c0 = arith.constant 0 : index
      %c0_3 = arith.constant 0 : index
      %11 = vector.load %arg4[%c0, %c0_3] : memref<1x512xi32, #tpu.memory_space<vmem>>, vector<1x512xi32>
      %c128_i32 = arith.constant 128 : i32
      %12 = arith.muli %arg0, %c128_i32 : i32
      %13 = tpu.iota {dimensions = array<i32: 0>} : vector<128x1xi32>
      %14 = vector.broadcast %12 : i32 to vector<128x1xi32>
      %15 = arith.addi %14, %13 : vector<128x1xi32>
      %16 = vector.broadcast %15 : vector<128x1xi32> to vector<128x512xi32>
      %17 = vector.broadcast %11 : vector<1x512xi32> to vector<128x512xi32>
      %18 = arith.cmpi eq, %16, %17 : vector<128x512xi32>
      %19 = arith.extui %18 : vector<128x512xi1> to vector<128x512xi32>
      %20 = arith.sitofp %19 : vector<128x512xi32> to vector<128x512xf32>
      %21 = arith.truncf %20 : vector<128x512xf32> to vector<128x512xbf16>
      %c0_4 = arith.constant 0 : index
      %c0_5 = arith.constant 0 : index
      %22 = vector.load %arg15[%c0_4, %c0_5] : memref<128x64xf32, #tpu.memory_space<vmem>>, vector<128x64xf32>
      %c0_6 = arith.constant 0 : index
      %c0_7 = arith.constant 0 : index
      %23 = vector.load %arg6[%c0_6, %c0_7] : memref<512x64xbf16, #tpu.memory_space<vmem>>, vector<512x64xbf16>
      %cst = arith.constant dense<0.000000e+00> : vector<128x64xf32>
      %24 = tpu.matmul %21, %23, %cst {dimension_numbers = #tpu.dot_dimension_numbers<[1], [0], [0], [1], [0, 0, 1, 1], [], []>} : vector<128x512xbf16>, vector<512x64xbf16>, vector<128x64xf32> -> vector<128x64xf32>
      %25 = arith.addf %22, %24 : vector<128x64xf32>
      %c0_8 = arith.constant 0 : index
      %c0_9 = arith.constant 0 : index
      %26 = vector.load %arg15[%c0_8, %c0_9] : memref<128x64xf32, #tpu.memory_space<vmem>>, vector<128x64xf32>
      tpu.vector_store %arg15[%c0_8, %c0_9], %25 {strides = array<i32>} : memref<128x64xf32, #tpu.memory_space<vmem>>, vector<128x64xf32>,
    } else {
    }
    %c2_i32 = arith.constant 2 : i32
    %8 = arith.cmpi eq, %arg1, %c2_i32 : i32
    %9 = arith.extui %8 : i1 to i32
    %c0_i32_2 = arith.constant 0 : i32
    %10 = arith.cmpi ne, %9, %c0_i32_2 : i32
    scf.if %10 {
      %c0 = arith.constant 0 : index
      %c0_3 = arith.constant 0 : index
      %11 = vector.load %arg15[%c0, %c0_3] : memref<128x64xf32, #tpu.memory_space<vmem>>, vector<128x64xf32>
      %c0_4 = arith.constant 0 : index
      %c0_5 = arith.constant 0 : index
      %12 = vector.load %arg5[%c0_4, %c0_5] : memref<128x64xf32, #tpu.memory_space<vmem>>, vector<128x64xf32>
      %c0_6 = arith.constant 0 : index
      %c0_7 = arith.constant 0 : index
      %13 = vector.load %arg7[%c0_6, %c0_7] : memref<64x128xf32, #tpu.memory_space<vmem>>, vector<64x128xf32>
      %cst = arith.constant dense<0.000000e+00> : vector<128x128xf32>
      %14 = tpu.matmul %12, %13, %cst {dimension_numbers = #tpu.dot_dimension_numbers<[1], [0], [0], [1], [0, 0, 1, 1], [], []>, precision = #tpu.contract_precision<fp32>} : vector<128x64xf32>, vector<64x128xf32>, vector<128x128xf32> -> vector<128x128xf32>
      %c0_8 = arith.constant 0 : index
      %c0_9 = arith.constant 0 : index
      %15 = vector.load %arg8[%c0_8, %c0_9] : memref<64x128xf32, #tpu.memory_space<vmem>>, vector<64x128xf32>
      %cst_10 = arith.constant dense<0.000000e+00> : vector<128x128xf32>
      %16 = tpu.matmul %11, %15, %cst_10 {dimension_numbers = #tpu.dot_dimension_numbers<[1], [0], [0], [1], [0, 0, 1, 1], [], []>, precision = #tpu.contract_precision<fp32>} : vector<128x64xf32>, vector<64x128xf32>, vector<128x128xf32> -> vector<128x128xf32>
      %17 = arith.addf %14, %16 : vector<128x128xf32>
      %c0_11 = arith.constant 0 : index
      %c0_12 = arith.constant 0 : index
      %18 = vector.load %arg9[%c0_11, %c0_12] : memref<1x128xf32, #tpu.memory_space<vmem>>, vector<1x128xf32>
      %19 = vector.broadcast %18 : vector<1x128xf32> to vector<128x128xf32>
      %20 = arith.addf %17, %19 : vector<128x128xf32>
      %cst_13 = arith.constant 0.000000e+00 : f32
      %21 = vector.broadcast %cst_13 : f32 to vector<128x128xf32>
      %22 = arith.maximumf %20, %21 : vector<128x128xf32>
      %c0_14 = arith.constant 0 : index
      %c0_15 = arith.constant 0 : index
      %23 = vector.load %arg10[%c0_14, %c0_15] : memref<128x128xf32, #tpu.memory_space<vmem>>, vector<128x128xf32>
      %c0_16 = arith.constant 0 : index
      %c0_17 = arith.constant 0 : index
      %24 = vector.load %arg11[%c0_16, %c0_17] : memref<1x128xf32, #tpu.memory_space<vmem>>, vector<1x128xf32>
      %cst_18 = arith.constant dense<0.000000e+00> : vector<128x128xf32>
      %25 = tpu.matmul %22, %23, %cst_18 {dimension_numbers = #tpu.dot_dimension_numbers<[1], [0], [0], [1], [0, 0, 1, 1], [], []>, precision = #tpu.contract_precision<fp32>} : vector<128x128xf32>, vector<128x128xf32>, vector<128x128xf32> -> vector<128x128xf32>
      %26 = vector.broadcast %24 : vector<1x128xf32> to vector<128x128xf32>
      %27 = arith.addf %25, %26 : vector<128x128xf32>
      %cst_19 = arith.constant 0.000000e+00 : f32
      %28 = vector.broadcast %cst_19 : f32 to vector<128x128xf32>
      %29 = arith.maximumf %27, %28 : vector<128x128xf32>
      %c0_20 = arith.constant 0 : index
      %c0_21 = arith.constant 0 : index
      %30 = vector.load %arg12[%c0_20, %c0_21] : memref<128x128xf32, #tpu.memory_space<vmem>>, vector<128x128xf32>
      %c0_22 = arith.constant 0 : index
      %c0_23 = arith.constant 0 : index
      %31 = vector.load %arg13[%c0_22, %c0_23] : memref<1x128xf32, #tpu.memory_space<vmem>>, vector<1x128xf32>
      %cst_24 = arith.constant dense<0.000000e+00> : vector<128x128xf32>
      %32 = tpu.matmul %29, %30, %cst_24 {dimension_numbers = #tpu.dot_dimension_numbers<[1], [0], [0], [1], [0, 0, 1, 1], [], []>, precision = #tpu.contract_precision<fp32>} : vector<128x128xf32>, vector<128x128xf32>, vector<128x128xf32> -> vector<128x128xf32>
      %33 = vector.broadcast %31 : vector<1x128xf32> to vector<128x128xf32>
      %34 = arith.addf %32, %33 : vector<128x128xf32>
      %c0_25 = arith.constant 0 : index
      %c0_26 = arith.constant 0 : index
      %35 = vector.load %arg14[%c0_25, %c0_26] : memref<128x128xf32, #tpu.memory_space<vmem>>, vector<128x128xf32>
      tpu.vector_store %arg14[%c0_25, %c0_26], %34 {strides = array<i32>} : memref<128x128xf32, #tpu.memory_space<vmem>>, vector<128x128xf32>,
    } else {
    }
    return
  }
  func.func @transform_0(%arg0: i32, %arg1: i32, %arg2: memref<4xi32, #tpu.memory_space<smem>>, %arg3: memref<4xi32, #tpu.memory_space<smem>>) -> (i32, i32) {
    %0 = arith.index_cast %arg0 : i32 to index
    %1 = memref.load %arg3[%0] : memref<4xi32, #tpu.memory_space<smem>>
    %c1_i32 = arith.constant 1 : i32
    %2 = arith.subi %1, %c1_i32 : i32
    %c0_i32 = arith.constant 0 : i32
    %3 = arith.maxsi %2, %c0_i32 : i32
    %4 = arith.minsi %arg1, %3 : i32
    %5 = arith.index_cast %arg0 : i32 to index
    %6 = memref.load %arg2[%5] : memref<4xi32, #tpu.memory_space<smem>>
    %7 = arith.addi %6, %4 : i32
    %c0_i32_0 = arith.constant 0 : i32
    %c0_i32_1 = arith.constant 0 : i32
    return %c0_i32_0, %7 : i32, i32
  }
  func.func @transform_1(%arg0: i32, %arg1: i32, %arg2: memref<4xi32, #tpu.memory_space<smem>>, %arg3: memref<4xi32, #tpu.memory_space<smem>>) -> (i32, i32) {
    %c0_i32 = arith.constant 0 : i32
    %c0_i32_0 = arith.constant 0 : i32
    return %arg0, %c0_i32 : i32, i32
  }
  func.func @transform_2(%arg0: i32, %arg1: i32, %arg2: memref<4xi32, #tpu.memory_space<smem>>, %arg3: memref<4xi32, #tpu.memory_space<smem>>) -> (i32, i32) {
    %0 = arith.index_cast %arg0 : i32 to index
    %1 = memref.load %arg3[%0] : memref<4xi32, #tpu.memory_space<smem>>
    %c1_i32 = arith.constant 1 : i32
    %2 = arith.subi %1, %c1_i32 : i32
    %c0_i32 = arith.constant 0 : i32
    %3 = arith.maxsi %2, %c0_i32 : i32
    %4 = arith.minsi %arg1, %3 : i32
    %5 = arith.index_cast %arg0 : i32 to index
    %6 = memref.load %arg2[%5] : memref<4xi32, #tpu.memory_space<smem>>
    %7 = arith.addi %6, %4 : i32
    %c0_i32_0 = arith.constant 0 : i32
    %c0_i32_1 = arith.constant 0 : i32
    return %7, %c0_i32_0 : i32, i32
  }
  func.func @transform_3(%arg0: i32, %arg1: i32, %arg2: memref<4xi32, #tpu.memory_space<smem>>, %arg3: memref<4xi32, #tpu.memory_space<smem>>) -> (i32, i32) {
    %c0_i32 = arith.constant 0 : i32
    %c0_i32_0 = arith.constant 0 : i32
    %c0_i32_1 = arith.constant 0 : i32
    return %c0_i32, %c0_i32_0 : i32, i32
  }
  func.func @transform_4(%arg0: i32, %arg1: i32, %arg2: memref<4xi32, #tpu.memory_space<smem>>, %arg3: memref<4xi32, #tpu.memory_space<smem>>) -> (i32, i32) {
    %c0_i32 = arith.constant 0 : i32
    %c0_i32_0 = arith.constant 0 : i32
    %c0_i32_1 = arith.constant 0 : i32
    return %c0_i32, %c0_i32_0 : i32, i32
  }
  func.func @transform_5(%arg0: i32, %arg1: i32, %arg2: memref<4xi32, #tpu.memory_space<smem>>, %arg3: memref<4xi32, #tpu.memory_space<smem>>) -> (i32, i32) {
    %c0_i32 = arith.constant 0 : i32
    %c0_i32_0 = arith.constant 0 : i32
    %c0_i32_1 = arith.constant 0 : i32
    return %c0_i32, %c0_i32_0 : i32, i32
  }
  func.func @transform_6(%arg0: i32, %arg1: i32, %arg2: memref<4xi32, #tpu.memory_space<smem>>, %arg3: memref<4xi32, #tpu.memory_space<smem>>) -> (i32, i32) {
    %c0_i32 = arith.constant 0 : i32
    %c0_i32_0 = arith.constant 0 : i32
    %c0_i32_1 = arith.constant 0 : i32
    return %c0_i32, %c0_i32_0 : i32, i32
  }
  func.func @transform_7(%arg0: i32, %arg1: i32, %arg2: memref<4xi32, #tpu.memory_space<smem>>, %arg3: memref<4xi32, #tpu.memory_space<smem>>) -> (i32, i32) {
    %c0_i32 = arith.constant 0 : i32
    %c0_i32_0 = arith.constant 0 : i32
    %c0_i32_1 = arith.constant 0 : i32
    return %c0_i32, %c0_i32_0 : i32, i32
  }
  func.func @transform_8(%arg0: i32, %arg1: i32, %arg2: memref<4xi32, #tpu.memory_space<smem>>, %arg3: memref<4xi32, #tpu.memory_space<smem>>) -> (i32, i32) {
    %c0_i32 = arith.constant 0 : i32
    %c0_i32_0 = arith.constant 0 : i32
    %c0_i32_1 = arith.constant 0 : i32
    return %c0_i32, %c0_i32_0 : i32, i32
  }
  func.func @transform_9(%arg0: i32, %arg1: i32, %arg2: memref<4xi32, #tpu.memory_space<smem>>, %arg3: memref<4xi32, #tpu.memory_space<smem>>) -> (i32, i32) {
    %c0_i32 = arith.constant 0 : i32
    %c0_i32_0 = arith.constant 0 : i32
    %c0_i32_1 = arith.constant 0 : i32
    return %c0_i32, %c0_i32_0 : i32, i32
  }
  func.func @transform_10(%arg0: i32, %arg1: i32, %arg2: memref<4xi32, #tpu.memory_space<smem>>, %arg3: memref<4xi32, #tpu.memory_space<smem>>) -> (i32, i32) {
    %c0_i32 = arith.constant 0 : i32
    %c0_i32_0 = arith.constant 0 : i32
    return %arg0, %c0_i32 : i32, i32
  }
}

</mosaic_0001>

<bundles_post_ra>
// kernel: tpu_custom_call.1
= control target key start
LH: loop header
LB: loop body
LE: loop exit
PB: predicated region body
PF: predicated region fallthrough
CT: control target
= control target key end

     0   :  { %s12376_s0 = inlined_call_operand.vmem [shape: s32[4], index: 0, kind: input, shape index: {}]   ;;  %s12377_s2 = inlined_call_operand.vmem [shape: s32[1,2048], index: 2, kind: input, shape index: {}]   ;;  %s12378_s3 = inlined_call_operand.vmem [shape: f32[512,64], index: 3, kind: input, shape index: {}]   ;;  %s12379_s4 = inlined_call_operand.vmem [shape: bf16[2048,64], index: 4, kind: input, shape index: {}]   ;;  %s12380_s5 = inlined_call_operand.vmem [shape: f32[64,128], index: 5, kind: input, shape index: {}]   ;;  %s12381_s6 = inlined_call_operand.vmem [shape: f32[64,128], index: 6, kind: input, shape index: {}]   ;;  %s12382_s7 = inlined_call_operand.vmem [shape: f32[1,128], index: 7, kind: input, shape index: {}]   ;;  %s12383_s8 = inlined_call_operand.vmem [shape: f32[128,128], index: 8, kind: input, shape index: {}]   ;;  %s12384_s9 = inlined_call_operand.vmem [shape: f32[1,128], index: 9, kind: input, shape index: {}]   ;;  %s12385_s10 = inlined_call_operand.vmem [shape: f32[128,128], index: 10, kind: input, shape index: {}]   ;;  %s12386_s11 = inlined_call_operand.vmem [shape: f32[1,128], index: 11, kind: input, shape index: {}]   ;;  %s12387_s12 = inlined_call_operand.hbm [shape: f32[512,128], index: 12, kind: output, shape index: {}]   ;;  %s12388_s1 = inlined_call_operand.vmem [shape: s32[4], index: 1, kind: input, shape index: {}]  }
   0x1   :  { %12627 = sst [smem:[#allocation110_spill]] %s12378_s3  ;;  %s17_s23 = sshll.u32 %s12376_s0, 4  ;;  %s18_s23 = int_to_ptr.vmem [resolvable:$true] %s17_s23 }
   0x2   :  { %s21_s26 = sshll.u32 %s12388_s1, 4  ;;  %s8901_s27 = scalar_lea.vmem %s18_s23, 16  ;;  %s22_s26 = int_to_ptr.vmem [resolvable:$true] %s21_s26 }
   0x3   :  { %p8902_p0 = scmp.ne.s32.totalorder %s18_s23, %s8901_s27  ;;  %p8906_p1 = scmp.lt.s32.totalorder %s18_s23, %s18_s23 }
   0x4   :  { %p8907_p2 = scmp.lt.s32.totalorder %s8901_s27, %s8901_s27 }
   0x6   :  { %p8908_p3 = por %p8907_p2, %p8906_p1 }
   0x8   :  { %p8909_p4 = pnand %p8908_p3, %p8902_p0 }
   0xa   :  { %8912 = shalt.err (!%p8909_p4)  }
   0xb   :  { %s9021_s28 = smov [#allocation5]   ;;  %s8913_s29 = scalar_lea.vmem %s22_s26, 16 }
   0xc   :  { %20 = dma.vmem_to_smem %s18_s23, 16, %s9021_s28, [#allocation4] }
   0xd   :  { %p8914_p5 = scmp.ne.s32.totalorder %s22_s26, %s8913_s29  ;;  %p8918_p6 = scmp.lt.s32.totalorder %s22_s26, %s22_s26 }
   0xe   :  { %p8919_p7 = scmp.lt.s32.totalorder %s8913_s29, %s8913_s29 }
  0x10   :  { %p8920_p8 = por %p8919_p7, %p8918_p6 }
  0x12   :  { %p8921_p9 = pnand %p8920_p8, %p8914_p5 }
  0x14   :  { %8924 = shalt.err (!%p8921_p9)  }
  0x15   :  { %s9022_s0 = smov [#allocation6]  }
  0x16   :  { %24 = dma.vmem_to_smem %s22_s26, 16, %s9022_s0, [#allocation4] }
  0x17   :  { %8983 = dma.done.wait [#allocation4], 32 }
  0x18   :  { %8984 = vsyncadd [#allocation4], 4294967264 }
  0x19   :  { %26 = sfence }
  0x1a   :  { %27 = vsyncpa [#allocation8], 0 }
  0x1b   :  { %29 = vsyncpa [#allocation8 + $0x1], 0  ;;  %s9099_s1 = smov 0   ;;  %s9101_s30 = smov 0  }
  0x1c   :  { %s9103_s13 = smov 0   ;;  %s9105_s14 = smov 0  }
  0x1d   :  { %s9107_s15 = smov 0   ;;  %s9109_s16 = smov 0  }
  0x1e   :  { %s9111_s17 = smov 0   ;;  %s9113_s18 = smov 0  }
  0x1f LB: > { %12628 = sst [smem:[#allocation11_spill]] %s8991_s1  ;;  %s6650_s19 = sadd.s32 4294967295, %s9019_s18   ;;  %s9019_s18 = sphi %s9113_s18, %s35_s18   ;;  %s9015_s17 = sphi %s9111_s17, %s13018_s17   ;;  %s9011_s16 = sphi %s9109_s16, %s13017_s16   ;;  %s9007_s15 = sphi %s9107_s15, %s13021_s15   ;;  %s9003_s14 = sphi %s9105_s14, %s13015_s14   ;;  %s8999_s13 = sphi %s9103_s13, %s13014_s13   ;;  %s8995_s30 = sphi %s9101_s30, %s13020_s30   ;;  %s8991_s1 = sphi %s9099_s1, %s13019_s1  }
  0x20   : > { %12629 = sst [smem:[#allocation12_spill]] %s8999_s13  ;;  %s6651_s20 = sadd.s32 4294967294, %s9019_s18  }
  0x21   : > { %12630 = sst [smem:[#allocation13_spill]] %s9011_s16  ;;  %s44_s21 = sadd.s32 1, %s9011_s16 }
  0x22   : > { %12631 = sst [smem:[#allocation14_spill]] %s9015_s17  ;;  %p45_p10 = scmp.ge.s32.totalorder %s44_s21, 3 }
  0x23   : > { %12632 = sst [smem:[#allocation15_spill]] %s9019_s18  ;;  %s47_s22 = sadd.s32 1, %s9015_s17 }
  0x24   : > { %p321_p11 = scmp.ne.s32.totalorder %s8999_s13, %s8995_s30  ;;  %p322_p12 = scmp.eq.s32.totalorder %s6650_s19, 11 }
  0x25   : > { %s13023_s21 = smov (%p45_p10, %s44_s21), 0  ;;  %s13025_s22 = smov (!%p45_p10, %s47_s22), %s9015_s17 }
  0x26   : > { %12633 = sst [smem:[#allocation16_spill]] %s13023_s21  ;;  %p9148_p13 = por %p322_p12, %p321_p11 }
  0x27   : > { %p327_p0 = scmp.ne.s32.totalorder %s8995_s30, %s8991_s1  ;;  %p49_p1 = scmp.ge.s32.totalorder %s13025_s22, 4 }
  0x28   : > { %p328_p2 = scmp.eq.s32.totalorder %s6651_s20, 11  ;;  %p6658_p3 = scmp.ge.s32.totalorder %s9019_s18, 1 }
  0x29   : > { %p425_p4 = scmp.lt.s32.totalorder %s9019_s18, 13  ;;  %s13027_s22 = smov (%p49_p1, %s13025_s22), 0 }
  0x2a   : > { %12635 = sst [smem:[#allocation17_spill]] %s13027_s22  ;;  %p9158_p5 = por %p328_p2, %p327_p0 }
  0x2b   : > { %p426_p6 = pnand %p6658_p3, %p425_p4  ;;  %s308_s25 = ssub.s32 %s9015_s17, %s13027_s22 }
  0x2c   : > { %s12636_s24 = scalar_select %p9158_p5, 1, 0 }
  0x2d   : > { %s311_s26 = sadd.s32 1, %s8999_s13  ;;  %p309_p7 = scmp.eq.s32.totalorder %s308_s25, 0 }
  0x2e   : > { %12637 = sst [smem:[#allocation18_spill]] %s12636_s24  ;;  %429 = sbr.rel (%p426_p6) target bundleno = 1453 (0x5ad), region = 60 }
  0x2f   : > { %s9166_s27 = scalar_select %p309_p7, %s8999_s13, %s311_s26  }
  0x30   : > { %s12392_s28 = sand.u32 (!%p426_p6), 1, %s8995_s30   ;;  %s488_s29 = sld [smem:[#allocation6 + %s9007_s15]] (!%p426_p6) }
  0x31   : > { %12638 = sst [smem:[#allocation19_spill]] %s9166_s27  ;;  %s9172_s0 = sshll.u32 (!%p426_p6), %s12392_s28, 7 }
  0x32   : > { %s6662_s19 = sshll.u32 (!%p426_p6), %s9007_s15, 4  ;;  %s515_s20 = sld [smem:[#allocation6 + %s9007_s15]] (!%p426_p6) }
  0x33   : > { %p510_p8 = scmp.lt.s32.totalorder %s6662_s19, 63  ;;  %s494_s26 = sld [smem:[#allocation5 + %s9007_s15]] }
  0x34   : > { %s12639_s3 = sld [smem:[#allocation110_spill]]  ;;  %p6667_p2 = scmp.ne.s32.totalorder %s9003_s14, 0 }
  0x35   : > { %s13029_s19 = smov (!%p510_p8, %s6662_s19), 63  ;;  %s521_s28 = sld [smem:[#allocation5 + %s9007_s15]] }
  0x36   : > { %s6660_s25 = sadd.s32 4294967295, %s488_s29  ;;  %s6663_s22 = sshll.u32 %s13029_s19, 3 }
  0x37   : > { %p490_p9 = scmp.gt.s32.totalorder %s6660_s25, 0 }
  0x38   : > { %s6664_s27 = sadd.s32 4294967295, %s515_s20 }
  0x39   : > { %s13031_s25 = smov (!%p490_p9, %s6660_s25), 0  ;;  %p517_p11 = scmp.gt.s32.totalorder %s6664_s27, 0 }
  0x3a   : > { %s9180_s16 = scalar_lea.vmem %s12639_s3, %s6663_s22  ;;  %p492_p10 = scmp.lt.s32.totalorder %s9003_s14, %s13031_s25 }
  0x3b   : > { %s13033_s27 = smov (!%p517_p11, %s6664_s27), 0 }
  0x3c   : > { %s493_s13 = scalar_select %p492_p10, %s9003_s14, %s13031_s25 }
  0x3d   : > { %p519_p12 = scmp.lt.s32.totalorder %s9003_s14, %s13033_s27 }
  0x3e   : > { %s495_s24 = sadd.s32 %s494_s26, %s493_s13 }
  0x3f   : > { %s6661_s1 = sshll.u32 %s495_s24, 2  ;;  %s9199_s24 = scalar_lea.vmem [#allocation7], %s9172_s0 }
  0x40   : > { %p497_p0 = scmp.lt.s32.totalorder %s6661_s1, 15 }
  0x41   : > { %s520_s29 = scalar_select %p519_p12, %s9003_s14, %s13033_s27 }
  0x42   : > { %s13035_s1 = smov (!%p497_p0, %s6661_s1), 15 }
  0x43   : > { %s522_s19 = sadd.s32 %s521_s28, %s520_s29  ;;  %s499_s22 = scalar_lea.vmem %s12377_s2, %s13035_s1 }
  0x44   : > { %s6665_s20 = sshll.u32 %s522_s19, 6 }
  0x45   : > { %p524_p1 = scmp.lt.s32.totalorder %s6665_s20, 255  ;;  %542 = sbr.rel (%p6667_p2) target bundleno = 83 (0x53), region = 64 }
  0x47   : > { %s13037_s20 = smov (!%p524_p1, %s6665_s20), 255 }
  0x48   : > { %s6666_s3 = sshll.u32 %s13037_s20, 2 }
  0x49   : > { %s9196_s13 = scalar_lea.vmem %s12379_s4, %s6666_s3 }
  0x4a   : > { %vm543_vm0 = vcmask 523264   ;;  %v9023_v0 = vmov 0.0  }
  0x4b   : > { %544 = vst.msk [vmem:[#allocation2] sm:$0xff] %vm543_vm0, %v9023_v0  ;;  %545 = vst.msk [vmem:[#allocation2 + $0x8] sm:$0xff] %vm543_vm0, %v9023_v0 }
  0x4c   : > { %546 = vst.msk [vmem:[#allocation2 + $0x10] sm:$0xff] %vm543_vm0, %v9023_v0  ;;  %547 = vst.msk [vmem:[#allocation2 + $0x18] sm:$0xff] %vm543_vm0, %v9023_v0 }
  0x4d   : > { %548 = vst.msk [vmem:[#allocation2 + $0x20] sm:$0xff] %vm543_vm0, %v9023_v0  ;;  %549 = vst.msk [vmem:[#allocation2 + $0x28] sm:$0xff] %vm543_vm0, %v9023_v0 }
  0x4e   : > { %550 = vst.msk [vmem:[#allocation2 + $0x30] sm:$0xff] %vm543_vm0, %v9023_v0  ;;  %551 = vst.msk [vmem:[#allocation2 + $0x38] sm:$0xff] %vm543_vm0, %v9023_v0 }
  0x4f   : > { %552 = vst.msk [vmem:[#allocation2 + $0x40] sm:$0xff] %vm543_vm0, %v9023_v0  ;;  %553 = vst.msk [vmem:[#allocation2 + $0x48] sm:$0xff] %vm543_vm0, %v9023_v0 }
  0x50   : > { %554 = vst.msk [vmem:[#allocation2 + $0x50] sm:$0xff] %vm543_vm0, %v9023_v0  ;;  %555 = vst.msk [vmem:[#allocation2 + $0x58] sm:$0xff] %vm543_vm0, %v9023_v0 }
  0x51   : > { %556 = vst.msk [vmem:[#allocation2 + $0x60] sm:$0xff] %vm543_vm0, %v9023_v0  ;;  %557 = vst.msk [vmem:[#allocation2 + $0x68] sm:$0xff] %vm543_vm0, %v9023_v0 }
  0x52   : > { %558 = vst.msk [vmem:[#allocation2 + $0x70] sm:$0xff] %vm543_vm0, %v9023_v0  ;;  %559 = vst.msk [vmem:[#allocation2 + $0x78] sm:$0xff] %vm543_vm0, %v9023_v0 }
  0x53 PF: > { %s560_s3 = sld [smem:[#allocation6 + %s9007_s15]] }
  0x59   : > { %p6668_p3 = scmp.ge.s32.totalorder %s9003_s14, %s560_s3 }
  0x5a   : > { %s6669_s18 = sshll.u32 (!%p6668_p3), %s9007_s15, 7 }
  0x5b   : > { %564 = sbr.rel (%p6668_p3) target bundleno = 393 (0x189), region = 68 }
  0x60   : > { %v8869_v1 = vld [vmem:[%s9196_s13 + $0x78] sm:$0xff]   ;;  %v8873_v5 = vld [vmem:[%s9196_s13 + $0x70] sm:$0xff]   ;;  %v8877_v9 = vld [vmem:[%s9196_s13 + $0x68] sm:$0xff]   ;;  %v567_v17 = vlaneseq  ;;  %v9257_v37 = vstv %s6669_s18  ;;  %v9024_v54 = vmov 1.0|1.0  }
  0x61   : > { %v8870_v2 = vld [vmem:[%s9196_s13 + $0xf8] sm:$0xff]   ;;  %6840 = vmatprep.subr.bf16.mxu0 %v8869_v1  ;;  %v8874_v6 = vld [vmem:[%s9196_s13 + $0xf0] sm:$0xff]   ;;  %v8878_v10 = vld [vmem:[%s9196_s13 + $0xe8] sm:$0xff]  }
  0x62   : > { %v8871_v3 = vld [vmem:[%s9196_s13 + $0x38] sm:$0xff]   ;;  %6904 = vmatprep.subr.bf16.mxu1 %v8870_v2  ;;  %v8875_v7 = vld [vmem:[%s9196_s13 + $0x30] sm:$0xff]   ;;  %v8879_v11 = vld [vmem:[%s9196_s13 + $0x28] sm:$0xff]   ;;  %v9240_v22 = vshrl.u32 %v567_v17, 7 }
  0x63   : > { %v8872_v4 = vld [vmem:[%s9196_s13 + $0xb8] sm:$0xff]   ;;  %6841 = vmatpush3.bf16.msra.mxu0 %v8871_v3  ;;  %v8876_v8 = vld [vmem:[%s9196_s13 + $0xb0] sm:$0xff]   ;;  %v8880_v12 = vld [vmem:[%s9196_s13 + $0xa8] sm:$0xff]  }
  0x64   : > { %6905 = vmatpush3.bf16.msra.mxu1 %v8872_v4  ;;  %6842 = vmatprep.subr.bf16.mxu0 %v8873_v5  ;;  %v8881_v13 = vld [vmem:[%s9196_s13 + $0x60] sm:$0xff]   ;;  %v8885_v18 = vld [vmem:[%s9196_s13 + $0x58] sm:$0xff]   ;;  %v8889_v23 = vld [vmem:[%s9196_s13 + $0x50] sm:$0xff]   ;;  %v569_v27 = vadd.s32 8, %v9240_v22  ;;  %v607_v29 = vsub.s32 1, %v9240_v22  ;;  %v615_v31 = vsub.s32 3, %v9240_v22  ;;  %v585_v43 = vadd.s32 %v9257_v37, %v9240_v22 }
  0x65   : > { %6906 = vmatprep.subr.bf16.mxu1 %v8874_v6  ;;  %v8882_v14 = vld [vmem:[%s9196_s13 + $0xe0] sm:$0xff]   ;;  %v8886_v19 = vld [vmem:[%s9196_s13 + $0xd8] sm:$0xff]   ;;  %v8890_v24 = vld [vmem:[%s9196_s13 + $0xd0] sm:$0xff]   ;;  %v603_v33 = vsub.s32 0, %v9240_v22  ;;  %v570_v35 = vadd.s32 16, %v9240_v22  ;;  %v571_v38 = vadd.s32 24, %v9240_v22 }
  0x66   : > { %v8883_v15 = vld [vmem:[%s9196_s13 + $0x20] sm:$0xff]   ;;  %v8887_v20 = vld [vmem:[%s9196_s13 + $0x18] sm:$0xff]   ;;  %v8891_v25 = vld [vmem:[%s9196_s13 + $0x10] sm:$0xff]   ;;  %v611_v40 = vsub.s32 2, %v9240_v22  ;;  %v586_v44 = vadd.s32 %v9257_v37, %v569_v27  ;;  %v572_v52 = vadd.s32 32, %v9240_v22  ;;  %v573_v53 = vadd.s32 40, %v9240_v22 }
  0x67   : > { %6843 = vmatpush3.bf16.msra.mxu0 %v8875_v7  ;;  %v8884_v16 = vld [vmem:[%s9196_s13 + $0xa0] sm:$0xff]   ;;  %v8888_v21 = vld [vmem:[%s9196_s13 + $0x98] sm:$0xff]   ;;  %v8892_v26 = vld [vmem:[%s9196_s13 + $0x90] sm:$0xff]   ;;  %v587_v46 = vadd.s32 %v9257_v37, %v570_v35  ;;  %v588_v47 = vadd.s32 %v9257_v37, %v571_v38  ;;  %v574_v57 = vadd.s32 48, %v9240_v22  ;;  %v575_v58 = vadd.s32 56, %v9240_v22 }
  0x68   : > { %6907 = vmatpush3.bf16.msra.mxu1 %v8876_v8  ;;  %6844 = vmatprep.subr.bf16.mxu0 %v8877_v9  ;;  %v8893_v28 = vld [vmem:[%s9196_s13 + $0x48] sm:$0xff]   ;;  %v8897_v36 = vld [vmem:[%s9196_s13 + $0x40] sm:$0xff]   ;;  %v589_v55 = vadd.s32 %v9257_v37, %v572_v52  ;;  %v590_v56 = vadd.s32 %v9257_v37, %v573_v53  ;;  %v576_v61 = vadd.s32 64, %v9240_v22  ;;  %v577_v62 = vadd.s32 72, %v9240_v22  ;;  %v843_v38 = vld [vmem:[#allocation2 + $0x10] sm:$0xff] }
  0x69   : > { %6908 = vmatprep.subr.bf16.mxu1 %v8878_v10  ;;  %v8894_v30 = vld [vmem:[%s9196_s13 + $0xc8] sm:$0xff]   ;;  %v8898_v39 = vld [vmem:[%s9196_s13 + $0xc0] sm:$0xff]   ;;  %v591_v59 = vadd.s32 %v9257_v37, %v574_v57  ;;  %v592_v60 = vadd.s32 %v9257_v37, %v575_v58  ;;  %v578_v1 = vadd.s32 80, %v9240_v22  ;;  %v579_v2 = vadd.s32 88, %v9240_v22 }
  0x6a   : > { %v8895_v32 = vld [vmem:[%s9196_s13 + $0x8] sm:$0xff]   ;;  %v8899_v41 = vld [vmem:[%s9196_s13] sm:$0xff]   ;;  %v593_v63 = vadd.s32 %v9257_v37, %v576_v61  ;;  %v594_v0 = vadd.s32 %v9257_v37, %v577_v62  ;;  %v580_v5 = vadd.s32 96, %v9240_v22  ;;  %v581_v6 = vadd.s32 104, %v9240_v22 }
  0x6b   : > { %6845 = vmatpush3.bf16.msra.mxu0 %v8879_v11  ;;  %v8896_v34 = vld [vmem:[%s9196_s13 + $0x88] sm:$0xff]   ;;  %v8900_v42 = vld [vmem:[%s9196_s13 + $0x80] sm:$0xff]   ;;  %v595_v3 = vadd.s32 %v9257_v37, %v578_v1  ;;  %v596_v4 = vadd.s32 %v9257_v37, %v579_v2  ;;  %v582_v9 = vadd.s32 112, %v9240_v22  ;;  %v583_v10 = vadd.s32 120, %v9240_v22 }
  0x6c   : > { %6909 = vmatpush3.bf16.msra.mxu1 %v8880_v12  ;;  %6846 = vmatprep.subr.bf16.mxu0 %v8881_v13  ;;  %v565_v45 = vld [vmem:[%s499_s22] sm:$0xf]  ;;  %v597_v7 = vadd.s32 %v9257_v37, %v580_v5  ;;  %v598_v8 = vadd.s32 %v9257_v37, %v581_v6  ;;  %v846_v1 = vld [vmem:[#allocation2 + $0x28] sm:$0xff] }
  0x6d   : > { %6910 = vmatprep.subr.bf16.mxu1 %v8882_v14  ;;  %v9274_v48 = vrot.slane %v565_v45, %v607_v29  ;;  %v9276_v49 = vrot.slane %v565_v45, %v615_v31  ;;  %v9278_v50 = vrot.slane %v565_v45, %v603_v33  ;;  %v9280_v51 = vrot.slane %v565_v45, %v611_v40  ;;  %v842_v29 = vld [vmem:[#allocation2 + $0x8] sm:$0xff] }
  0x6e   : > { %v599_v11 = vadd.s32 %v9257_v37, %v582_v9  ;;  %v600_v12 = vadd.s32 %v9257_v37, %v583_v10  ;;  %v847_v10 = vld [vmem:[#allocation2 + $0x30] sm:$0xff] }
  0x6f   : > { %6847 = vmatpush3.bf16.msra.mxu0 %v8883_v15  ;;  %vm618_vm1 = vcmp.eq.s32.totalorder %v585_v43, %v9274_v48  ;;  %vm622_vm2 = vcmp.eq.s32.totalorder %v586_v44, %v9274_v48  ;;  %vm620_vm3 = vcmp.eq.s32.totalorder %v585_v43, %v9276_v49  ;;  %vm624_vm4 = vcmp.eq.s32.totalorder %v586_v44, %v9276_v49 }
  0x70   : > { %6911 = vmatpush3.bf16.msra.mxu1 %v8884_v16  ;;  %6848 = vmatprep.subr.bf16.mxu0 %v8885_v18  ;;  %vm6766_vm5 = vmpackc.low %vm622_vm2, %vm618_vm1  ;;  %vm617_vm6 = vcmp.eq.s32.totalorder %v585_v43, %v9278_v50  ;;  %vm621_vm7 = vcmp.eq.s32.totalorder %v586_v44, %v9278_v50  ;;  %vm619_vm8 = vcmp.eq.s32.totalorder %v585_v43, %v9280_v51 }
  0x71   : > { %6912 = vmatprep.subr.bf16.mxu1 %v8886_v19  ;;  %vm623_vm9 = vcmp.eq.s32.totalorder %v586_v44, %v9280_v51  ;;  %6767 = vmatprep.mubr.msk.bf16.mxu0 %vm6766_vm5, %v9024_v54  ;;  %vm6798_vm10 = vmpackc.low %vm624_vm4, %vm620_vm3  ;;  %vm626_vm11 = vcmp.eq.s32.totalorder %v587_v46, %v9274_v48  ;;  %vm630_vm12 = vcmp.eq.s32.totalorder %v588_v47, %v9274_v48 }
  0x72   : > { %6799 = vmatprep.mubr.msk.bf16.mxu1 %vm6798_vm10, %v9024_v54  ;;  %vm6768_vm13 = vmpackc.low %vm621_vm7, %vm617_vm6  ;;  %vm628_vm14 = vcmp.eq.s32.totalorder %v587_v46, %v9276_v49  ;;  %vm632_vm15 = vcmp.eq.s32.totalorder %v588_v47, %v9276_v49  ;;  %vm625_vm2 = vcmp.eq.s32.totalorder %v587_v46, %v9278_v50  ;;  %vm629_vm3 = vcmp.eq.s32.totalorder %v588_v47, %v9278_v50 }
  0x73   : > { %6849 = vmatpush3.bf16.msra.mxu0 %v8887_v20  ;;  %vm6800_vm0 = vmpackc.low %vm623_vm9, %vm619_vm8  ;;  %vm627_vm5 = vcmp.eq.s32.totalorder %v587_v46, %v9280_v51  ;;  %vm631_vm6 = vcmp.eq.s32.totalorder %v588_v47, %v9280_v51  ;;  %vm634_vm7 = vcmp.eq.s32.totalorder %v589_v55, %v9274_v48  ;;  %vm638_vm8 = vcmp.eq.s32.totalorder %v590_v56, %v9274_v48  ;;  %v841_v20 = vld [vmem:[#allocation2] sm:$0xff]  ;;  %v844_v47 = vld [vmem:[#allocation2 + $0x18] sm:$0xff] }
  0x74   : > { %6913 = vmatpush3.bf16.msra.mxu1 %v8888_v21  ;;  %6850 = vmatprep.subr.bf16.mxu0 %v8889_v23  ;;  %vm6770_vm1 = vmpackc.low %vm630_vm12, %vm626_vm11  ;;  %vm636_vm10 = vcmp.eq.s32.totalorder %v589_v55, %v9276_v49  ;;  %vm640_vm11 = vcmp.eq.s32.totalorder %v590_v56, %v9276_v49 }
  0x75   : > { %6914 = vmatprep.subr.bf16.mxu1 %v8890_v24  ;;  %vm6802_vm4 = vmpackc.low %vm632_vm15, %vm628_vm14  ;;  %vm633_vm15 = vcmp.eq.s32.totalorder %v589_v55, %v9278_v50 }
  0x76   : > { %vm6772_vm9 = vmpackc.low %vm629_vm3, %vm625_vm2  ;;  %vm639_vm2 = vcmp.eq.s32.totalorder %v590_v56, %v9280_v51  ;;  %vm642_vm3 = vcmp.eq.s32.totalorder %v591_v59, %v9274_v48 }
  0x77   : > { %6851 = vmatpush3.bf16.msra.mxu0 %v8891_v25  ;;  %vm6804_vm12 = vmpackc.low %vm631_vm6, %vm627_vm5  ;;  %vm644_vm6 = vcmp.eq.s32.totalorder %v591_v59, %v9276_v49 }
  0x78   : > { %6915 = vmatpush3.bf16.msra.mxu1 %v8892_v26  ;;  %6852 = vmatprep.subr.bf16.mxu0 %v8893_v28  ;;  %vm6806_vm14 = vmpackc.low %vm640_vm11, %vm636_vm10  ;;  %vm641_vm11 = vcmp.eq.s32.totalorder %v591_v59, %v9278_v50 }
  0x79   : > { %6916 = vmatprep.subr.bf16.mxu1 %v8894_v30 }
  0x7b   : > { %6853 = vmatpush3.bf16.msra.mxu0 %v8895_v32 }
  0x7c   : > { %6917 = vmatpush3.bf16.msra.mxu1 %v8896_v34  ;;  %6854 = vmatprep.subr.bf16.mxu0 %v8897_v36 }
  0x7d   : > { %6918 = vmatprep.subr.bf16.mxu1 %v8898_v39 }
  0x7f   : > { %6855 = vmatpush3.bf16.msra.mxu0 %v8899_v41 }
  0x80   : > { %6919 = vmatpush3.bf16.msra.mxu1 %v8900_v42 }
  0x82   : > { %6769 = vmatmul.mubr.msk.bf16.vlgmr.msra.gmra.mxu0 %vm6768_vm13, %v9024_v54  ;;  %vm6774_vm13 = vmpackc.low %vm638_vm8, %vm634_vm7  ;;  %vm648_vm7 = vcmp.eq.s32.totalorder %v592_v60, %v9276_v49 }
  0x83   : > { %6801 = vmatmul.mubr.msk.bf16.vlgmr.msra.gmra.mxu1 %vm6800_vm0, %v9024_v54  ;;  %6771 = vmatprep.mubr.msk.bf16.mxu0 %vm6770_vm1, %v9024_v54  ;;  %vm637_vm0 = vcmp.eq.s32.totalorder %v590_v56, %v9278_v50  ;;  %vm635_vm1 = vcmp.eq.s32.totalorder %v589_v55, %v9280_v51  ;;  %vm6810_vm10 = vmpackc.low %vm648_vm7, %vm644_vm6  ;;  %vm649_vm7 = vcmp.eq.s32.totalorder %v593_v63, %v9278_v50  ;;  %v845_v56 = vld [vmem:[#allocation2 + $0x20] sm:$0xff] }
  0x84   : > { %6803 = vmatprep.mubr.msk.bf16.mxu1 %vm6802_vm4, %v9024_v54  ;;  %vm646_vm4 = vcmp.eq.s32.totalorder %v592_v60, %v9274_v48  ;;  %vm6776_vm5 = vmpackc.low %vm637_vm0, %vm633_vm15  ;;  %vm650_vm15 = vcmp.eq.s32.totalorder %v593_v63, %v9274_v48  ;;  %vm654_vm0 = vcmp.eq.s32.totalorder %v594_v0, %v9274_v48 }
  0x85   : > { %vm6808_vm8 = vmpackc.low %vm639_vm2, %vm635_vm1  ;;  %vm652_vm2 = vcmp.eq.s32.totalorder %v593_v63, %v9276_v49 }
  0x8a   : > { %6773 = vmatmul.mubr.msk.bf16.gmra.mxu0 %vm6772_vm9, %v9024_v54  ;;  %vm6778_vm9 = vmpackc.low %vm646_vm4, %vm642_vm3  ;;  %vm656_vm3 = vcmp.eq.s32.totalorder %v594_v0, %v9276_v49 }
  0x8b   : > { %6805 = vmatmul.mubr.msk.bf16.gmra.mxu1 %vm6804_vm12, %v9024_v54  ;;  %6775 = vmatprep.mubr.msk.bf16.mxu0 %vm6774_vm13, %v9024_v54  ;;  %vm645_vm12 = vcmp.eq.s32.totalorder %v592_v60, %v9278_v50  ;;  %vm643_vm13 = vcmp.eq.s32.totalorder %v591_v59, %v9280_v51  ;;  %vm6814_vm6 = vmpackc.low %vm656_vm3, %vm652_vm2  ;;  %vm657_vm3 = vcmp.eq.s32.totalorder %v595_v3, %v9278_v50 }
  0x8c   : > { %6807 = vmatprep.mubr.msk.bf16.mxu1 %vm6806_vm14, %v9024_v54  ;;  %vm647_vm14 = vcmp.eq.s32.totalorder %v592_v60, %v9280_v51  ;;  %vm6780_vm1 = vmpackc.low %vm645_vm12, %vm641_vm11  ;;  %vm658_vm11 = vcmp.eq.s32.totalorder %v595_v3, %v9274_v48  ;;  %vm662_vm12 = vcmp.eq.s32.totalorder %v596_v4, %v9274_v48 }
  0x8d   : > { %vm6812_vm4 = vmpackc.low %vm647_vm14, %vm643_vm13  ;;  %vm660_vm14 = vcmp.eq.s32.totalorder %v595_v3, %v9276_v49 }
  0x92   : > { %6777 = vmatmul.mubr.msk.bf16.gmra.mxu0 %vm6776_vm5, %v9024_v54  ;;  %vm6782_vm5 = vmpackc.low %vm654_vm0, %vm650_vm15  ;;  %vm664_vm15 = vcmp.eq.s32.totalorder %v596_v4, %v9276_v49 }
  0x93   : > { %6809 = vmatmul.mubr.msk.bf16.gmra.mxu1 %vm6808_vm8, %v9024_v54  ;;  %6779 = vmatprep.mubr.msk.bf16.mxu0 %vm6778_vm9, %v9024_v54  ;;  %vm653_vm8 = vcmp.eq.s32.totalorder %v594_v0, %v9278_v50  ;;  %vm651_vm9 = vcmp.eq.s32.totalorder %v593_v63, %v9280_v51  ;;  %vm6818_vm2 = vmpackc.low %vm664_vm15, %vm660_vm14  ;;  %vm665_vm15 = vcmp.eq.s32.totalorder %v597_v7, %v9278_v50 }
  0x94   : > { %6811 = vmatprep.mubr.msk.bf16.mxu1 %vm6810_vm10, %v9024_v54  ;;  %vm655_vm10 = vcmp.eq.s32.totalorder %v594_v0, %v9280_v51  ;;  %vm6784_vm13 = vmpackc.low %vm653_vm8, %vm649_vm7  ;;  %vm666_vm7 = vcmp.eq.s32.totalorder %v597_v7, %v9274_v48  ;;  %vm670_vm8 = vcmp.eq.s32.totalorder %v598_v8, %v9274_v48 }
  0x95   : > { %vm6816_vm0 = vmpackc.low %vm655_vm10, %vm651_vm9  ;;  %vm668_vm10 = vcmp.eq.s32.totalorder %v597_v7, %v9276_v49 }
  0x9a   : > { %6781 = vmatmul.mubr.msk.bf16.gmra.mxu0 %vm6780_vm1, %v9024_v54  ;;  %vm6786_vm1 = vmpackc.low %vm662_vm12, %vm658_vm11  ;;  %vm672_vm11 = vcmp.eq.s32.totalorder %v598_v8, %v9276_v49 }
  0x9b   : > { %6813 = vmatmul.mubr.msk.bf16.gmra.mxu1 %vm6812_vm4, %v9024_v54  ;;  %6783 = vmatprep.mubr.msk.bf16.mxu0 %vm6782_vm5, %v9024_v54  ;;  %vm661_vm4 = vcmp.eq.s32.totalorder %v596_v4, %v9278_v50  ;;  %vm659_vm5 = vcmp.eq.s32.totalorder %v595_v3, %v9280_v51  ;;  %vm6822_vm14 = vmpackc.low %vm672_vm11, %vm668_vm10  ;;  %vm673_vm11 = vcmp.eq.s32.totalorder %v599_v11, %v9278_v50 }
  0x9c   : > { %6815 = vmatprep.mubr.msk.bf16.mxu1 %vm6814_vm6, %v9024_v54  ;;  %vm663_vm6 = vcmp.eq.s32.totalorder %v596_v4, %v9280_v51  ;;  %vm6788_vm9 = vmpackc.low %vm661_vm4, %vm657_vm3  ;;  %vm674_vm3 = vcmp.eq.s32.totalorder %v599_v11, %v9274_v48  ;;  %vm678_vm4 = vcmp.eq.s32.totalorder %v600_v12, %v9274_v48 }
  0x9d   : > { %vm6820_vm12 = vmpackc.low %vm663_vm6, %vm659_vm5  ;;  %vm676_vm6 = vcmp.eq.s32.totalorder %v599_v11, %v9276_v49 }
  0xa2   : > { %6785 = vmatmul.mubr.msk.bf16.gmra.mxu0 %vm6784_vm13, %v9024_v54  ;;  %vm6790_vm13 = vmpackc.low %vm670_vm8, %vm666_vm7  ;;  %vm680_vm7 = vcmp.eq.s32.totalorder %v600_v12, %v9276_v49 }
  0xa3   : > { %6817 = vmatmul.mubr.msk.bf16.gmra.mxu1 %vm6816_vm0, %v9024_v54  ;;  %6787 = vmatprep.mubr.msk.bf16.mxu0 %vm6786_vm1, %v9024_v54  ;;  %vm669_vm0 = vcmp.eq.s32.totalorder %v598_v8, %v9278_v50  ;;  %vm667_vm1 = vcmp.eq.s32.totalorder %v597_v7, %v9280_v51  ;;  %vm6826_vm10 = vmpackc.low %vm680_vm7, %vm676_vm6 }
  0xa4   : > { %6819 = vmatprep.mubr.msk.bf16.mxu1 %vm6818_vm2, %v9024_v54  ;;  %vm671_vm2 = vcmp.eq.s32.totalorder %v598_v8, %v9280_v51  ;;  %vm6792_vm5 = vmpackc.low %vm669_vm0, %vm665_vm15 }
  0xa5   : > { %vm6824_vm8 = vmpackc.low %vm671_vm2, %vm667_vm1  ;;  %vm1323_vm1 = vcmask 523264  }
  0xaa   : > { %6789 = vmatmul.mubr.msk.bf16.gmra.mxu0 %vm6788_vm9, %v9024_v54  ;;  %vm6794_vm9 = vmpackc.low %vm678_vm4, %vm674_vm3 }
  0xab   : > { %6821 = vmatmul.mubr.msk.bf16.gmra.mxu1 %vm6820_vm12, %v9024_v54  ;;  %6791 = vmatprep.mubr.msk.bf16.mxu0 %vm6790_vm13, %v9024_v54  ;;  %vm677_vm12 = vcmp.eq.s32.totalorder %v600_v12, %v9278_v50  ;;  %vm675_vm13 = vcmp.eq.s32.totalorder %v599_v11, %v9280_v51 }
  0xac   : > { %6823 = vmatprep.mubr.msk.bf16.mxu1 %vm6822_vm14, %v9024_v54  ;;  %vm679_vm14 = vcmp.eq.s32.totalorder %v600_v12, %v9280_v51  ;;  %vm6796_vm15 = vmpackc.low %vm677_vm12, %vm673_vm11 }
  0xad   : > { %vm6828_vm0 = vmpackc.low %vm679_vm14, %vm675_vm13 }
  0xb2   : > { %6793 = vmatmul.mubr.msk.bf16.gmra.mxu0 %vm6792_vm5, %v9024_v54 }
  0xb3   : > { %6825 = vmatmul.mubr.msk.bf16.gmra.mxu1 %vm6824_vm8, %v9024_v54  ;;  %6795 = vmatprep.mubr.msk.bf16.mxu0 %vm6794_vm9, %v9024_v54 }
  0xb4   : > { %6827 = vmatprep.mubr.msk.bf16.mxu1 %vm6826_vm10, %v9024_v54 }
  0xba   : > { %6797 = vmatmul.mubr.msk.bf16.gmra.mxu0 %vm6796_vm15, %v9024_v54 }
  0xbb   : > { %6829 = vmatmul.mubr.msk.bf16.gmra.mxu1 %vm6828_vm0, %v9024_v54 }
 0x142   : > { %v6856_v13 = vpop.f32.mrf.mxu0 }
 0x143   : > { %v6920_v14 = vpop.f32.mrf.mxu1 }
 0x144   : > { %v6857_v15 = vpop.f32.mrf.mxu0 }
 0x145   : > { %v6858_v16 = vadd.f32 %v6857_v15, %v6856_v13  ;;  %v6921_v17 = vpop.f32.mrf.mxu1 }
 0x146   : > { %v6922_v18 = vadd.f32 %v6921_v17, %v6920_v14  ;;  %v6859_v19 = vpop.f32.mrf.mxu0 }
 0x147   : > { %v6923_v21 = vpop.f32.mrf.mxu1 }
 0x148   : > { %v1245_v22 = vadd.f32 %v6922_v18, %v6858_v16  ;;  %v6860_v23 = vpop.f32.mrf.mxu0 }
 0x149   : > { %v6861_v24 = vadd.f32 %v6860_v23, %v6859_v19  ;;  %v6924_v25 = vpop.f32.mrf.mxu1  ;;  %v848_v19 = vld [vmem:[#allocation2 + $0x38] sm:$0xff] }
 0x14a   : > { %v1307_v26 = vadd.f32 %v1245_v22, %v841_v20  ;;  %v6925_v27 = vadd.f32 %v6924_v25, %v6923_v21  ;;  %v6862_v28 = vpop.f32.mrf.mxu0 }
 0x14b   : > { %v6926_v30 = vpop.f32.mrf.mxu1 }
 0x14c   : > { %1324 = vst.msk [vmem:[#allocation2] sm:$0xff] %vm1323_vm1, %v1307_v26  ;;  %v1248_v31 = vadd.f32 %v6925_v27, %v6861_v24  ;;  %v6863_v32 = vpop.f32.mrf.mxu0 }
 0x14d   : > { %v6864_v33 = vadd.f32 %v6863_v32, %v6862_v28  ;;  %v6927_v34 = vpop.f32.mrf.mxu1  ;;  %v849_v28 = vld [vmem:[#allocation2 + $0x40] sm:$0xff] }
 0x14e   : > { %v1308_v35 = vadd.f32 %v1248_v31, %v842_v29  ;;  %v6928_v36 = vadd.f32 %v6927_v34, %v6926_v30  ;;  %v6865_v37 = vpop.f32.mrf.mxu0 }
 0x14f   : > { %v6929_v39 = vpop.f32.mrf.mxu1 }
 0x150   : > { %1325 = vst.msk [vmem:[#allocation2 + $0x8] sm:$0xff] %vm1323_vm1, %v1308_v35  ;;  %v1253_v40 = vadd.f32 %v6928_v36, %v6864_v33  ;;  %v6866_v41 = vpop.f32.mrf.mxu0 }
 0x151   : > { %v6867_v42 = vadd.f32 %v6866_v41, %v6865_v37  ;;  %v6930_v43 = vpop.f32.mrf.mxu1  ;;  %v850_v37 = vld [vmem:[#allocation2 + $0x48] sm:$0xff] }
 0x152   : > { %v1309_v44 = vadd.f32 %v1253_v40, %v843_v38  ;;  %v6931_v45 = vadd.f32 %v6930_v43, %v6929_v39  ;;  %v6868_v46 = vpop.f32.mrf.mxu0 }
 0x153   : > { %v6932_v48 = vpop.f32.mrf.mxu1 }
 0x154   : > { %1326 = vst.msk [vmem:[#allocation2 + $0x10] sm:$0xff] %vm1323_vm1, %v1309_v44  ;;  %v1256_v49 = vadd.f32 %v6931_v45, %v6867_v42  ;;  %v6869_v50 = vpop.f32.mrf.mxu0 }
 0x155   : > { %v6870_v51 = vadd.f32 %v6869_v50, %v6868_v46  ;;  %v6933_v52 = vpop.f32.mrf.mxu1  ;;  %v851_v46 = vld [vmem:[#allocation2 + $0x50] sm:$0xff] }
 0x156   : > { %v1310_v53 = vadd.f32 %v1256_v49, %v844_v47  ;;  %v6934_v54 = vadd.f32 %v6933_v52, %v6932_v48  ;;  %v6871_v55 = vpop.f32.mrf.mxu0 }
 0x157   : > { %v6935_v57 = vpop.f32.mrf.mxu1 }
 0x158   : > { %1327 = vst.msk [vmem:[#allocation2 + $0x18] sm:$0xff] %vm1323_vm1, %v1310_v53  ;;  %v1261_v58 = vadd.f32 %v6934_v54, %v6870_v51  ;;  %v6872_v59 = vpop.f32.mrf.mxu0 }
 0x159   : > { %v6873_v60 = vadd.f32 %v6872_v59, %v6871_v55  ;;  %v6936_v61 = vpop.f32.mrf.mxu1  ;;  %v852_v55 = vld [vmem:[#allocation2 + $0x58] sm:$0xff] }
 0x15a   : > { %v1311_v62 = vadd.f32 %v1261_v58, %v845_v56  ;;  %v6937_v63 = vadd.f32 %v6936_v61, %v6935_v57  ;;  %v6874_v0 = vpop.f32.mrf.mxu0 }
 0x15b   : > { %v6938_v2 = vpop.f32.mrf.mxu1 }
 0x15c   : > { %1328 = vst.msk [vmem:[#allocation2 + $0x20] sm:$0xff] %vm1323_vm1, %v1311_v62  ;;  %v1264_v3 = vadd.f32 %v6937_v63, %v6873_v60  ;;  %v6875_v4 = vpop.f32.mrf.mxu0 }
 0x15d   : > { %v6876_v5 = vadd.f32 %v6875_v4, %v6874_v0  ;;  %v6939_v6 = vpop.f32.mrf.mxu1  ;;  %v853_v0 = vld [vmem:[#allocation2 + $0x60] sm:$0xff] }
 0x15e   : > { %v1312_v7 = vadd.f32 %v1264_v3, %v846_v1  ;;  %v6940_v8 = vadd.f32 %v6939_v6, %v6938_v2  ;;  %v6877_v9 = vpop.f32.mrf.mxu0 }
 0x15f   : > { %v6941_v11 = vpop.f32.mrf.mxu1 }
 0x160   : > { %1329 = vst.msk [vmem:[#allocation2 + $0x28] sm:$0xff] %vm1323_vm1, %v1312_v7  ;;  %v1269_v12 = vadd.f32 %v6940_v8, %v6876_v5  ;;  %v6878_v13 = vpop.f32.mrf.mxu0 }
 0x161   : > { %v6879_v14 = vadd.f32 %v6878_v13, %v6877_v9  ;;  %v6942_v15 = vpop.f32.mrf.mxu1  ;;  %v854_v9 = vld [vmem:[#allocation2 + $0x68] sm:$0xff] }
 0x162   : > { %v1313_v16 = vadd.f32 %v1269_v12, %v847_v10  ;;  %v6943_v17 = vadd.f32 %v6942_v15, %v6941_v11  ;;  %v6880_v18 = vpop.f32.mrf.mxu0 }
 0x163   : > { %v6944_v20 = vpop.f32.mrf.mxu1 }
 0x164   : > { %1330 = vst.msk [vmem:[#allocation2 + $0x30] sm:$0xff] %vm1323_vm1, %v1313_v16  ;;  %v1272_v21 = vadd.f32 %v6943_v17, %v6879_v14  ;;  %v6881_v22 = vpop.f32.mrf.mxu0 }
 0x165   : > { %v6882_v23 = vadd.f32 %v6881_v22, %v6880_v18  ;;  %v6945_v24 = vpop.f32.mrf.mxu1  ;;  %v855_v18 = vld [vmem:[#allocation2 + $0x70] sm:$0xff] }
 0x166   : > { %v1314_v25 = vadd.f32 %v1272_v21, %v848_v19  ;;  %v6946_v26 = vadd.f32 %v6945_v24, %v6944_v20  ;;  %v6883_v27 = vpop.f32.mrf.mxu0 }
 0x167   : > { %v6947_v29 = vpop.f32.mrf.mxu1 }
 0x168   : > { %1331 = vst.msk [vmem:[#allocation2 + $0x38] sm:$0xff] %vm1323_vm1, %v1314_v25  ;;  %v1277_v30 = vadd.f32 %v6946_v26, %v6882_v23  ;;  %v6884_v31 = vpop.f32.mrf.mxu0  ;;  %v856_v26 = vld [vmem:[#allocation2 + $0x78] sm:$0xff] }
 0x169   : > { %v6885_v32 = vadd.f32 %v6884_v31, %v6883_v27  ;;  %v6948_v33 = vpop.f32.mrf.mxu1 }
 0x16a   : > { %v1315_v34 = vadd.f32 %v1277_v30, %v849_v28  ;;  %v6949_v35 = vadd.f32 %v6948_v33, %v6947_v29  ;;  %v6886_v36 = vpop.f32.mrf.mxu0 }
 0x16b   : > { %v6950_v38 = vpop.f32.mrf.mxu1 }
 0x16c   : > { %1332 = vst.msk [vmem:[#allocation2 + $0x40] sm:$0xff] %vm1323_vm1, %v1315_v34  ;;  %v1280_v39 = vadd.f32 %v6949_v35, %v6885_v32  ;;  %v6887_v40 = vpop.f32.mrf.mxu0 }
 0x16d   : > { %v6888_v41 = vadd.f32 %v6887_v40, %v6886_v36  ;;  %v6951_v42 = vpop.f32.mrf.mxu1 }
 0x16e   : > { %v1316_v43 = vadd.f32 %v1280_v39, %v850_v37  ;;  %v6952_v44 = vadd.f32 %v6951_v42, %v6950_v38  ;;  %v6889_v45 = vpop.f32.mrf.mxu0 }
 0x16f   : > { %v6953_v47 = vpop.f32.mrf.mxu1 }
 0x170   : > { %1333 = vst.msk [vmem:[#allocation2 + $0x48] sm:$0xff] %vm1323_vm1, %v1316_v43  ;;  %v1285_v48 = vadd.f32 %v6952_v44, %v6888_v41  ;;  %v6890_v49 = vpop.f32.mrf.mxu0 }
 0x171   : > { %v6891_v50 = vadd.f32 %v6890_v49, %v6889_v45  ;;  %v6954_v51 = vpop.f32.mrf.mxu1 }
 0x172   : > { %v1317_v52 = vadd.f32 %v1285_v48, %v851_v46  ;;  %v6955_v53 = vadd.f32 %v6954_v51, %v6953_v47  ;;  %v6892_v54 = vpop.f32.mrf.mxu0 }
 0x173   : > { %v6956_v56 = vpop.f32.mrf.mxu1 }
 0x174   : > { %1334 = vst.msk [vmem:[#allocation2 + $0x50] sm:$0xff] %vm1323_vm1, %v1317_v52  ;;  %v1288_v57 = vadd.f32 %v6955_v53, %v6891_v50  ;;  %v6893_v58 = vpop.f32.mrf.mxu0 }
 0x175   : > { %v6894_v59 = vadd.f32 %v6893_v58, %v6892_v54  ;;  %v6957_v60 = vpop.f32.mrf.mxu1 }
 0x176   : > { %v1318_v61 = vadd.f32 %v1288_v57, %v852_v55  ;;  %v6958_v62 = vadd.f32 %v6957_v60, %v6956_v56  ;;  %v6895_v63 = vpop.f32.mrf.mxu0 }
 0x177   : > { %v6959_v1 = vpop.f32.mrf.mxu1 }
 0x178   : > { %1335 = vst.msk [vmem:[#allocation2 + $0x58] sm:$0xff] %vm1323_vm1, %v1318_v61  ;;  %v1293_v2 = vadd.f32 %v6958_v62, %v6894_v59  ;;  %v6896_v3 = vpop.f32.mrf.mxu0 }
 0x179   : > { %v6897_v4 = vadd.f32 %v6896_v3, %v6895_v63  ;;  %v6960_v5 = vpop.f32.mrf.mxu1 }
 0x17a   : > { %v1319_v6 = vadd.f32 %v1293_v2, %v853_v0  ;;  %v6961_v7 = vadd.f32 %v6960_v5, %v6959_v1  ;;  %v6898_v8 = vpop.f32.mrf.mxu0 }
 0x17b   : > { %v6962_v10 = vpop.f32.mrf.mxu1 }
 0x17c   : > { %1336 = vst.msk [vmem:[#allocation2 + $0x60] sm:$0xff] %vm1323_vm1, %v1319_v6  ;;  %v1296_v11 = vadd.f32 %v6961_v7, %v6897_v4  ;;  %v6899_v12 = vpop.f32.mrf.mxu0 }
 0x17d   : > { %v6900_v13 = vadd.f32 %v6899_v12, %v6898_v8  ;;  %v6963_v14 = vpop.f32.mrf.mxu1 }
 0x17e   : > { %v1320_v15 = vadd.f32 %v1296_v11, %v854_v9  ;;  %v6964_v16 = vadd.f32 %v6963_v14, %v6962_v10  ;;  %v6901_v17 = vpop.f32.mrf.mxu0 }
 0x17f   : > { %v6965_v19 = vpop.f32.mrf.mxu1 }
 0x180   : > { %1337 = vst.msk [vmem:[#allocation2 + $0x68] sm:$0xff] %vm1323_vm1, %v1320_v15  ;;  %v1301_v20 = vadd.f32 %v6964_v16, %v6900_v13  ;;  %v6902_v21 = vpop.f32.mrf.mxu0 }
 0x181   : > { %v6903_v22 = vadd.f32 %v6902_v21, %v6901_v17  ;;  %v6966_v23 = vpop.f32.mrf.mxu1 }
 0x182   : > { %v1321_v24 = vadd.f32 %v1301_v20, %v855_v18  ;;  %v6967_v25 = vadd.f32 %v6966_v23, %v6965_v19 }
 0x184   : > { %1338 = vst.msk [vmem:[#allocation2 + $0x70] sm:$0xff] %vm1323_vm1, %v1321_v24  ;;  %v1304_v27 = vadd.f32 %v6967_v25, %v6903_v22 }
 0x186   : > { %v1322_v28 = vadd.f32 %v1304_v27, %v856_v26 }
 0x188   : > { %1339 = vst.msk [vmem:[#allocation2 + $0x78] sm:$0xff] %vm1323_vm1, %v1322_v28 }
 0x189 PF: > { %p6830_p4 = scmp.ne.s32.totalorder %s9003_s14, 2 }
 0x18b   : > { %1343 = sbr.rel (%p6830_p4) target bundleno = 1428 (0x594), region = 72 }
 0x190   : > { %v1391_v29 = vld [vmem:[%s12381_s6 + $0x38] sm:$0xff]  ;;  %v1390_v30 = vld [vmem:[%s12381_s6 + $0x30] sm:$0xff]  ;;  %v1389_v31 = vld [vmem:[%s12381_s6 + $0x28] sm:$0xff]  ;;  %vm1392_vm2 = vcmask 523264  }
 0x191   : > { %v9428_v32 = vand.u32 4294901760, %v1391_v29  ;;  %v9430_v33 = vand.u32 4294901760, %v1390_v30  ;;  %v9432_v34 = vand.u32 4294901760, %v1389_v31  ;;  %v1388_v35 = vld [vmem:[%s12381_s6 + $0x20] sm:$0xff]  ;;  %v1387_v36 = vld [vmem:[%s12381_s6 + $0x18] sm:$0xff]  ;;  %v1386_v37 = vld [vmem:[%s12381_s6 + $0x10] sm:$0xff] }
 0x192   : > { %v9443_v38 = vand.u32 4294901760, %v1388_v35  ;;  %v9445_v39 = vand.u32 4294901760, %v1387_v36  ;;  %v9447_v40 = vand.u32 4294901760, %v1386_v37  ;;  %v1385_v41 = vld [vmem:[%s12381_s6 + $0x8] sm:$0xff]  ;;  %v9455_v42 = vld [vmem:[%s12381_s6] sm:$0xff]  ;;  %v1346_v5 = vld [vmem:[#allocation2 + $0x10] sm:$0xff] }
 0x193   : > { %v1344_v43 = vld [vmem:[#allocation2] sm:$0xff]  ;;  %7640 = vmatprep.subr.mxu0 %v9428_v32  ;;  %v9459_v44 = vsub.f32 %v1391_v29, %v9428_v32  ;;  %v9462_v45 = vsub.f32 %v1390_v30, %v9430_v33  ;;  %v9464_v46 = vand.u32 4294901760, %v1385_v41  ;;  %v9467_v47 = vsub.f32 %v1389_v31, %v9432_v34  ;;  %v1345_v48 = vld [vmem:[#allocation2 + $0x8] sm:$0xff]  ;;  %v1347_v6 = vld [vmem:[#allocation2 + $0x18] sm:$0xff] }
 0x194   : > { %7641 = vmatpush3.msra.mxu0 %v9428_v32  ;;  %v9471_v49 = vand.u32 4294901760, %v9455_v42  ;;  %v9474_v50 = vsub.f32 %v1388_v35, %v9443_v38  ;;  %v1394_v51 = vsel %vm1392_vm2, %v1344_v43, 0  ;;  %v1397_v52 = vsel %vm1392_vm2, %v1345_v48, 0  ;;  %v1348_v19 = vld [vmem:[#allocation2 + $0x20] sm:$0xff]  ;;  %v1349_v20 = vld [vmem:[#allocation2 + $0x28] sm:$0xff]  ;;  %v1350_v29 = vld [vmem:[#allocation2 + $0x30] sm:$0xff] }
 0x195   : > { %7642 = vmatprep.subr.mxu0 %v9430_v33  ;;  %v9480_v53 = vand.u32 4294901760, %v9459_v44  ;;  %v9483_v54 = vand.u32 4294901760, %v9462_v45  ;;  %v9486_v55 = vand.u32 4294901760, %v9467_v47  ;;  %v9488_v56 = vand.u32 4294901760, %v1394_v51  ;;  %v1351_v30 = vld [vmem:[#allocation2 + $0x38] sm:$0xff] }
 0x196   : > { %7643 = vmatpush3.msra.mxu0 %v9430_v33  ;;  %v9492_v57 = vand.u32 4294901760, %v9474_v50  ;;  %v9494_v58 = vand.u32 4294901760, %v1397_v52  ;;  %v9497_v59 = vsub.f32 %v1387_v36, %v9445_v39  ;;  %v9500_v60 = vsub.f32 %v1386_v37, %v9447_v40 }
 0x197   : > { %7644 = vmatprep.subr.mxu0 %v9432_v34  ;;  %v1694_v61 = vsub.f32 %v9459_v44, %v9480_v53  ;;  %v1701_v62 = vsub.f32 %v9462_v45, %v9483_v54  ;;  %v1708_v63 = vsub.f32 %v9467_v47, %v9486_v55  ;;  %v9510_v0 = vsub.f32 %v1394_v51, %v9488_v56 }
 0x198   : > { %7645 = vmatpush3.msra.mxu0 %v9432_v34  ;;  %v1715_v1 = vsub.f32 %v9474_v50, %v9492_v57  ;;  %v9516_v2 = vsub.f32 %v1397_v52, %v9494_v58  ;;  %v9519_v3 = vand.u32 4294901760, %v9497_v59  ;;  %v9522_v4 = vand.u32 4294901760, %v9500_v60  ;;  %7696 = vmatprep.mubr.f32.mxu1 %v9488_v56 }
 0x199   : > { %7646 = vmatprep.subr.mxu0 %v9443_v38  ;;  %v1695_v7 = vand.u32 4294901760, %v1694_v61  ;;  %v1702_v8 = vand.u32 4294901760, %v1701_v62  ;;  %v1709_v9 = vand.u32 4294901760, %v1708_v63  ;;  %v12407_v10 = vand.u32 4294901760, %v9510_v0  ;;  %v1352_v63 = vld [vmem:[#allocation2 + $0x40] sm:$0xff] }
 0x19a   : > { %7647 = vmatpush3.msra.mxu0 %v9443_v38  ;;  %v1716_v11 = vand.u32 4294901760, %v1715_v1  ;;  %v12405_v12 = vand.u32 4294901760, %v9516_v2  ;;  %v1722_v13 = vsub.f32 %v9497_v59, %v9519_v3  ;;  %v1729_v14 = vsub.f32 %v9500_v60, %v9522_v4 }
 0x19b   : > { %7648 = vmatprep.subr.mxu0 %v9445_v39  ;;  %7680 = vmatprep.subr.mxu1 %v1695_v7  ;;  %v1517_v15 = vsub.f32 %v9510_v0, %v12407_v10  ;;  %v1400_v16 = vsel %vm1392_vm2, %v1346_v5, 0  ;;  %v1403_v17 = vsel %vm1392_vm2, %v1347_v6, 0  ;;  %v9540_v18 = vsub.f32 %v1385_v41, %v9464_v46 }
 0x19c   : > { %7649 = vmatpush3.msra.mxu0 %v9445_v39  ;;  %7681 = vmatpush3.msra.mxu1 %v1695_v7  ;;  %v1527_v21 = vsub.f32 %v9516_v2, %v12405_v12  ;;  %v1723_v22 = vand.u32 4294901760, %v1722_v13  ;;  %v9546_v23 = vand.u32 4294901760, %v1729_v14  ;;  %v9548_v24 = vand.u32 4294901760, %v1400_v16 }
 0x19d   : > { %7650 = vmatprep.subr.mxu0 %v9447_v40  ;;  %7682 = vmatprep.subr.mxu1 %v1702_v8  ;;  %v1518_v25 = vand.u32 4294901760, %v1517_v15  ;;  %v9551_v26 = vand.u32 4294901760, %v1403_v17  ;;  %v9554_v27 = vand.u32 4294901760, %v9540_v18  ;;  %v9558_v28 = vsub.f32 %v9455_v42, %v9471_v49  ;;  %v1353_v15 = vld [vmem:[#allocation2 + $0x48] sm:$0xff] }
 0x19e   : > { %7651 = vmatpush3.msra.mxu0 %v9447_v40  ;;  %7683 = vmatpush3.msra.mxu1 %v1702_v8  ;;  %v1528_v31 = vand.u32 4294901760, %v1527_v21  ;;  %v9562_v35 = vsub.f32 %v1400_v16, %v9548_v24  ;;  %v1406_v36 = vsel %vm1392_vm2, %v1348_v19, 0  ;;  %v1409_v37 = vsel %vm1392_vm2, %v1349_v20, 0 }
 0x19f   : > { %7652 = vmatprep.subr.mxu0 %v9464_v46  ;;  %7684 = vmatprep.subr.mxu1 %v1709_v9  ;;  %v9568_v41 = vsub.f32 %v1403_v17, %v9551_v26  ;;  %v1736_v42 = vsub.f32 %v9540_v18, %v9554_v27  ;;  %v9573_v43 = vand.u32 4294901760, %v9558_v28  ;;  %v9575_v48 = vand.u32 4294901760, %v1406_v36 }
 0x1a0   : > { %7653 = vmatpush3.msra.mxu0 %v9464_v46  ;;  %7685 = vmatpush3.msra.mxu1 %v1709_v9  ;;  %v12403_v51 = vand.u32 4294901760, %v9562_v35  ;;  %v9579_v52 = vand.u32 4294901760, %v1409_v37  ;;  %v1412_v61 = vsel %vm1392_vm2, %v1350_v29, 0  ;;  %v1415_v62 = vsel %vm1392_vm2, %v1351_v30, 0  ;;  %v1354_v30 = vld [vmem:[#allocation2 + $0x50] sm:$0xff] }
 0x1a1   : > { %12640 = vst [vmem:[#allocation20_spill] sm:$0xff] %v9575_v48  ;;  %7654 = vmatprep.subr.mxu0 %v9471_v49  ;;  %7686 = vmatprep.subr.mxu1 %v1716_v11  ;;  %v12400_v1 = vand.u32 4294901760, %v9568_v41  ;;  %v1737_v5 = vand.u32 4294901760, %v1736_v42  ;;  %v1743_v6 = vsub.f32 %v9558_v28, %v9573_v43  ;;  %v9588_v7 = vsub.f32 %v1406_v36, %v9575_v48 }
 0x1a2   : > { %7655 = vmatpush3.msra.mxu0 %v9471_v49  ;;  %7656 = vmatprep.mubr.f32.mxu0 %v1518_v25  ;;  %v1537_v8 = vsub.f32 %v9562_v35, %v12403_v51  ;;  %v9595_v9 = vsub.f32 %v1409_v37, %v9579_v52  ;;  %v9597_v13 = vand.u32 4294901760, %v1412_v61  ;;  %v9599_v14 = vand.u32 4294901760, %v1415_v62 }
 0x1a3   : > { %7687 = vmatpush3.msra.mxu1 %v1716_v11  ;;  %7657 = vmatmul.mubr.f32.vlgmr.msra.gmra.mxu0 %v1528_v31  ;;  %v1547_v16 = vsub.f32 %v9568_v41, %v12400_v1  ;;  %v1744_v17 = vand.u32 4294901760, %v1743_v6  ;;  %v12399_v19 = vand.u32 4294901760, %v9588_v7  ;;  %v1418_v20 = vsel %vm1392_vm2, %v1352_v63, 0  ;;  %v1355_v31 = vld [vmem:[#allocation2 + $0x58] sm:$0xff]  ;;  %v1358_v1 = vld [vmem:[#allocation2 + $0x70] sm:$0xff] }
 0x1a4   : > { %7688 = vmatprep.subr.mxu1 %v1723_v22  ;;  %v1538_v21 = vand.u32 4294901760, %v1537_v8  ;;  %7720 = vmatprep.subr.mxu0 %v9459_v44  ;;  %v12398_v25 = vand.u32 4294901760, %v9595_v9  ;;  %v9609_v29 = vsub.f32 %v1412_v61, %v9597_v13  ;;  %v9612_v11 = vsub.f32 %v1415_v62, %v9599_v14  ;;  %v1356_v8 = vld [vmem:[#allocation2 + $0x60] sm:$0xff] }
 0x1a5   : > { %7689 = vmatpush3.msra.mxu1 %v1723_v22  ;;  %v1548_v36 = vand.u32 4294901760, %v1547_v16  ;;  %v1557_v37 = vsub.f32 %v9588_v7, %v12399_v19  ;;  %7721 = vmatpush3.msra.mxu0 %v9459_v44  ;;  %v9618_v42 = vand.u32 4294901760, %v1418_v20  ;;  %v1421_v63 = vsel %vm1392_vm2, %v1353_v15, 0 }
 0x1a6   : > { %7690 = vmatprep.subr.mxu1 %v9546_v23  ;;  %7659 = vmatprep.mubr.f32.mxu0 %v1538_v21  ;;  %v1567_v61 = vsub.f32 %v9595_v9, %v12398_v25  ;;  %v12401_v22 = vand.u32 4294901760, %v9609_v29  ;;  %v12402_v62 = vand.u32 4294901760, %v9612_v11  ;;  %v9627_v6 = vand.u32 4294901760, %v1421_v63 }
 0x1a7   : > { %7691 = vmatpush3.msra.mxu1 %v9546_v23  ;;  %7660 = vmatmul.mubr.f32.gmra.mxu0 %v1548_v36  ;;  %v1558_v44 = vand.u32 4294901760, %v1557_v37  ;;  %v9631_v15 = vsub.f32 %v1418_v20, %v9618_v42  ;;  %v1424_v16 = vsel %vm1392_vm2, %v1354_v30, 0  ;;  %v1427_v21 = vsel %vm1392_vm2, %v1355_v31, 0  ;;  %v1357_v20 = vld [vmem:[#allocation2 + $0x68] sm:$0xff] }
 0x1a8   : > { %7692 = vmatprep.subr.mxu1 %v1737_v5  ;;  %v1568_v25 = vand.u32 4294901760, %v1567_v61  ;;  %7722 = vmatprep.subr.mxu0 %v9462_v45  ;;  %v1577_v19 = vsub.f32 %v9609_v29, %v12401_v22  ;;  %v1587_v23 = vsub.f32 %v9612_v11, %v12402_v62  ;;  %v9643_v36 = vsub.f32 %v1421_v63, %v9627_v6 }
 0x1a9   : > { %7693 = vmatpush3.msra.mxu1 %v1737_v5  ;;  %7662 = vmatprep.mubr.f32.mxu0 %v1558_v44  ;;  %v12404_v30 = vand.u32 4294901760, %v9631_v15  ;;  %v9646_v31 = vand.u32 4294901760, %v1424_v16  ;;  %v9648_v37 = vand.u32 4294901760, %v1427_v21  ;;  %v1430_v61 = vsel %vm1392_vm2, %v1356_v8, 0 }
 0x1aa   : > { %7694 = vmatprep.subr.mxu1 %v1744_v17  ;;  %v1578_v22 = vand.u32 4294901760, %v1577_v19  ;;  %7723 = vmatpush3.msra.mxu0 %v9462_v45  ;;  %v1588_v62 = vand.u32 4294901760, %v1587_v23  ;;  %v12406_v63 = vand.u32 4294901760, %v9643_v36  ;;  %v9653_v51 = vand.u32 4294901760, %v1430_v61  ;;  %v1359_v45 = vld [vmem:[#allocation2 + $0x78] sm:$0xff] }
 0x1ab   : > { %7695 = vmatpush3.msra.mxu1 %v1744_v17  ;;  %7663 = vmatmul.mubr.f32.gmra.mxu0 %v1568_v25  ;;  %v1597_v5 = vsub.f32 %v9631_v15, %v12404_v30  ;;  %v9659_v44 = vsub.f32 %v1424_v16, %v9646_v31  ;;  %v9662_v8 = vsub.f32 %v1427_v21, %v9648_v37  ;;  %v1433_v19 = vsel %vm1392_vm2, %v1357_v20, 0 }
 0x1ac   : > { %7697 = vmatmul.mubr.f32.vlgmr.msra.gmra.mxu1 %v9494_v58  ;;  %7760 = vmatprep.subr.mxu1 %v9428_v32  ;;  %v1607_v17 = vsub.f32 %v9643_v36, %v12406_v63  ;;  %v9671_v25 = vsub.f32 %v1430_v61, %v9653_v51  ;;  %v9673_v23 = vand.u32 4294901760, %v1433_v19  ;;  %v1436_v16 = vsel %vm1392_vm2, %v1358_v1, 0 }
 0x1ad   : > { %7761 = vmatpush3.msra.mxu1 %v9428_v32  ;;  %7665 = vmatprep.mubr.f32.mxu0 %v1578_v22  ;;  %v1598_v21 = vand.u32 4294901760, %v1597_v5  ;;  %v12408_v20 = vand.u32 4294901760, %v9659_v44  ;;  %v12409_v30 = vand.u32 4294901760, %v9662_v8  ;;  %v9679_v12 = vand.u32 4294901760, %v1436_v16 }
 0x1ae   : > { %7699 = vmatprep.mubr.f32.mxu1 %v9548_v24  ;;  %7762 = vmatprep.subr.mxu1 %v9430_v33  ;;  %v1608_v61 = vand.u32 4294901760, %v1607_v17  ;;  %v9685_v10 = vsub.f32 %v1433_v19, %v9673_v23  ;;  %v1439_v1 = vsel %vm1392_vm2, %v1359_v45, 0  ;;  %v12641_v45 = vand.u32 4294901760, %v9671_v25 }
 0x1af   : > { %7666 = vmatmul.mubr.f32.gmra.mxu0 %v1588_v62  ;;  %7763 = vmatpush3.msra.mxu1 %v9430_v33  ;;  %v1617_v22 = vsub.f32 %v9659_v44, %v12408_v20  ;;  %v1627_v5 = vsub.f32 %v9662_v8, %v12409_v30  ;;  %v9696_v17 = vsub.f32 %v1436_v16, %v9679_v12  ;;  %v9698_v63 = vand.u32 4294901760, %v1439_v1 }
 0x1b0   : > { %7700 = vmatmul.mubr.f32.gmra.mxu1 %v9551_v26  ;;  %7724 = vmatprep.subr.mxu0 %v9467_v47  ;;  %v1646_v62 = vand.u32 4294901760, %v9685_v10  ;;  %v1637_v20 = vsub.f32 %v9671_v25, %v12641_v45 }
 0x1b1   : > { %7668 = vmatprep.mubr.f32.mxu0 %v1598_v21  ;;  %7702 = vmatprep.mubr.f32.mxu1 %v9575_v48  ;;  %v1618_v19 = vand.u32 4294901760, %v1617_v22  ;;  %v1656_v30 = vand.u32 4294901760, %v9696_v17  ;;  %v9709_v16 = vsub.f32 %v1439_v1, %v9698_v63  ;;  %v1628_v21 = vand.u32 4294901760, %v1627_v5 }
 0x1b2   : > { %7725 = vmatpush3.msra.mxu0 %v9467_v47  ;;  %7764 = vmatprep.subr.mxu1 %v9432_v34  ;;  %v1647_v22 = vsub.f32 %v9685_v10, %v1646_v62  ;;  %v1638_v47 = vand.u32 4294901760, %v1637_v20 }
 0x1b3   : > { %7669 = vmatmul.mubr.f32.gmra.mxu0 %v1608_v61  ;;  %7765 = vmatpush3.msra.mxu1 %v9432_v34  ;;  %v1666_v48 = vand.u32 4294901760, %v9709_v16  ;;  %v1657_v61 = vsub.f32 %v9696_v17, %v1656_v30 }
 0x1b4   : > { %7703 = vmatmul.mubr.f32.gmra.mxu1 %v9579_v52  ;;  %7726 = vmatprep.subr.mxu0 %v9474_v50  ;;  %v1648_v1 = vand.u32 4294901760, %v1647_v22  ;;  %v1362_v22 = vld [vmem:[%s9180_s16 + $0x10] sm:$0xff] }
 0x1b5   : > { %7671 = vmatprep.mubr.f32.mxu0 %v1618_v19  ;;  %7705 = vmatprep.mubr.f32.mxu1 %v9597_v13  ;;  %v1667_v5 = vsub.f32 %v9709_v16, %v1666_v48  ;;  %v1658_v20 = vand.u32 4294901760, %v1657_v61  ;;  %v1377_v61 = vld [vmem:[%s12380_s5 + $0x8] sm:$0xff] }
 0x1b6   : > { %7727 = vmatpush3.msra.mxu0 %v9474_v50  ;;  %7766 = vmatprep.subr.mxu1 %v9443_v38 }
 0x1b7   : > { %7672 = vmatmul.mubr.f32.gmra.mxu0 %v1628_v21  ;;  %7767 = vmatpush3.msra.mxu1 %v9443_v38  ;;  %v1668_v50 = vand.u32 4294901760, %v1667_v5  ;;  %v1361_v21 = vld [vmem:[%s9180_s16 + $0x8] sm:$0xff] }
 0x1b8   : > { %7706 = vmatmul.mubr.f32.gmra.mxu1 %v9599_v14  ;;  %7728 = vmatprep.subr.mxu0 %v9497_v59 }
 0x1b9   : > { %7674 = vmatprep.mubr.f32.mxu0 %v1638_v47  ;;  %7708 = vmatprep.mubr.f32.mxu1 %v9618_v42  ;;  %v2627_v47 = vsel %vm1392_vm2, %v1361_v21, 0 }
 0x1ba   : > { %7729 = vmatpush3.msra.mxu0 %v9497_v59  ;;  %7768 = vmatprep.subr.mxu1 %v9445_v39  ;;  %v12642_v59 = vand.u32 4294901760, %v9510_v0 }
 0x1bb   : > { %7675 = vmatmul.mubr.f32.gmra.mxu0 %v1648_v1  ;;  %7769 = vmatpush3.msra.mxu1 %v9445_v39 }
 0x1bc   : > { %7709 = vmatmul.mubr.f32.gmra.mxu1 %v9627_v6  ;;  %7730 = vmatprep.subr.mxu0 %v9500_v60 }
 0x1bd   : > { %7677 = vmatprep.mubr.f32.mxu0 %v1658_v20  ;;  %7711 = vmatprep.mubr.f32.mxu1 %v9646_v31 }
 0x1be   : > { %7731 = vmatpush3.msra.mxu0 %v9500_v60  ;;  %7770 = vmatprep.subr.mxu1 %v9447_v40  ;;  %v12643_v60 = vand.u32 4294901760, %v9516_v2 }
 0x1bf   : > { %7678 = vmatmul.mubr.f32.gmra.mxu0 %v1668_v50  ;;  %7732 = vmatprep.subr.mxu0 %v9540_v18 }
 0x1c0   : > { %7712 = vmatmul.mubr.f32.gmra.mxu1 %v9648_v37  ;;  %7733 = vmatpush3.msra.mxu0 %v9540_v18  ;;  %v12644_v18 = vand.u32 4294901760, %v9562_v35 }
 0x1c1   : > { %7771 = vmatpush3.msra.mxu1 %v9447_v40  ;;  %7734 = vmatprep.subr.mxu0 %v9558_v28 }
 0x1c2   : > { %7714 = vmatprep.mubr.f32.mxu1 %v9653_v51  ;;  %7735 = vmatpush3.msra.mxu0 %v9558_v28 }
 0x1c3   : > { %7736 = vmatprep.mubr.f32.mxu0 %v9510_v0  ;;  %7772 = vmatprep.subr.mxu1 %v9464_v46  ;;  %v12648_v0 = vand.u32 4294901760, %v9609_v29 }
 0x1c4   : > { %7715 = vmatmul.mubr.f32.gmra.mxu1 %v9673_v23  ;;  %7737 = vmatmul.mubr.f32.vlgmr.msra.gmra.mxu0 %v9516_v2  ;;  %v12649_v2 = vand.u32 4294901760, %v9612_v11 }
 0x1c5   : > { %7773 = vmatpush3.msra.mxu1 %v9464_v46  ;;  %7717 = vmatprep.mubr.f32.mxu1 %v9679_v12 }
 0x1c6   : > { %7739 = vmatprep.mubr.f32.mxu0 %v9562_v35  ;;  %7774 = vmatprep.subr.mxu1 %v9471_v49 }
 0x1c7   : > { %7775 = vmatpush3.msra.mxu1 %v9471_v49  ;;  %7800 = vmatprep.subr.mxu0 %v9480_v53 }
 0x1c8   : > { %7718 = vmatmul.mubr.f32.gmra.mxu1 %v9698_v63  ;;  %7740 = vmatmul.mubr.f32.gmra.mxu0 %v9568_v41 }
 0x1c9   : > { %7742 = vmatprep.mubr.f32.mxu0 %v9588_v7  ;;  %7776 = vmatprep.mubr.f32.mxu1 %v12642_v59  ;;  %v2630_v59 = vsel %vm1392_vm2, %v1362_v22, 0 }
 0x1ca   : > { %7801 = vmatpush3.msra.mxu0 %v9480_v53  ;;  %7840 = vmatprep.subr.mxu1 %v9428_v32  ;;  %v12645_v53 = vand.u32 4294901760, %v9568_v41  ;;  %v1381_v41 = vld [vmem:[%s12380_s5 + $0x28] sm:$0xff] }
 0x1cb   : > { %7802 = vmatprep.subr.mxu0 %v9483_v54 }
 0x1cc   : > { %7743 = vmatmul.mubr.f32.gmra.mxu0 %v9595_v9  ;;  %7777 = vmatmul.mubr.f32.vlgmr.msra.gmra.mxu1 %v12643_v60  ;;  %v1364_v60 = vld [vmem:[%s9180_s16 + $0x20] sm:$0xff] }
 0x1cd   : > { %7841 = vmatpush3.msra.mxu1 %v9428_v32  ;;  %7745 = vmatprep.mubr.f32.mxu0 %v9609_v29  ;;  %v12646_v32 = vand.u32 4294901760, %v9588_v7  ;;  %v9838_v29 = vand.u32 4294901760, %v1381_v41 }
 0x1ce   : > { %7779 = vmatprep.mubr.f32.mxu1 %v12644_v18  ;;  %7803 = vmatpush3.msra.mxu0 %v9483_v54  ;;  %v12647_v54 = vand.u32 4294901760, %v9595_v9  ;;  %v1376_v18 = vld [vmem:[%s12380_s5] sm:$0xff] }
 0x1cf   : > { %7842 = vmatprep.subr.mxu1 %v9430_v33  ;;  %7804 = vmatprep.subr.mxu0 %v9486_v55 }
 0x1d0   : > { %7746 = vmatmul.mubr.f32.gmra.mxu0 %v9612_v11  ;;  %7780 = vmatmul.mubr.f32.gmra.mxu1 %v12645_v53  ;;  %v12654_v11 = vmov %v12641_v45  ;;  %v9939_v53 = vand.u32 4294901760, %v2627_v47 }
 0x1d1   : > { %7843 = vmatpush3.msra.mxu1 %v9430_v33  ;;  %7748 = vmatprep.mubr.f32.mxu0 %v9631_v15  ;;  %v1383_v33 = vld [vmem:[%s12380_s5 + $0x38] sm:$0xff] }
 0x1d2   : > { %7782 = vmatprep.mubr.f32.mxu1 %v12646_v32  ;;  %7805 = vmatpush3.msra.mxu0 %v9486_v55  ;;  %v9799_v55 = vand.u32 4294901760, %v1383_v33  ;;  %v9942_v32 = vand.u32 4294901760, %v1377_v61 }
 0x1d3   : > { %7844 = vmatprep.subr.mxu1 %v9432_v34  ;;  %7806 = vmatprep.subr.mxu0 %v9492_v57 }
 0x1d4   : > { %7749 = vmatmul.mubr.f32.gmra.mxu0 %v9643_v36  ;;  %7783 = vmatmul.mubr.f32.gmra.mxu1 %v12647_v54  ;;  %v9815_v28 = vsub.f32 %v1383_v33, %v9799_v55  ;;  %v1365_v33 = vld [vmem:[%s9180_s16 + $0x28] sm:$0xff] }
 0x1d5   : > { %7845 = vmatpush3.msra.mxu1 %v9432_v34  ;;  %7751 = vmatprep.mubr.f32.mxu0 %v9659_v44  ;;  %v1382_v34 = vld [vmem:[%s12380_s5 + $0x30] sm:$0xff] }
 0x1d6   : > { %7785 = vmatprep.mubr.f32.mxu1 %v12648_v0  ;;  %7807 = vmatpush3.msra.mxu0 %v9492_v57  ;;  %v12650_v57 = vand.u32 4294901760, %v9631_v15  ;;  %v9817_v35 = vand.u32 4294901760, %v1382_v34  ;;  %v9833_v7 = vand.u32 4294901760, %v9815_v28  ;;  %v1366_v0 = vld [vmem:[%s9180_s16 + $0x30] sm:$0xff] }
 0x1d7   : > { %7846 = vmatprep.subr.mxu1 %v9443_v38  ;;  %7808 = vmatprep.subr.mxu0 %v9519_v3 }
 0x1d8   : > { %7752 = vmatmul.mubr.f32.gmra.mxu0 %v9662_v8  ;;  %7786 = vmatmul.mubr.f32.gmra.mxu1 %v12649_v2  ;;  %v9836_v9 = vsub.f32 %v1382_v34, %v9817_v35  ;;  %v2924_v15 = vsub.f32 %v9815_v28, %v9833_v7  ;;  %v9955_v34 = vand.u32 4294901760, %v2630_v59 }
 0x1d9   : > { %7847 = vmatpush3.msra.mxu1 %v9443_v38  ;;  %7754 = vmatprep.mubr.f32.mxu0 %v9671_v25  ;;  %v12651_v38 = vand.u32 4294901760, %v9643_v36 }
 0x1da   : > { %7788 = vmatprep.mubr.f32.mxu1 %v12650_v57  ;;  %7809 = vmatpush3.msra.mxu0 %v9519_v3  ;;  %v12652_v3 = vand.u32 4294901760, %v9659_v44  ;;  %v9856_v36 = vand.u32 4294901760, %v9836_v9  ;;  %v9859_v44 = vsub.f32 %v1381_v41, %v9838_v29  ;;  %v2636_v57 = vsel %vm1392_vm2, %v1364_v60, 0  ;;  %v1369_v60 = vld [vmem:[%s9180_s16 + $0x48] sm:$0xff] }
 0x1db   : > { %7848 = vmatprep.subr.mxu1 %v9445_v39  ;;  %7810 = vmatprep.subr.mxu0 %v9522_v4 }
 0x1dc   : > { %7755 = vmatmul.mubr.f32.gmra.mxu0 %v9685_v10  ;;  %7789 = vmatmul.mubr.f32.gmra.mxu1 %v12651_v38  ;;  %v2925_v10 = vand.u32 4294901760, %v2924_v15  ;;  %v9881_v25 = vand.u32 4294901760, %v9859_v44  ;;  %v2642_v15 = vsel %vm1392_vm2, %v1366_v0, 0  ;;  %v1370_v0 = vld [vmem:[%s9180_s16 + $0x50] sm:$0xff] }
 0x1dd   : > { %7849 = vmatpush3.msra.mxu1 %v9445_v39  ;;  %7757 = vmatprep.mubr.f32.mxu0 %v9696_v17  ;;  %v12653_v39 = vand.u32 4294901760, %v9662_v8  ;;  %v2931_v8 = vsub.f32 %v9836_v9, %v9856_v36  ;;  %v1360_v17 = vld [vmem:[%s9180_s16] sm:$0xff] }
 0x1de   : > { %7791 = vmatprep.mubr.f32.mxu1 %v12652_v3  ;;  %7811 = vmatpush3.msra.mxu0 %v9522_v4  ;;  %v1380_v4 = vld [vmem:[%s12380_s5 + $0x20] sm:$0xff]  ;;  %v9961_v3 = vand.u32 4294901760, %v1376_v18 }
 0x1df   : > { %7812 = vmatprep.subr.mxu0 %v9554_v27  ;;  %7850 = vmatprep.subr.mxu1 %v9447_v40 }
 0x1e0   : > { %7758 = vmatmul.mubr.f32.gmra.mxu0 %v9709_v16  ;;  %7792 = vmatmul.mubr.f32.gmra.mxu1 %v12653_v39  ;;  %v9966_v39 = vsub.f32 %v2627_v47, %v9939_v53 }
 0x1e1   : > { %7813 = vmatpush3.msra.mxu0 %v9554_v27  ;;  %7851 = vmatpush3.msra.mxu1 %v9447_v40  ;;  %v9861_v27 = vand.u32 4294901760, %v1380_v4  ;;  %v1379_v40 = vld [vmem:[%s12380_s5 + $0x18] sm:$0xff] }
 0x1e2   : > { %7814 = vmatprep.subr.mxu0 %v9573_v43  ;;  %7794 = vmatprep.mubr.f32.mxu1 %v12654_v11  ;;  %v2639_v11 = vsel %vm1392_vm2, %v1365_v33, 0 }
 0x1e3   : > { %7815 = vmatpush3.msra.mxu0 %v9573_v43  ;;  %7816 = vmatprep.mubr.f32.mxu0 %v9488_v56  ;;  %v9874_v43 = vand.u32 4294901760, %v1379_v40 }
 0x1e4   : > { %7795 = vmatmul.mubr.f32.gmra.mxu1 %v1646_v62  ;;  %7817 = vmatmul.mubr.f32.vlgmr.msra.gmra.mxu0 %v9494_v58  ;;  %v12655_v62 = vld [vmem:[#allocation20_spill] sm:$0xff] }
 0x1e5   : > { %7852 = vmatprep.subr.mxu1 %v9464_v46  ;;  %7797 = vmatprep.mubr.f32.mxu1 %v1656_v30  ;;  %v9884_v30 = vsub.f32 %v1380_v4, %v9861_v27  ;;  %v9898_v19 = vsub.f32 %v1379_v40, %v9874_v43  ;;  %v9974_v40 = vsub.f32 %v1377_v61, %v9942_v32 }
 0x1e6   : > { %7853 = vmatpush3.msra.mxu1 %v9464_v46  ;;  %7819 = vmatprep.mubr.f32.mxu0 %v9548_v24  ;;  %v1378_v46 = vld [vmem:[%s12380_s5 + $0x10] sm:$0xff] }
 0x1e7   : > { %7854 = vmatprep.subr.mxu1 %v9471_v49  ;;  %7880 = vmatprep.subr.mxu0 %v9799_v55  ;;  %v9900_v45 = vand.u32 4294901760, %v1378_v46  ;;  %v9907_v16 = vand.u32 4294901760, %v9884_v30  ;;  %v9930_v50 = vand.u32 4294901760, %v9898_v19  ;;  %v10005_v61 = vand.u32 4294901760, %v9974_v40 }
 0x1e8   : > { %7798 = vmatmul.mubr.f32.gmra.mxu1 %v1666_v48  ;;  %7820 = vmatmul.mubr.f32.gmra.mxu0 %v9551_v26  ;;  %v2932_v48 = vand.u32 4294901760, %v2931_v8  ;;  %v1367_v8 = vld [vmem:[%s9180_s16 + $0x38] sm:$0xff] }
 0x1e9   : > { %7855 = vmatpush3.msra.mxu1 %v9471_v49  ;;  %7822 = vmatprep.mubr.f32.mxu0 %v12655_v62  ;;  %v2938_v49 = vsub.f32 %v9859_v44, %v9881_v25  ;;  %12656 = vst [vmem:[#allocation20_spill] sm:$0xff] %v9907_v16  ;;  %v9921_v1 = vsub.f32 %v1378_v46, %v9900_v45  ;;  %12657 = vst [vmem:[#allocation21_spill] sm:$0xff] %v9930_v50  ;;  %v2645_v47 = vsel %vm1392_vm2, %v1367_v8, 0 }
 0x1ea   : > { %7856 = vmatprep.mubr.f32.mxu1 %v9488_v56  ;;  %7881 = vmatpush3.msra.mxu0 %v9799_v55  ;;  %v2624_v56 = vsel %vm1392_vm2, %v1360_v17, 0  ;;  %v2952_v41 = vsub.f32 %v9898_v19, %v9930_v50  ;;  %v9985_v17 = vsub.f32 %v2630_v59, %v9955_v34  ;;  %12659 = vst [vmem:[#allocation23_spill] sm:$0xff] %v10005_v61  ;;  %v10028_v33 = vand.u32 4294901760, %v2645_v47 }
 0x1eb   : > { %7920 = vmatprep.subr.mxu1 %v2925_v10  ;;  %7882 = vmatprep.subr.mxu0 %v9817_v35  ;;  %v9923_v5 = vand.u32 4294901760, %v2624_v56  ;;  %v2939_v20 = vand.u32 4294901760, %v2938_v49  ;;  %v9992_v49 = vand.u32 4294901760, %v2639_v11  ;;  %v2651_v8 = vsel %vm1392_vm2, %v1369_v60, 0 }
 0x1ec   : > { %7823 = vmatmul.mubr.f32.gmra.mxu0 %v9579_v52  ;;  %7857 = vmatmul.mubr.f32.vlgmr.msra.gmra.mxu1 %v9494_v58  ;;  %v1363_v58 = vld [vmem:[%s9180_s16 + $0x18] sm:$0xff]  ;;  %v2953_v21 = vand.u32 4294901760, %v2952_v41  ;;  %v12414_v59 = vand.u32 4294901760, %v9985_v17  ;;  %v10068_v60 = vand.u32 4294901760, %v2651_v8 }
 0x1ed   : > { %7921 = vmatpush3.msra.mxu1 %v2925_v10  ;;  %7825 = vmatprep.mubr.f32.mxu0 %v9597_v13  ;;  %v2633_v54 = vsel %vm1392_vm2, %v1363_v58, 0  ;;  %v9953_v2 = vsub.f32 %v2624_v56, %v9923_v5  ;;  %v9976_v10 = vand.u32 4294901760, %v2636_v57  ;;  %v12412_v56 = vand.u32 4294901760, %v9966_v39 }
 0x1ee   : > { %7859 = vmatprep.mubr.f32.mxu1 %v9548_v24  ;;  %7883 = vmatpush3.msra.mxu0 %v9817_v35  ;;  %v2945_v24 = vsub.f32 %v9884_v30, %v9907_v16  ;;  %v9968_v4 = vand.u32 4294901760, %v2633_v54  ;;  %v1374_v16 = vld [vmem:[%s9180_s16 + $0x70] sm:$0xff] }
 0x1ef   : > { %7922 = vmatprep.subr.mxu1 %v2932_v48  ;;  %7884 = vmatprep.subr.mxu0 %v9838_v29  ;;  %v12413_v46 = vand.u32 4294901760, %v9953_v2  ;;  %v10008_v58 = vsub.f32 %v2636_v57, %v9976_v10  ;;  %v2757_v57 = vsub.f32 %v9966_v39, %v12412_v56 }
 0x1f0   : > { %7826 = vmatmul.mubr.f32.gmra.mxu0 %v9599_v14  ;;  %7860 = vmatmul.mubr.f32.gmra.mxu1 %v9551_v26  ;;  %v9950_v26 = vand.u32 4294901760, %v9921_v1  ;;  %v2946_v38 = vand.u32 4294901760, %v2945_v24  ;;  %v10000_v22 = vsub.f32 %v2633_v54, %v9968_v4  ;;  %v10023_v54 = vsub.f32 %v2639_v11, %v9992_v49 }
 0x1f1   : > { %7923 = vmatpush3.msra.mxu1 %v2932_v48  ;;  %7828 = vmatprep.mubr.f32.mxu0 %v9618_v42  ;;  %v9990_v48 = vsub.f32 %v1376_v18, %v9961_v3  ;;  %v2747_v24 = vsub.f32 %v9953_v2, %v12413_v46  ;;  %v2966_v11 = vsub.f32 %v9974_v40, %v10005_v61  ;;  %v1373_v61 = vld [vmem:[%s9180_s16 + $0x68] sm:$0xff] }
 0x1f2   : > { %7862 = vmatprep.mubr.f32.mxu1 %v12655_v62  ;;  %7885 = vmatpush3.msra.mxu0 %v9838_v29  ;;  %12658 = vst [vmem:[#allocation22_spill] sm:$0xff] %v9950_v26  ;;  %v1368_v62 = vld [vmem:[%s9180_s16 + $0x40] sm:$0xff]  ;;  %v10057_v46 = vsub.f32 %v2645_v47, %v10028_v33 }
 0x1f3   : > { %7924 = vmatprep.subr.mxu1 %v2939_v20  ;;  %7886 = vmatprep.subr.mxu0 %v9861_v27  ;;  %v10020_v18 = vand.u32 4294901760, %v9990_v48  ;;  %v2967_v47 = vand.u32 4294901760, %v2966_v11  ;;  %v12662_v11 = vand.u32 4294901760, %v10023_v54 }
 0x1f4   : > { %7829 = vmatmul.mubr.f32.gmra.mxu0 %v9627_v6  ;;  %7863 = vmatmul.mubr.f32.gmra.mxu1 %v9579_v52  ;;  %v2959_v52 = vsub.f32 %v9921_v1, %v9950_v26  ;;  %v2816_v50 = vand.u32 4294901760, %v10057_v46 }
 0x1f5   : > { %7925 = vmatpush3.msra.mxu1 %v2939_v20  ;;  %7831 = vmatprep.mubr.f32.mxu0 %v9646_v31  ;;  %v2648_v20 = vsel %vm1392_vm2, %v1368_v62, 0  ;;  %12660 = vst [vmem:[#allocation24_spill] sm:$0xff] %v10020_v18  ;;  %v2654_v62 = vsel %vm1392_vm2, %v1370_v0, 0  ;;  %v2973_v56 = vsub.f32 %v9990_v48, %v10020_v18  ;;  %v2758_v0 = vand.u32 4294901760, %v2757_v57 }
 0x1f6   : > { %7865 = vmatprep.mubr.f32.mxu1 %v9597_v13  ;;  %7887 = vmatpush3.msra.mxu0 %v9861_v27  ;;  %v9994_v13 = vand.u32 4294901760, %v2642_v15  ;;  %v10037_v41 = vand.u32 4294901760, %v2648_v20 }
 0x1f7   : > { %7926 = vmatprep.subr.mxu1 %v2946_v38  ;;  %7888 = vmatprep.subr.mxu0 %v9874_v43 }
 0x1f8   : > { %7832 = vmatmul.mubr.f32.gmra.mxu0 %v9648_v37  ;;  %7866 = vmatmul.mubr.f32.gmra.mxu1 %v9599_v14  ;;  %v2960_v14 = vand.u32 4294901760, %v2959_v52  ;;  %v2767_v52 = vsub.f32 %v9985_v17, %v12414_v59 }
 0x1f9   : > { %7927 = vmatpush3.msra.mxu1 %v2946_v38  ;;  %7834 = vmatprep.mubr.f32.mxu0 %v9653_v51  ;;  %v12417_v38 = vand.u32 4294901760, %v10000_v22 }
 0x1fa   : > { %7868 = vmatprep.mubr.f32.mxu1 %v9618_v42  ;;  %7889 = vmatpush3.msra.mxu0 %v9874_v43  ;;  %v10026_v42 = vsub.f32 %v2642_v15, %v9994_v13  ;;  %v10066_v15 = vsub.f32 %v2648_v20, %v10037_v41  ;;  %v2768_v20 = vand.u32 4294901760, %v2767_v52 }
 0x1fb   : > { %7928 = vmatprep.subr.mxu1 %v2953_v21  ;;  %7890 = vmatprep.subr.mxu0 %v9900_v45  ;;  %v2777_v59 = vsub.f32 %v10000_v22, %v12417_v38 }
 0x1fc   : > { %7835 = vmatmul.mubr.f32.gmra.mxu0 %v9673_v23  ;;  %7869 = vmatmul.mubr.f32.gmra.mxu1 %v9627_v6  ;;  %v2748_v6 = vand.u32 4294901760, %v2747_v24  ;;  %v1372_v24 = vld [vmem:[%s9180_s16 + $0x60] sm:$0xff]  ;;  %v12663_v26 = vand.u32 4294901760, %v10026_v42 }
 0x1fd   : > { %7929 = vmatpush3.msra.mxu1 %v2953_v21  ;;  %7837 = vmatprep.mubr.f32.mxu0 %v9679_v12  ;;  %v1371_v21 = vld [vmem:[%s9180_s16 + $0x58] sm:$0xff]  ;;  %v2660_v38 = vsel %vm1392_vm2, %v1372_v24, 0 }
 0x1fe   : > { %7871 = vmatprep.mubr.f32.mxu1 %v9646_v31  ;;  %7891 = vmatpush3.msra.mxu0 %v9900_v45  ;;  %v12661_v31 = vand.u32 4294901760, %v10008_v58  ;;  %v2657_v57 = vsel %vm1392_vm2, %v1371_v21, 0  ;;  %v2807_v21 = vsub.f32 %v10026_v42, %v12663_v26 }
 0x1ff   : > { %7892 = vmatprep.subr.mxu0 %v9942_v32  ;;  %7930 = vmatprep.subr.mxu1 %v2960_v14 }
 0x200   : > { %7838 = vmatmul.mubr.f32.gmra.mxu0 %v9698_v63  ;;  %7872 = vmatmul.mubr.f32.gmra.mxu1 %v9648_v37  ;;  %v2787_v18 = vsub.f32 %v10008_v58, %v12661_v31  ;;  %v10074_v37 = vand.u32 4294901760, %v2654_v62  ;;  %v2797_v31 = vsub.f32 %v10023_v54, %v12662_v11  ;;  %v10101_v11 = vand.u32 4294901760, %v2660_v38 }
 0x201   : > { %7893 = vmatpush3.msra.mxu0 %v9942_v32  ;;  %7931 = vmatpush3.msra.mxu1 %v2960_v14  ;;  %v2974_v14 = vand.u32 4294901760, %v2973_v56  ;;  %v10093_v56 = vsub.f32 %v2651_v8, %v10068_v60  ;;  %v2808_v52 = vand.u32 4294901760, %v2807_v21 }
 0x202   : > { %7894 = vmatprep.subr.mxu0 %v9961_v3  ;;  %7874 = vmatprep.mubr.f32.mxu1 %v9653_v51  ;;  %v2778_v51 = vand.u32 4294901760, %v2777_v59  ;;  %v2788_v24 = vand.u32 4294901760, %v2787_v18  ;;  %v10099_v26 = vsub.f32 %v2654_v62, %v10074_v37  ;;  %v2666_v59 = vsel %vm1392_vm2, %v1374_v16, 0 }
 0x203   : > { %7895 = vmatpush3.msra.mxu0 %v9961_v3  ;;  %7896 = vmatprep.mubr.f32.mxu0 %v2748_v6  ;;  %v10095_v6 = vand.u32 4294901760, %v2657_v57  ;;  %v2798_v8 = vand.u32 4294901760, %v2797_v31  ;;  %v12664_v18 = vand.u32 4294901760, %v10066_v15  ;;  %v2836_v62 = vand.u32 4294901760, %v10093_v56 }
 0x204   : > { %7875 = vmatmul.mubr.f32.gmra.mxu1 %v9673_v23  ;;  %7897 = vmatmul.mubr.f32.vlgmr.msra.gmra.mxu0 %v2758_v0  ;;  %v2663_v23 = vsel %vm1392_vm2, %v1373_v61, 0  ;;  %v1375_v0 = vld [vmem:[%s9180_s16 + $0x78] sm:$0xff]  ;;  %v10122_v31 = vsub.f32 %v2660_v38, %v10101_v11 }
 0x205   : > { %7932 = vmatprep.subr.mxu1 %v2967_v47  ;;  %7877 = vmatprep.mubr.f32.mxu1 %v9679_v12  ;;  %v2817_v12 = vsub.f32 %v10057_v46, %v2816_v50  ;;  %v2827_v61 = vsub.f32 %v10066_v15, %v12664_v18  ;;  %v10116_v16 = vsub.f32 %v2657_v57, %v10095_v6  ;;  %v2669_v21 = vsel %vm1392_vm2, %v1375_v0, 0 }
 0x206   : > { %7933 = vmatpush3.msra.mxu1 %v2967_v47  ;;  %7899 = vmatprep.mubr.f32.mxu0 %v2768_v20  ;;  %v10118_v47 = vand.u32 4294901760, %v2663_v23  ;;  %v2846_v20 = vand.u32 4294901760, %v10099_v26  ;;  %v2837_v38 = vsub.f32 %v10093_v56, %v2836_v62 }
 0x207   : > { %7934 = vmatprep.subr.mxu1 %v2974_v14  ;;  %7960 = vmatprep.subr.mxu0 %v9815_v28  ;;  %v2818_v57 = vand.u32 4294901760, %v2817_v12 }
 0x208   : > { %7878 = vmatmul.mubr.f32.gmra.mxu1 %v9698_v63  ;;  %7900 = vmatmul.mubr.f32.gmra.mxu0 %v2778_v51  ;;  %v10124_v63 = vand.u32 4294901760, %v2666_v59  ;;  %v10137_v51 = vsub.f32 %v2663_v23, %v10118_v47  ;;  %v2847_v0 = vsub.f32 %v10099_v26, %v2846_v20 }
 0x209   : > { %7935 = vmatpush3.msra.mxu1 %v2974_v14  ;;  %7902 = vmatprep.mubr.f32.mxu0 %v2788_v24  ;;  %v2856_v14 = vand.u32 4294901760, %v10116_v16  ;;  %v10139_v24 = vand.u32 4294901760, %v2669_v21 }
 0x20a   : > { %7936 = vmatprep.mubr.f32.mxu1 %v9923_v5  ;;  %7961 = vmatpush3.msra.mxu0 %v9815_v28  ;;  %v2828_v28 = vand.u32 4294901760, %v2827_v61  ;;  %v10147_v12 = vsub.f32 %v2666_v59, %v10124_v63  ;;  %v2876_v18 = vand.u32 4294901760, %v10137_v51 }
 0x20b   : > { %8000 = vmatprep.subr.mxu1 %v9799_v55  ;;  %7962 = vmatprep.subr.mxu0 %v9836_v9  ;;  %v2857_v23 = vsub.f32 %v10116_v16, %v2856_v14  ;;  %v10159_v59 = vsub.f32 %v2669_v21, %v10139_v24 }
 0x20c   : > { %7903 = vmatmul.mubr.f32.gmra.mxu0 %v2798_v8  ;;  %7937 = vmatmul.mubr.f32.vlgmr.msra.gmra.mxu1 %v9939_v53  ;;  %v2866_v8 = vand.u32 4294901760, %v10122_v31 }
 0x20d   : > { %8001 = vmatpush3.msra.mxu1 %v9799_v55  ;;  %7905 = vmatprep.mubr.f32.mxu0 %v2808_v52  ;;  %v2838_v52 = vand.u32 4294901760, %v2837_v38  ;;  %v2858_v21 = vand.u32 4294901760, %v2857_v23  ;;  %v2877_v38 = vsub.f32 %v10137_v51, %v2876_v18 }
 0x20e   : > { %7939 = vmatprep.mubr.f32.mxu1 %v9955_v34  ;;  %7963 = vmatpush3.msra.mxu0 %v9836_v9  ;;  %v2848_v9 = vand.u32 4294901760, %v2847_v0  ;;  %v2867_v61 = vsub.f32 %v10122_v31, %v2866_v8 }
 0x20f   : > { %8002 = vmatprep.subr.mxu1 %v9817_v35  ;;  %7964 = vmatprep.subr.mxu0 %v9859_v44 }
 0x210   : > { %7906 = vmatmul.mubr.f32.gmra.mxu0 %v2818_v57  ;;  %7940 = vmatmul.mubr.f32.gmra.mxu1 %v9968_v4  ;;  %v2886_v57 = vand.u32 4294901760, %v10147_v12  ;;  %v2868_v0 = vand.u32 4294901760, %v2867_v61  ;;  %v3902_v61 = vld [vmem:[%s12383_s8 + $0x50] sm:$0xff] }
 0x211   : > { %8003 = vmatpush3.msra.mxu1 %v9817_v35  ;;  %7908 = vmatprep.mubr.f32.mxu0 %v2828_v28  ;;  %v2896_v28 = vand.u32 4294901760, %v10159_v59 }
 0x212   : > { %7942 = vmatprep.mubr.f32.mxu1 %v9976_v10  ;;  %7965 = vmatpush3.msra.mxu0 %v9859_v44  ;;  %v2887_v44 = vsub.f32 %v10147_v12, %v2886_v57 }
 0x213   : > { %8004 = vmatprep.subr.mxu1 %v9838_v29  ;;  %7966 = vmatprep.subr.mxu0 %v9884_v30  ;;  %v2897_v23 = vsub.f32 %v10159_v59, %v2896_v28 }
 0x214   : > { %7909 = vmatmul.mubr.f32.gmra.mxu0 %v2838_v52  ;;  %7943 = vmatmul.mubr.f32.gmra.mxu1 %v9992_v49  ;;  %v2878_v52 = vand.u32 4294901760, %v2877_v38 }
 0x215   : > { %8005 = vmatpush3.msra.mxu1 %v9838_v29  ;;  %7911 = vmatprep.mubr.f32.mxu0 %v2848_v9  ;;  %v2888_v9 = vand.u32 4294901760, %v2887_v44 }
 0x216   : > { %7945 = vmatprep.mubr.f32.mxu1 %v9994_v13  ;;  %7967 = vmatpush3.msra.mxu0 %v9884_v30  ;;  %v2898_v30 = vand.u32 4294901760, %v2897_v23 }
 0x217   : > { %8006 = vmatprep.subr.mxu1 %v9861_v27  ;;  %7968 = vmatprep.subr.mxu0 %v9898_v19 }
 0x218   : > { %7912 = vmatmul.mubr.f32.gmra.mxu0 %v2858_v21  ;;  %7946 = vmatmul.mubr.f32.gmra.mxu1 %v10028_v33 }
 0x219   : > { %8007 = vmatpush3.msra.mxu1 %v9861_v27  ;;  %7914 = vmatprep.mubr.f32.mxu0 %v2868_v0  ;;  %v10411_v0 = vand.u32 4294901760, %v3902_v61 }
 0x21a   : > { %7948 = vmatprep.mubr.f32.mxu1 %v10037_v41  ;;  %7969 = vmatpush3.msra.mxu0 %v9898_v19  ;;  %v12665_v19 = vand.u32 4294901760, %v9953_v2 }
 0x21b   : > { %8008 = vmatprep.subr.mxu1 %v9874_v43  ;;  %7970 = vmatprep.subr.mxu0 %v9921_v1  ;;  %12691 = vst [vmem:[#allocation33_spill] sm:$0xff] %v10411_v0 }
 0x21c   : > { %7915 = vmatmul.mubr.f32.gmra.mxu0 %v2878_v52  ;;  %7949 = vmatmul.mubr.f32.gmra.mxu1 %v10068_v60 }
 0x21d   : > { %8009 = vmatpush3.msra.mxu1 %v9874_v43  ;;  %7917 = vmatprep.mubr.f32.mxu0 %v2888_v9  ;;  %v3901_v9 = vld [vmem:[%s12383_s8 + $0x48] sm:$0xff] }
 0x21e   : > { %7951 = vmatprep.mubr.f32.mxu1 %v10074_v37  ;;  %7971 = vmatpush3.msra.mxu0 %v9921_v1  ;;  %v12666_v1 = vand.u32 4294901760, %v9966_v39 }
 0x21f   : > { %7972 = vmatprep.subr.mxu0 %v9974_v40  ;;  %8010 = vmatprep.subr.mxu1 %v9900_v45 }
 0x220   : > { %7918 = vmatmul.mubr.f32.gmra.mxu0 %v2898_v30  ;;  %7952 = vmatmul.mubr.f32.gmra.mxu1 %v10095_v6 }
 0x221   : > { %7973 = vmatpush3.msra.mxu0 %v9974_v40  ;;  %8011 = vmatpush3.msra.mxu1 %v9900_v45  ;;  %v12667_v40 = vand.u32 4294901760, %v9985_v17 }
 0x222   : > { %7974 = vmatprep.subr.mxu0 %v9990_v48  ;;  %7954 = vmatprep.mubr.f32.mxu1 %v10101_v11 }
 0x223   : > { %7975 = vmatpush3.msra.mxu0 %v9990_v48  ;;  %7976 = vmatprep.mubr.f32.mxu0 %v9953_v2  ;;  %v12671_v2 = vand.u32 4294901760, %v10023_v54 }
 0x224   : > { %7955 = vmatmul.mubr.f32.gmra.mxu1 %v10118_v47  ;;  %7977 = vmatmul.mubr.f32.vlgmr.msra.gmra.mxu0 %v9966_v39  ;;  %v12675_v39 = vld [vmem:[#allocation22_spill] sm:$0xff] }
 0x225   : > { %8012 = vmatprep.subr.mxu1 %v9942_v32  ;;  %7957 = vmatprep.mubr.f32.mxu1 %v10124_v63 }
 0x226   : > { %8013 = vmatpush3.msra.mxu1 %v9942_v32  ;;  %7979 = vmatprep.mubr.f32.mxu0 %v9985_v17 }
 0x227   : > { %8014 = vmatprep.subr.mxu1 %v9961_v3  ;;  %8040 = vmatprep.subr.mxu0 %v9833_v7 }
 0x228   : > { %7958 = vmatmul.mubr.f32.gmra.mxu1 %v10139_v24  ;;  %7980 = vmatmul.mubr.f32.gmra.mxu0 %v10000_v22 }
 0x229   : > { %8015 = vmatpush3.msra.mxu1 %v9961_v3  ;;  %7982 = vmatprep.mubr.f32.mxu0 %v10008_v58 }
 0x22a   : > { %8016 = vmatprep.mubr.f32.mxu1 %v12665_v19  ;;  %8041 = vmatpush3.msra.mxu0 %v9833_v7  ;;  %v12668_v7 = vand.u32 4294901760, %v10000_v22 }
 0x22b   : > { %8080 = vmatprep.subr.mxu1 %v9799_v55  ;;  %8042 = vmatprep.subr.mxu0 %v9856_v36 }
 0x22c   : > { %7983 = vmatmul.mubr.f32.gmra.mxu0 %v10023_v54  ;;  %8017 = vmatmul.mubr.f32.vlgmr.msra.gmra.mxu1 %v12666_v1 }
 0x22d   : > { %8081 = vmatpush3.msra.mxu1 %v9799_v55  ;;  %7985 = vmatprep.mubr.f32.mxu0 %v10026_v42  ;;  %v12669_v55 = vand.u32 4294901760, %v10008_v58 }
 0x22e   : > { %8019 = vmatprep.mubr.f32.mxu1 %v12667_v40  ;;  %8043 = vmatpush3.msra.mxu0 %v9856_v36  ;;  %v12670_v36 = vld [vmem:[#allocation20_spill] sm:$0xff]  ;;  %v10429_v40 = vsub.f32 %v3902_v61, %v10411_v0 }
 0x22f   : > { %8082 = vmatprep.subr.mxu1 %v9817_v35  ;;  %8044 = vmatprep.subr.mxu0 %v9881_v25 }
 0x230   : > { %7986 = vmatmul.mubr.f32.gmra.mxu0 %v10057_v46  ;;  %8020 = vmatmul.mubr.f32.gmra.mxu1 %v12668_v7  ;;  %12693 = vst [vmem:[#allocation35_spill] sm:$0xff] %v10429_v40  ;;  %v10431_v7 = vand.u32 4294901760, %v3901_v9 }
 0x231   : > { %8083 = vmatpush3.msra.mxu1 %v9817_v35  ;;  %7988 = vmatprep.mubr.f32.mxu0 %v10066_v15  ;;  %v12672_v35 = vand.u32 4294901760, %v10026_v42 }
 0x232   : > { %8022 = vmatprep.mubr.f32.mxu1 %v12669_v55  ;;  %8045 = vmatpush3.msra.mxu0 %v9881_v25  ;;  %v12673_v25 = vld [vmem:[#allocation21_spill] sm:$0xff]  ;;  %12694 = vst [vmem:[#allocation36_spill] sm:$0xff] %v10431_v7 }
 0x233   : > { %8084 = vmatprep.subr.mxu1 %v9838_v29  ;;  %8046 = vmatprep.subr.mxu0 %v12670_v36 }
 0x234   : > { %7989 = vmatmul.mubr.f32.gmra.mxu0 %v10093_v56  ;;  %8023 = vmatmul.mubr.f32.gmra.mxu1 %v12671_v2  ;;  %v3900_v2 = vld [vmem:[%s12383_s8 + $0x40] sm:$0xff] }
 0x235   : > { %8085 = vmatpush3.msra.mxu1 %v9838_v29  ;;  %7991 = vmatprep.mubr.f32.mxu0 %v10099_v26  ;;  %v12674_v29 = vand.u32 4294901760, %v10066_v15 }
 0x236   : > { %8025 = vmatprep.mubr.f32.mxu1 %v12672_v35  ;;  %8047 = vmatpush3.msra.mxu0 %v12670_v36 }
 0x237   : > { %8086 = vmatprep.subr.mxu1 %v9861_v27  ;;  %8048 = vmatprep.subr.mxu0 %v12673_v25 }
 0x238   : > { %7992 = vmatmul.mubr.f32.gmra.mxu0 %v10116_v16  ;;  %8026 = vmatmul.mubr.f32.gmra.mxu1 %v2816_v50 }
 0x239   : > { %8087 = vmatpush3.msra.mxu1 %v9861_v27  ;;  %7994 = vmatprep.mubr.f32.mxu0 %v10122_v31  ;;  %v12676_v27 = vld [vmem:[#allocation23_spill] sm:$0xff] }
 0x23a   : > { %8028 = vmatprep.mubr.f32.mxu1 %v12674_v29  ;;  %8049 = vmatpush3.msra.mxu0 %v12673_v25  ;;  %v10442_v29 = vand.u32 4294901760, %v10429_v40 }
 0x23b   : > { %8088 = vmatprep.subr.mxu1 %v9874_v43  ;;  %8050 = vmatprep.subr.mxu0 %v12675_v39 }
 0x23c   : > { %7995 = vmatmul.mubr.f32.gmra.mxu0 %v10137_v51  ;;  %8029 = vmatmul.mubr.f32.gmra.mxu1 %v2836_v62  ;;  %12696 = vst [vmem:[#allocation38_spill] sm:$0xff] %v10442_v29 }
 0x23d   : > { %8089 = vmatpush3.msra.mxu1 %v9874_v43  ;;  %7997 = vmatprep.mubr.f32.mxu0 %v10147_v12  ;;  %v12677_v43 = vld [vmem:[#allocation24_spill] sm:$0xff] }
 0x23e   : > { %8031 = vmatprep.mubr.f32.mxu1 %v2846_v20  ;;  %8051 = vmatpush3.msra.mxu0 %v12675_v39  ;;  %v10445_v39 = vsub.f32 %v3901_v9, %v10431_v7 }
 0x23f   : > { %8052 = vmatprep.subr.mxu0 %v12676_v27  ;;  %8090 = vmatprep.subr.mxu1 %v9900_v45 }
 0x240   : > { %7998 = vmatmul.mubr.f32.gmra.mxu0 %v10159_v59  ;;  %8032 = vmatmul.mubr.f32.gmra.mxu1 %v2856_v14  ;;  %12697 = vst [vmem:[#allocation39_spill] sm:$0xff] %v10445_v39 }
 0x241   : > { %8053 = vmatpush3.msra.mxu0 %v12676_v27  ;;  %8091 = vmatpush3.msra.mxu1 %v9900_v45  ;;  %v10447_v27 = vand.u32 4294901760, %v3900_v2 }
 0x242   : > { %8054 = vmatprep.subr.mxu0 %v12677_v43  ;;  %8034 = vmatprep.mubr.f32.mxu1 %v2866_v8 }
 0x243   : > { %8055 = vmatpush3.msra.mxu0 %v12677_v43  ;;  %8056 = vmatprep.mubr.f32.mxu0 %v9923_v5  ;;  %12698 = vst [vmem:[#allocation40_spill] sm:$0xff] %v10447_v27 }
 0x244   : > { %8035 = vmatmul.mubr.f32.gmra.mxu1 %v2876_v18  ;;  %8057 = vmatmul.mubr.f32.vlgmr.msra.gmra.mxu0 %v9939_v53 }
 0x245   : > { %8092 = vmatprep.subr.mxu1 %v9942_v32  ;;  %8037 = vmatprep.mubr.f32.mxu1 %v2886_v57 }
 0x246   : > { %8093 = vmatpush3.msra.mxu1 %v9942_v32  ;;  %8059 = vmatprep.mubr.f32.mxu0 %v9955_v34 }
 0x247   : > { %8094 = vmatprep.subr.mxu1 %v9961_v3 }
 0x248   : > { %8038 = vmatmul.mubr.f32.gmra.mxu1 %v2896_v28  ;;  %8060 = vmatmul.mubr.f32.gmra.mxu0 %v9968_v4 }
 0x249   : > { %8095 = vmatpush3.msra.mxu1 %v9961_v3  ;;  %8062 = vmatprep.mubr.f32.mxu0 %v9976_v10 }
 0x24a   : > { %8096 = vmatprep.mubr.f32.mxu1 %v9923_v5 }
 0x24c   : > { %8063 = vmatmul.mubr.f32.gmra.mxu0 %v9992_v49  ;;  %8097 = vmatmul.mubr.f32.vlgmr.msra.gmra.mxu1 %v9939_v53 }
 0x24d   : > { %8065 = vmatprep.mubr.f32.mxu0 %v9994_v13  ;;  %8099 = vmatprep.mubr.f32.mxu1 %v9955_v34 }
 0x250   : > { %8066 = vmatmul.mubr.f32.gmra.mxu0 %v10028_v33  ;;  %8100 = vmatmul.mubr.f32.gmra.mxu1 %v9968_v4 }
 0x251   : > { %8068 = vmatprep.mubr.f32.mxu0 %v10037_v41  ;;  %8102 = vmatprep.mubr.f32.mxu1 %v9976_v10  ;;  %v3907_v10 = vld [vmem:[%s12383_s8 + $0x78] sm:$0xff] }
 0x252   : > { %v10336_v17 = vand.u32 4294901760, %v3907_v10 }
 0x254   : > { %8069 = vmatmul.mubr.f32.gmra.mxu0 %v10068_v60  ;;  %8103 = vmatmul.mubr.f32.gmra.mxu1 %v9992_v49  ;;  %12678 = vst [vmem:[#allocation20_spill] sm:$0xff] %v10336_v17  ;;  %v3906_v49 = vld [vmem:[%s12383_s8 + $0x70] sm:$0xff]  ;;  %v10342_v22 = vsub.f32 %v3907_v10, %v10336_v17  ;;  %v4195_v10 = vsub.f32 %v10429_v40, %v10442_v29 }
 0x255   : > { %8071 = vmatprep.mubr.f32.mxu0 %v10074_v37  ;;  %8105 = vmatprep.mubr.f32.mxu1 %v9994_v13  ;;  %v10344_v58 = vand.u32 4294901760, %v3906_v49 }
 0x256   : > { %12679 = vst [vmem:[#allocation21_spill] sm:$0xff] %v10342_v22  ;;  %8120 = vmatprep.subr.mxu0 %v10336_v17  ;;  %v10358_v15 = vand.u32 4294901760, %v10342_v22 }
 0x257   : > { %12680 = vst [vmem:[#allocation22_spill] sm:$0xff] %v10344_v58  ;;  %8121 = vmatpush3.msra.mxu0 %v10336_v17 }
 0x258   : > { %8072 = vmatmul.mubr.f32.gmra.mxu0 %v10095_v6  ;;  %8106 = vmatmul.mubr.f32.gmra.mxu1 %v10028_v33  ;;  %v3905_v33 = vld [vmem:[%s12383_s8 + $0x68] sm:$0xff]  ;;  %12681 = vst [vmem:[#allocation23_spill] sm:$0xff] %v10358_v15 }
 0x259   : > { %8074 = vmatprep.mubr.f32.mxu0 %v10101_v11  ;;  %8108 = vmatprep.mubr.f32.mxu1 %v10037_v41 }
 0x25a   : > { %8122 = vmatprep.subr.mxu0 %v10344_v58 }
 0x25b   : > { %8123 = vmatpush3.msra.mxu0 %v10344_v58 }
 0x25c   : > { %8075 = vmatmul.mubr.f32.gmra.mxu0 %v10118_v47  ;;  %8109 = vmatmul.mubr.f32.gmra.mxu1 %v10068_v60  ;;  %v10361_v60 = vsub.f32 %v3906_v49, %v10344_v58  ;;  %v10468_v49 = vsub.f32 %v3900_v2, %v10447_v27 }
 0x25d   : > { %8077 = vmatprep.mubr.f32.mxu0 %v10124_v63  ;;  %8111 = vmatprep.mubr.f32.mxu1 %v10074_v37  ;;  %v10363_v37 = vand.u32 4294901760, %v3905_v33 }
 0x25e   : > { %12682 = vst [vmem:[#allocation24_spill] sm:$0xff] %v10361_v60  ;;  %v10373_v62 = vand.u32 4294901760, %v10361_v60  ;;  %12700 = vst [vmem:[#allocation42_spill] sm:$0xff] %v10468_v49 }
 0x25f   : > { %12683 = vst [vmem:[#allocation25_spill] sm:$0xff] %v10363_v37  ;;  %v10376_v16 = vsub.f32 %v3905_v33, %v10363_v37  ;;  %8124 = vmatprep.subr.mxu0 %v10363_v37 }
 0x260   : > { %8078 = vmatmul.mubr.f32.gmra.mxu0 %v10139_v24  ;;  %8112 = vmatmul.mubr.f32.gmra.mxu1 %v10095_v6  ;;  %v3904_v6 = vld [vmem:[%s12383_s8 + $0x60] sm:$0xff]  ;;  %12684 = vst [vmem:[#allocation26_spill] sm:$0xff] %v10373_v62 }
 0x261   : > { %8114 = vmatprep.mubr.f32.mxu1 %v10101_v11  ;;  %v4160_v11 = vsub.f32 %v10342_v22, %v10358_v15  ;;  %12685 = vst [vmem:[#allocation27_spill] sm:$0xff] %v10376_v16  ;;  %8125 = vmatpush3.msra.mxu0 %v10363_v37  ;;  %v10394_v8 = vand.u32 4294901760, %v10376_v16 }
 0x263   : > { %v7658_v45 = vpop.f32.mrf.mxu0  ;;  %v4161_v51 = vand.u32 4294901760, %v4160_v11  ;;  %12687 = vst [vmem:[#allocation29_spill] sm:$0xff] %v10394_v8  ;;  %v4174_v38 = vsub.f32 %v10376_v16, %v10394_v8  ;;  %v4196_v11 = vand.u32 4294901760, %v4195_v10 }
 0x264   : > { %8115 = vmatmul.mubr.f32.gmra.mxu1 %v10118_v47  ;;  %v10378_v47 = vand.u32 4294901760, %v3904_v6 }
 0x265   : > { %v10321_v5 = vpop.f32.mrf.mxu0  ;;  %8117 = vmatprep.mubr.f32.mxu1 %v10124_v63  ;;  %v3903_v63 = vld [vmem:[%s12383_s8 + $0x58] sm:$0xff]  ;;  %8176 = vmatprep.subr.mxu1 %v4161_v51  ;;  %v4175_v19 = vand.u32 4294901760, %v4174_v38  ;;  %v3897_v38 = vld [vmem:[%s12383_s8 + $0x28] sm:$0xff] }
 0x266   : > { %12686 = vst [vmem:[#allocation28_spill] sm:$0xff] %v10378_v47  ;;  %v10397_v12 = vsub.f32 %v3904_v6, %v10378_v47  ;;  %8126 = vmatprep.subr.mxu0 %v10378_v47  ;;  %v10400_v59 = vand.u32 4294901760, %v3903_v63  ;;  %8177 = vmatpush3.msra.mxu1 %v4161_v51  ;;  %v3898_v6 = vld [vmem:[%s12383_s8 + $0x30] sm:$0xff]  ;;  %v10480_v51 = vand.u32 4294901760, %v10468_v49  ;;  %v10503_v2 = vand.u32 4294901760, %v3897_v38 }
 0x267   : > { %v7661_v50 = vpop.f32.mrf.mxu0  ;;  %8127 = vmatpush3.msra.mxu0 %v10378_v47 }
 0x268   : > { %8118 = vmatmul.mubr.f32.gmra.mxu1 %v10139_v24  ;;  %v4167_v24 = vsub.f32 %v10361_v60, %v10373_v62  ;;  %12688 = vst [vmem:[#allocation30_spill] sm:$0xff] %v10397_v12  ;;  %12689 = vst [vmem:[#allocation31_spill] sm:$0xff] %v10400_v59  ;;  %v10409_v28 = vand.u32 4294901760, %v10397_v12  ;;  %v10418_v23 = vsub.f32 %v3903_v63, %v10400_v59  ;;  %8128 = vmatprep.subr.mxu0 %v10400_v59 }
 0x269   : > { %v10325_v53 = vpop.f32.mrf.mxu0  ;;  %8129 = vmatpush3.msra.mxu0 %v10400_v59  ;;  %12702 = vst [vmem:[#allocation44_spill] sm:$0xff] %v10480_v51  ;;  %12706 = vst [vmem:[#allocation48_spill] sm:$0xff] %v10503_v2 }
 0x26a   : > { %v4168_v21 = vand.u32 4294901760, %v4167_v24  ;;  %12690 = vst [vmem:[#allocation32_spill] sm:$0xff] %v10409_v28  ;;  %12692 = vst [vmem:[#allocation34_spill] sm:$0xff] %v10418_v23  ;;  %v4181_v1 = vsub.f32 %v10397_v12, %v10409_v28  ;;  %v10435_v36 = vand.u32 4294901760, %v10418_v23  ;;  %8130 = vmatprep.subr.mxu0 %v10411_v0  ;;  %v3894_v28 = vld [vmem:[%s12383_s8 + $0x10] sm:$0xff] }
 0x26b   : > { %v7664_v32 = vpop.f32.mrf.mxu0  ;;  %8131 = vmatpush3.msra.mxu0 %v10411_v0  ;;  %v10562_v62 = vand.u32 4294901760, %v3894_v28 }
 0x26c   : > { %v7698_v34 = vpop.f32.mrf.mxu1  ;;  %8178 = vmatprep.subr.mxu1 %v4168_v21  ;;  %12695 = vst [vmem:[#allocation37_spill] sm:$0xff] %v10435_v36  ;;  %v4182_v25 = vand.u32 4294901760, %v4181_v1  ;;  %8132 = vmatprep.subr.mxu0 %v10431_v7  ;;  %v4209_v1 = vsub.f32 %v10468_v49, %v10480_v51 }
 0x26d   : > { %v10327_v3 = vadd.f32 %v7698_v34, %v7658_v45  ;;  %v10329_v4 = vpop.f32.mrf.mxu0  ;;  %8179 = vmatpush3.msra.mxu1 %v4168_v21  ;;  %8133 = vmatpush3.msra.mxu0 %v10431_v7  ;;  %v10490_v21 = vand.u32 4294901760, %v3898_v6  ;;  %12716 = vst [vmem:[#allocation58_spill] sm:$0xff] %v10562_v62 }
 0x26e   : > { %v10334_v46 = vpop.f32.mrf.mxu1  ;;  %8180 = vmatprep.subr.mxu1 %v4175_v19  ;;  %8134 = vmatprep.subr.mxu0 %v10447_v27  ;;  %v4210_v10 = vand.u32 4294901760, %v4209_v1 }
 0x26f   : > { %v7667_v48 = vpop.f32.mrf.mxu0  ;;  %8181 = vmatpush3.msra.mxu1 %v4175_v19  ;;  %8135 = vmatpush3.msra.mxu0 %v10447_v27  ;;  %12704 = vst [vmem:[#allocation46_spill] sm:$0xff] %v10490_v21 }
 0x270   : > { %v7701_v13 = vpop.f32.mrf.mxu1  ;;  %8182 = vmatprep.subr.mxu1 %v4182_v25 }
 0x271   : > { %v10347_v54 = vadd.f32 %v7701_v13, %v7661_v50  ;;  %v10349_v42 = vpop.f32.mrf.mxu0  ;;  %v4188_v50 = vsub.f32 %v10418_v23, %v10435_v36  ;;  %8183 = vmatpush3.msra.mxu1 %v4182_v25  ;;  %v3896_v25 = vld [vmem:[%s12383_s8 + $0x20] sm:$0xff] }
 0x272   : > { %v10355_v41 = vpop.f32.mrf.mxu1 }
 0x273   : > { %v7670_v56 = vpop.f32.mrf.mxu0 }
 0x274   : > { %v7704_v26 = vpop.f32.mrf.mxu1 }
 0x275   : > { %v10381_v20 = vadd.f32 %v7704_v26, %v7664_v32  ;;  %v10383_v31 = vpop.f32.mrf.mxu0  ;;  %v3899_v32 = vld [vmem:[%s12383_s8 + $0x38] sm:$0xff] }
 0x276   : > { %v10389_v14 = vpop.f32.mrf.mxu1  ;;  %v10470_v13 = vand.u32 4294901760, %v3899_v32 }
 0x277   : > { %v7673_v18 = vpop.f32.mrf.mxu0 }
 0x278   : > { %v7707_v57 = vpop.f32.mrf.mxu1  ;;  %12701 = vst [vmem:[#allocation43_spill] sm:$0xff] %v10470_v13  ;;  %v10483_v24 = vsub.f32 %v3899_v32, %v10470_v13  ;;  %8136 = vmatprep.subr.mxu0 %v10470_v13 }
 0x279   : > { %v10413_v44 = vadd.f32 %v7707_v57, %v7667_v48  ;;  %v10415_v52 = vpop.f32.mrf.mxu0  ;;  %v10465_v48 = vand.u32 4294901760, %v10445_v39  ;;  %8137 = vmatpush3.msra.mxu0 %v10470_v13 }
 0x27a   : > { %v10424_v30 = vpop.f32.mrf.mxu1  ;;  %12703 = vst [vmem:[#allocation45_spill] sm:$0xff] %v10483_v24  ;;  %8138 = vmatprep.subr.mxu0 %v10490_v21 }
 0x27b   : > { %v7676_v55 = vpop.f32.mrf.mxu0  ;;  %12699 = vst [vmem:[#allocation41_spill] sm:$0xff] %v10465_v48  ;;  %v4202_v63 = vsub.f32 %v10445_v39, %v10465_v48  ;;  %8139 = vmatpush3.msra.mxu0 %v10490_v21 }
 0x27c   : > { %v7710_v35 = vpop.f32.mrf.mxu1  ;;  %8140 = vmatprep.subr.mxu0 %v10503_v2 }
 0x27d   : > { %v10450_v43 = vadd.f32 %v7710_v35, %v7670_v56  ;;  %v10452_v45 = vpop.f32.mrf.mxu0  ;;  %v4189_v56 = vand.u32 4294901760, %v4188_v50  ;;  %v4203_v19 = vand.u32 4294901760, %v4202_v63  ;;  %v10507_v35 = vsub.f32 %v3898_v6, %v10490_v21  ;;  %8141 = vmatpush3.msra.mxu0 %v10503_v2 }
 0x27e   : > { %v10460_v34 = vpop.f32.mrf.mxu1  ;;  %v10518_v63 = vand.u32 4294901760, %v3896_v25 }
 0x27f   : > { %v7679_v33 = vpop.f32.mrf.mxu0  ;;  %8184 = vmatprep.subr.mxu1 %v4189_v56  ;;  %12707 = vst [vmem:[#allocation49_spill] sm:$0xff] %v10507_v35  ;;  %v10525_v48 = vand.u32 4294901760, %v10507_v35 }
 0x280   : > { %v7713_v26 = vpop.f32.mrf.mxu1  ;;  %8185 = vmatpush3.msra.mxu1 %v4189_v56  ;;  %12709 = vst [vmem:[#allocation51_spill] sm:$0xff] %v10518_v63  ;;  %8142 = vmatprep.subr.mxu0 %v10518_v63 }
 0x281   : > { %v10486_v61 = vadd.f32 %v7713_v26, %v7673_v18  ;;  %v10488_v57 = vpop.f32.mrf.mxu0  ;;  %v10501_v18 = vand.u32 4294901760, %v10483_v24  ;;  %8186 = vmatprep.subr.mxu1 %v4196_v11  ;;  %v10516_v26 = vsub.f32 %v3897_v38, %v10503_v2  ;;  %12710 = vst [vmem:[#allocation52_spill] sm:$0xff] %v10525_v48  ;;  %8143 = vmatpush3.msra.mxu0 %v10518_v63 }
 0x282   : > { %v10496_v9 = vpop.f32.mrf.mxu1  ;;  %8187 = vmatpush3.msra.mxu1 %v4196_v11  ;;  %v3895_v11 = vld [vmem:[%s12383_s8 + $0x18] sm:$0xff] }
 0x283   : > { %12705 = vst [vmem:[#allocation47_spill] sm:$0xff] %v10501_v18  ;;  %v4216_v56 = vsub.f32 %v10483_v24, %v10501_v18  ;;  %12708 = vst [vmem:[#allocation50_spill] sm:$0xff] %v10516_v26  ;;  %8188 = vmatprep.subr.mxu1 %v4203_v19 }
 0x284   : > { %v7716_v50 = vpop.f32.mrf.mxu1  ;;  %v7738_v32 = vpop.f32.mrf.mxu0  ;;  %8189 = vmatpush3.msra.mxu1 %v4203_v19 }
 0x285   : > { %v10521_v6 = vadd.f32 %v7716_v50, %v7676_v55  ;;  %v1967_v51 = vadd.f32 %v7738_v32, %v10327_v3  ;;  %v4217_v18 = vand.u32 4294901760, %v4216_v56  ;;  %v10536_v55 = vand.u32 4294901760, %v10516_v26  ;;  %8190 = vmatprep.subr.mxu1 %v4210_v10 }
 0x286   : > { %v10531_v38 = vpop.f32.mrf.mxu1  ;;  %v10533_v1 = vpop.f32.mrf.mxu0  ;;  %v10539_v3 = vsub.f32 %v3896_v25, %v10518_v63  ;;  %v10541_v50 = vand.u32 4294901760, %v3895_v11  ;;  %v4223_v32 = vsub.f32 %v10507_v35, %v10525_v48  ;;  %8191 = vmatpush3.msra.mxu1 %v4210_v10 }
 0x287   : > { %12711 = vst [vmem:[#allocation53_spill] sm:$0xff] %v10536_v55  ;;  %v4230_v19 = vsub.f32 %v10516_v26, %v10536_v55  ;;  %8192 = vmatprep.subr.mxu1 %v4217_v18 }
 0x288   : > { %12712 = vst [vmem:[#allocation54_spill] sm:$0xff] %v10539_v3  ;;  %12713 = vst [vmem:[#allocation55_spill] sm:$0xff] %v10541_v50  ;;  %v7719_v29 = vpop.f32.mrf.mxu1  ;;  %v7741_v36 = vpop.f32.mrf.mxu0  ;;  %v10550_v56 = vand.u32 4294901760, %v10539_v3  ;;  %v10553_v25 = vsub.f32 %v3895_v11, %v10541_v50  ;;  %v4224_v10 = vand.u32 4294901760, %v4223_v32  ;;  %8144 = vmatprep.subr.mxu0 %v10541_v50  ;;  %8193 = vmatpush3.msra.mxu1 %v4217_v18 }
 0x289   : > { %v10559_v48 = vadd.f32 %v7719_v29, %v7679_v33  ;;  %v1981_v8 = vadd.f32 %v7741_v36, %v10347_v54  ;;  %v4231_v15 = vand.u32 4294901760, %v4230_v19  ;;  %v3893_v54 = vld [vmem:[%s12383_s8 + $0x8] sm:$0xff]  ;;  %8145 = vmatpush3.msra.mxu0 %v10541_v50  ;;  %v10579_v36 = vsub.f32 %v3894_v28, %v10562_v62 }
 0x28a   : > { %12714 = vst [vmem:[#allocation56_spill] sm:$0xff] %v10550_v56  ;;  %12715 = vst [vmem:[#allocation57_spill] sm:$0xff] %v10553_v25  ;;  %v10565_v55 = vpop.f32.mrf.mxu1  ;;  %v10567_v11 = vpop.f32.mrf.mxu0  ;;  %v4237_v26 = vsub.f32 %v10539_v3, %v10550_v56  ;;  %v10572_v29 = vand.u32 4294901760, %v10553_v25  ;;  %8194 = vmatprep.subr.mxu1 %v4224_v10  ;;  %v10581_v33 = vand.u32 4294901760, %v3893_v54  ;;  %8146 = vmatprep.subr.mxu0 %v10562_v62  ;;  %v3892_v3 = vld [vmem:[%s12383_s8] sm:$0xff] }
 0x28b   : > { %12718 = vst [vmem:[#allocation60_spill] sm:$0xff] %v10579_v36  ;;  %8195 = vmatpush3.msra.mxu1 %v4224_v10  ;;  %8147 = vmatpush3.msra.mxu0 %v10562_v62  ;;  %v10594_v50 = vand.u32 4294901760, %v10579_v36  ;;  %v10604_v62 = vand.u32 4294901760, %v3892_v3 }
 0x28c   : > { %12717 = vst [vmem:[#allocation59_spill] sm:$0xff] %v10572_v29  ;;  %12719 = vst [vmem:[#allocation61_spill] sm:$0xff] %v10581_v33  ;;  %v7744_v18 = vpop.f32.mrf.mxu0  ;;  %v7778_v32 = vpop.f32.mrf.mxu1  ;;  %v4238_v19 = vand.u32 4294901760, %v4237_v26  ;;  %v4244_v56 = vsub.f32 %v10553_v25, %v10572_v29  ;;  %8196 = vmatprep.subr.mxu1 %v4231_v15  ;;  %v10597_v10 = vsub.f32 %v3893_v54, %v10581_v33  ;;  %8148 = vmatprep.subr.mxu0 %v10581_v33 }
 0x28d   : > { %v1995_v28 = vadd.f32 %v7744_v18, %v10381_v20  ;;  %v10591_v35 = vadd.f32 %v7778_v32, %v1967_v51  ;;  %12720 = vst [vmem:[#allocation62_spill] sm:$0xff] %v10594_v50  ;;  %8197 = vmatpush3.msra.mxu1 %v4231_v15  ;;  %12722 = vst [vmem:[#allocation64_spill] sm:$0xff] %v10604_v62  ;;  %8149 = vmatpush3.msra.mxu0 %v10581_v33 }
 0x28e   : > { %12721 = vst [vmem:[#allocation63_spill] sm:$0xff] %v10597_v10  ;;  %v10600_v26 = vpop.f32.mrf.mxu0  ;;  %v10602_v29 = vpop.f32.mrf.mxu1  ;;  %v4245_v25 = vand.u32 4294901760, %v4244_v56  ;;  %8198 = vmatprep.subr.mxu1 %v4238_v19  ;;  %v4251_v20 = vsub.f32 %v10579_v36, %v10594_v50  ;;  %v10610_v51 = vand.u32 4294901760, %v10597_v10  ;;  %v10613_v32 = vsub.f32 %v3892_v3, %v10604_v62  ;;  %8150 = vmatprep.subr.mxu0 %v10604_v62 }
 0x28f   : > { %8199 = vmatpush3.msra.mxu1 %v4238_v19  ;;  %8151 = vmatpush3.msra.mxu0 %v10604_v62 }
 0x290   : > { %12723 = vst [vmem:[#allocation65_spill] sm:$0xff] %v10610_v51  ;;  %v7747_v54 = vpop.f32.mrf.mxu0  ;;  %v7781_v18 = vpop.f32.mrf.mxu1  ;;  %12724 = vst [vmem:[#allocation66_spill] sm:$0xff] %v10613_v32  ;;  %8200 = vmatprep.subr.mxu1 %v4245_v25  ;;  %v4252_v33 = vand.u32 4294901760, %v4251_v20  ;;  %v4258_v24 = vsub.f32 %v10597_v10, %v10610_v51  ;;  %v10625_v3 = vand.u32 4294901760, %v10613_v32  ;;  %8232 = vmatprep.subr.mxu0 %v10342_v22 }
 0x291   : > { %v2009_v15 = vadd.f32 %v7747_v54, %v10413_v44  ;;  %v2170_v56 = vadd.f32 %v7781_v18, %v1981_v8  ;;  %8201 = vmatpush3.msra.mxu1 %v4245_v25 }
 0x292   : > { %v10620_v50 = vpop.f32.mrf.mxu0  ;;  %v10622_v36 = vpop.f32.mrf.mxu1  ;;  %12725 = vst [vmem:[#allocation67_spill] sm:$0xff] %v10625_v3  ;;  %8202 = vmatprep.subr.mxu1 %v4252_v33  ;;  %v4259_v44 = vand.u32 4294901760, %v4258_v24  ;;  %v4265_v20 = vsub.f32 %v10613_v32, %v10625_v3 }
 0x293   : > { %8203 = vmatpush3.msra.mxu1 %v4252_v33 }
 0x294   : > { %v7750_v8 = vpop.f32.mrf.mxu0  ;;  %v7784_v19 = vpop.f32.mrf.mxu1  ;;  %8204 = vmatprep.subr.mxu1 %v4259_v44  ;;  %v4266_v10 = vand.u32 4294901760, %v4265_v20 }
 0x295   : > { %v2023_v54 = vadd.f32 %v7750_v8, %v10450_v43  ;;  %v2186_v18 = vadd.f32 %v7784_v19, %v1995_v28  ;;  %8205 = vmatpush3.msra.mxu1 %v4259_v44 }
 0x296   : > { %v10631_v51 = vpop.f32.mrf.mxu0  ;;  %v10633_v25 = vpop.f32.mrf.mxu1  ;;  %8206 = vmatprep.subr.mxu1 %v4266_v10 }
 0x297   : > { %8207 = vmatpush3.msra.mxu1 %v4266_v10 }
 0x298   : > { %v7753_v62 = vpop.f32.mrf.mxu0  ;;  %v7787_v63 = vpop.f32.mrf.mxu1  ;;  %8288 = vmatprep.subr.mxu1 %v10336_v17 }
 0x299   : > { %v2037_v24 = vadd.f32 %v7753_v62, %v10486_v61  ;;  %v2202_v49 = vadd.f32 %v7787_v63, %v2009_v15 }
 0x29a   : > { %v10636_v33 = vpop.f32.mrf.mxu0  ;;  %v10638_v3 = vpop.f32.mrf.mxu1 }
 0x29c   : > { %v7756_v43 = vpop.f32.mrf.mxu0  ;;  %v7790_v28 = vpop.f32.mrf.mxu1 }
 0x29d   : > { %v2051_v8 = vadd.f32 %v7756_v43, %v10521_v6  ;;  %v2218_v19 = vadd.f32 %v7790_v28, %v2023_v54 }
 0x29e   : > { %v10642_v44 = vpop.f32.mrf.mxu0  ;;  %v10644_v20 = vpop.f32.mrf.mxu1 }
 0x2a0   : > { %v7759_v32 = vpop.f32.mrf.mxu0  ;;  %v7793_v2 = vpop.f32.mrf.mxu1 }
 0x2a1   : > { %v2065_v62 = vadd.f32 %v7759_v32, %v10559_v48  ;;  %v2234_v61 = vadd.f32 %v7793_v2, %v2037_v24 }
 0x2a2   : > { %v10647_v63 = vpop.f32.mrf.mxu0  ;;  %v10649_v10 = vpop.f32.mrf.mxu1 }
 0x2a4   : > { %v7796_v15 = vpop.f32.mrf.mxu1  ;;  %v7818_v39 = vpop.f32.mrf.mxu0 }
 0x2a5   : > { %v2250_v21 = vadd.f32 %v7796_v15, %v2051_v8  ;;  %v2367_v40 = vadd.f32 %v7818_v39, %v10591_v35 }
 0x2a6   : > { %v10652_v6 = vpop.f32.mrf.mxu1  ;;  %v10654_v54 = vpop.f32.mrf.mxu0 }
 0x2a8   : > { %v7799_v43 = vpop.f32.mrf.mxu1  ;;  %v7821_v28 = vpop.f32.mrf.mxu0 }
 0x2a9   : > { %v2266_v13 = vadd.f32 %v7799_v43, %v2065_v62  ;;  %v2379_v23 = vadd.f32 %v7821_v28, %v2170_v56 }
 0x2aa   : > { %v10656_v27 = vpop.f32.mrf.mxu1  ;;  %v10658_v48 = vpop.f32.mrf.mxu0 }
 0x2ac   : > { %v7824_v2 = vpop.f32.mrf.mxu0  ;;  %v7858_v32 = vpop.f32.mrf.mxu1 }
 0x2ad   : > { %v2391_v24 = vadd.f32 %v7824_v2, %v2186_v18  ;;  %v10660_v12 = vadd.f32 %v7858_v32, %v2367_v40 }
 0x2ae   : > { %v10662_v8 = vpop.f32.mrf.mxu0  ;;  %v10664_v39 = vpop.f32.mrf.mxu1 }
 0x2af   : > { %12726 = vst [vmem:[#allocation68_spill] sm:$0xff] %v10660_v12 }
 0x2b0   : > { %v7827_v35 = vpop.f32.mrf.mxu0  ;;  %v7861_v15 = vpop.f32.mrf.mxu1 }
 0x2b1   : > { %v2403_v7 = vadd.f32 %v7827_v35, %v2202_v49  ;;  %v10666_v16 = vadd.f32 %v7861_v15, %v2379_v23 }
 0x2b2   : > { %v10668_v62 = vpop.f32.mrf.mxu0  ;;  %v10670_v56 = vpop.f32.mrf.mxu1 }
 0x2b3   : > { %12727 = vst [vmem:[#allocation69_spill] sm:$0xff] %v10666_v16 }
 0x2b4   : > { %v7830_v43 = vpop.f32.mrf.mxu0  ;;  %v7864_v28 = vpop.f32.mrf.mxu1 }
 0x2b5   : > { %v2415_v0 = vadd.f32 %v7830_v43, %v2218_v19  ;;  %v10672_v60 = vadd.f32 %v7864_v28, %v2391_v24 }
 0x2b6   : > { %v10674_v40 = vpop.f32.mrf.mxu0  ;;  %v10676_v18 = vpop.f32.mrf.mxu1 }
 0x2b7   : > { %12728 = vst [vmem:[#allocation70_spill] sm:$0xff] %v10672_v60 }
 0x2b8   : > { %v7833_v2 = vpop.f32.mrf.mxu0  ;;  %v7867_v32 = vpop.f32.mrf.mxu1 }
 0x2b9   : > { %v2427_v22 = vadd.f32 %v7833_v2, %v2234_v61  ;;  %v10678_v59 = vadd.f32 %v7867_v32, %v2403_v7 }
 0x2ba   : > { %v10680_v23 = vpop.f32.mrf.mxu0  ;;  %v10682_v49 = vpop.f32.mrf.mxu1 }
 0x2bb   : > { %12729 = vst [vmem:[#allocation71_spill] sm:$0xff] %v10678_v59 }
 0x2bc   : > { %v7836_v35 = vpop.f32.mrf.mxu0  ;;  %v7870_v15 = vpop.f32.mrf.mxu1 }
 0x2bd   : > { %v2439_v47 = vadd.f32 %v7836_v35, %v2250_v21  ;;  %v2584_v37 = vadd.f32 %v7870_v15, %v2415_v0 }
 0x2be   : > { %v10684_v19 = vpop.f32.mrf.mxu0  ;;  %v10686_v24 = vpop.f32.mrf.mxu1 }
 0x2c0   : > { %v7839_v43 = vpop.f32.mrf.mxu0  ;;  %v7873_v28 = vpop.f32.mrf.mxu1 }
 0x2c1   : > { %v2451_v58 = vadd.f32 %v7839_v43, %v2266_v13  ;;  %v2596_v17 = vadd.f32 %v7873_v28, %v2427_v22 }
 0x2c2   : > { %v10688_v60 = vpop.f32.mrf.mxu0  ;;  %v10690_v7 = vpop.f32.mrf.mxu1 }
 0x2c3   : > { %12730 = vst [vmem:[#allocation72_spill] sm:$0xff] %v10690_v7 }
 0x2c4   : > { %v7876_v61 = vpop.f32.mrf.mxu1  ;;  %v10692_v2 = vpop.f32.mrf.mxu0 }
 0x2c5   : > { %12731 = vst [vmem:[#allocation73_spill] sm:$0xff] %v10692_v2  ;;  %v2608_v32 = vadd.f32 %v7876_v61, %v2439_v47 }
 0x2c6   : > { %v10694_v59 = vpop.f32.mrf.mxu1  ;;  %v10696_v21 = vpop.f32.mrf.mxu0 }
 0x2c7   : > { %12732 = vst [vmem:[#allocation74_spill] sm:$0xff] %v10694_v59  ;;  %12733 = vst [vmem:[#allocation75_spill] sm:$0xff] %v10696_v21 }
 0x2c8   : > { %v7879_v0 = vpop.f32.mrf.mxu1  ;;  %v10698_v35 = vpop.f32.mrf.mxu0 }
 0x2c9   : > { %12734 = vst [vmem:[#allocation76_spill] sm:$0xff] %v10698_v35  ;;  %v2620_v15 = vadd.f32 %v7879_v0, %v2451_v58 }
 0x2ca   : > { %v10700_v16 = vpop.f32.mrf.mxu1  ;;  %v10702_v13 = vpop.f32.mrf.mxu0 }
 0x2cb   : > { %12735 = vst [vmem:[#allocation77_spill] sm:$0xff] %v10700_v16  ;;  %12736 = vst [vmem:[#allocation78_spill] sm:$0xff] %v10702_v13 }
 0x2cc   : > { %v10704_v22 = vpop.f32.mrf.mxu0  ;;  %v10706_v43 = vpop.f32.mrf.mxu1 }
 0x2cd   : > { %12737 = vst [vmem:[#allocation79_spill] sm:$0xff] %v10704_v22  ;;  %12738 = vst [vmem:[#allocation80_spill] sm:$0xff] %v10706_v43 }
 0x2ce   : > { %v10708_v28 = vpop.f32.mrf.mxu0  ;;  %v10710_v7 = vpop.f32.mrf.mxu1 }
 0x2cf   : > { %12739 = vst [vmem:[#allocation81_spill] sm:$0xff] %v10708_v28  ;;  %12740 = vst [vmem:[#allocation82_spill] sm:$0xff] %v10710_v7 }
 0x2d0   : > { %v10712_v47 = vpop.f32.mrf.mxu0  ;;  %v10714_v61 = vpop.f32.mrf.mxu1 }
 0x2d1   : > { %12741 = vst [vmem:[#allocation83_spill] sm:$0xff] %v10712_v47  ;;  %12742 = vst [vmem:[#allocation84_spill] sm:$0xff] %v10714_v61 }
 0x2d2   : > { %v10716_v21 = vpop.f32.mrf.mxu0  ;;  %v10718_v35 = vpop.f32.mrf.mxu1 }
 0x2d3   : > { %12743 = vst [vmem:[#allocation85_spill] sm:$0xff] %v10716_v21  ;;  %12744 = vst [vmem:[#allocation86_spill] sm:$0xff] %v10718_v35 }
 0x2d4   : > { %v7910_v58 = vpop.f32.mrf.mxu0  ;;  %v10720_v0 = vpop.f32.mrf.mxu1 }
 0x2d5   : > { %12745 = vst [vmem:[#allocation87_spill] sm:$0xff] %v10720_v0  ;;  %v2841_v13 = vadd.f32 %v7910_v58, %v2584_v37 }
 0x2d6   : > { %v10722_v16 = vpop.f32.mrf.mxu0  ;;  %v10724_v22 = vpop.f32.mrf.mxu1 }
 0x2d7   : > { %12746 = vst [vmem:[#allocation88_spill] sm:$0xff] %v10722_v16  ;;  %12747 = vst [vmem:[#allocation89_spill] sm:$0xff] %v10724_v22 }
 0x2d8   : > { %v7913_v43 = vpop.f32.mrf.mxu0  ;;  %v10726_v28 = vpop.f32.mrf.mxu1 }
 0x2d9   : > { %12748 = vst [vmem:[#allocation90_spill] sm:$0xff] %v10726_v28  ;;  %v2861_v7 = vadd.f32 %v7913_v43, %v2596_v17 }
 0x2da   : > { %v10728_v59 = vpop.f32.mrf.mxu0  ;;  %v10730_v47 = vpop.f32.mrf.mxu1 }
 0x2db   : > { %12749 = vst [vmem:[#allocation91_spill] sm:$0xff] %v10728_v59  ;;  %12750 = vst [vmem:[#allocation92_spill] sm:$0xff] %v10730_v47 }
 0x2dc   : > { %v7916_v61 = vpop.f32.mrf.mxu0  ;;  %v7950_v21 = vpop.f32.mrf.mxu1 }
 0x2dd   : > { %v2881_v2 = vadd.f32 %v7916_v61, %v2608_v32  ;;  %v10732_v35 = vadd.f32 %v7950_v21, %v2841_v13 }
 0x2de   : > { %v10734_v12 = vpop.f32.mrf.mxu0  ;;  %v10736_v37 = vpop.f32.mrf.mxu1 }
 0x2df   : > { %12751 = vst [vmem:[#allocation93_spill] sm:$0xff] %v10732_v35 }
 0x2e0   : > { %v7919_v58 = vpop.f32.mrf.mxu0  ;;  %v7953_v16 = vpop.f32.mrf.mxu1 }
 0x2e1   : > { %v2901_v22 = vadd.f32 %v7919_v58, %v2620_v15  ;;  %v10738_v0 = vadd.f32 %v7953_v16, %v2861_v7 }
 0x2e2   : > { %v10740_v28 = vpop.f32.mrf.mxu0  ;;  %v10742_v17 = vpop.f32.mrf.mxu1 }
 0x2e3   : > { %12752 = vst [vmem:[#allocation94_spill] sm:$0xff] %v10738_v0 }
 0x2e4   : > { %v7956_v43 = vpop.f32.mrf.mxu1  ;;  %v10744_v47 = vpop.f32.mrf.mxu0 }
 0x2e5   : > { %v10746_v59 = vadd.f32 %v7956_v43, %v2881_v2 }
 0x2e6   : > { %v10748_v32 = vpop.f32.mrf.mxu1  ;;  %v10750_v21 = vpop.f32.mrf.mxu0 }
 0x2e7   : > { %12753 = vst [vmem:[#allocation95_spill] sm:$0xff] %v10746_v59  ;;  %12754 = vst [vmem:[#allocation96_spill] sm:$0xff] %v10748_v32 }
 0x2e8   : > { %v7959_v13 = vpop.f32.mrf.mxu1  ;;  %v10752_v61 = vpop.f32.mrf.mxu0 }
 0x2e9   : > { %v10754_v35 = vadd.f32 %v7959_v13, %v2901_v22 }
 0x2ea   : > { %v10756_v16 = vpop.f32.mrf.mxu1  ;;  %v10758_v7 = vpop.f32.mrf.mxu0 }
 0x2eb   : > { %12755 = vst [vmem:[#allocation97_spill] sm:$0xff] %v10754_v35  ;;  %12756 = vst [vmem:[#allocation98_spill] sm:$0xff] %v10756_v16 }
 0x2ec   : > { %12757 = vst [vmem:[#allocation99_spill] sm:$0xff] %v10758_v7  ;;  %v10760_v15 = vpop.f32.mrf.mxu0  ;;  %v10762_v58 = vpop.f32.mrf.mxu1 }
 0x2ed   : > { %12758 = vst [vmem:[#allocation100_spill] sm:$0xff] %v10760_v15 }
 0x2ee   : > { %v10764_v0 = vpop.f32.mrf.mxu0  ;;  %v10766_v2 = vpop.f32.mrf.mxu1 }
 0x2ef   : > { %12759 = vst [vmem:[#allocation101_spill] sm:$0xff] %v10764_v0 }
 0x2f0   : > { %v10768_v43 = vpop.f32.mrf.mxu0  ;;  %v10770_v59 = vpop.f32.mrf.mxu1 }
 0x2f1   : > { %12760 = vst [vmem:[#allocation102_spill] sm:$0xff] %v10768_v43  ;;  %v1782_v43 = vadd.f32 %v10334_v46, %v10321_v5  ;;  %v1842_v5 = vadd.f32 %v10496_v9, %v10415_v52 }
 0x2f2   : > { %v10772_v32 = vpop.f32.mrf.mxu0  ;;  %v10774_v22 = vpop.f32.mrf.mxu1 }
 0x2f3   : > { %12761 = vst [vmem:[#allocation103_spill] sm:$0xff] %v10772_v32  ;;  %12762 = vst [vmem:[#allocation104_spill] sm:$0xff] %v10774_v22  ;;  %v1794_v32 = vadd.f32 %v10355_v41, %v10325_v53  ;;  %v1806_v22 = vadd.f32 %v10389_v14, %v10329_v4  ;;  %v1854_v53 = vadd.f32 %v10531_v38, %v10452_v45 }
 0x2f4   : > { %v10776_v13 = vpop.f32.mrf.mxu0  ;;  %v10778_v35 = vpop.f32.mrf.mxu1  ;;  %v2030_v9 = vadd.f32 %v10636_v33, %v1842_v5 }
 0x2f5   : > { %12763 = vst [vmem:[#allocation105_spill] sm:$0xff] %v10776_v13  ;;  %12764 = vst [vmem:[#allocation106_spill] sm:$0xff] %v10778_v35  ;;  %v1974_v4 = vadd.f32 %v10567_v11, %v1794_v32  ;;  %v1988_v46 = vadd.f32 %v10600_v26, %v1806_v22  ;;  %v2044_v38 = vadd.f32 %v10642_v44, %v1854_v53  ;;  %v12774_v53 = vld [vmem:[#allocation76_spill] sm:$0xff] }
 0x2f6   : > { %v10780_v7 = vpop.f32.mrf.mxu0  ;;  %v10782_v15 = vpop.f32.mrf.mxu1 }
 0x2f7   : > { %12765 = vst [vmem:[#allocation107_spill] sm:$0xff] %v10782_v15  ;;  %v1818_v15 = vadd.f32 %v10424_v30, %v10349_v42  ;;  %v1866_v42 = vadd.f32 %v10565_v55, %v10488_v57  ;;  %v2178_v45 = vadd.f32 %v10633_v25, %v1988_v46  ;;  %v2242_v26 = vadd.f32 %v10652_v6, %v2044_v38  ;;  %v12780_v38 = vld [vmem:[#allocation81_spill] sm:$0xff] }
 0x2f8   : > { %v10784_v16 = vpop.f32.mrf.mxu0  ;;  %v10786_v0 = vpop.f32.mrf.mxu1 }
 0x2f9   : > { %12766 = vst [vmem:[#allocation108_spill] sm:$0xff] %v10784_v16  ;;  %12767 = vst [vmem:[#allocation109_spill] sm:$0xff] %v10786_v0  ;;  %v1830_v16 = vadd.f32 %v10460_v34, %v10383_v31  ;;  %v1960_v0 = vadd.f32 %v10533_v1, %v1782_v43  ;;  %v2002_v30 = vadd.f32 %v10620_v50, %v1818_v15 }
 0x2fa   : > { %v10794_v13 = vpop.f32.mrf.mxu0  ;;  %v10796_v35 = vpop.f32.mrf.mxu1  ;;  %v2162_v34 = vadd.f32 %v10622_v36, %v1974_v4  ;;  %v2058_v50 = vadd.f32 %v10647_v63, %v1866_v42  ;;  %v2226_v36 = vadd.f32 %v10649_v10, %v2030_v9  ;;  %v2385_v25 = vadd.f32 %v10662_v8, %v2178_v45  ;;  %v12779_v45 = vld [vmem:[#allocation80_spill] sm:$0xff] }
 0x2fb   : > { %v2146_v31 = vadd.f32 %v10602_v29, %v1960_v0  ;;  %v2016_v52 = vadd.f32 %v10631_v51, %v1830_v16  ;;  %v2194_v57 = vadd.f32 %v10638_v3, %v2002_v30  ;;  %v2433_v8 = vadd.f32 %v10684_v19, %v2242_v26  ;;  %v12768_v16 = vld [vmem:[#allocation68_spill] sm:$0xff]  ;;  %v12773_v19 = vld [vmem:[#allocation69_spill] sm:$0xff] }
 0x2fc   : > { %v10809_v41 = vpop.f32.mrf.mxu0  ;;  %v10811_v14 = vpop.f32.mrf.mxu1  ;;  %v2373_v51 = vadd.f32 %v10658_v48, %v2162_v34  ;;  %v2258_v3 = vadd.f32 %v10656_v27, %v2058_v50  ;;  %v2554_v6 = vadd.f32 %v10676_v18, %v2385_v25  ;;  %v2421_v48 = vadd.f32 %v10680_v23, %v2226_v36  ;;  %v12771_v18 = vld [vmem:[#allocation74_spill] sm:$0xff]  ;;  %v12772_v23 = vld [vmem:[#allocation75_spill] sm:$0xff] }
 0x2fd   : > { %v2210_v55 = vadd.f32 %v10644_v20, %v2016_v52  ;;  %v2361_v29 = vadd.f32 %v10654_v54, %v2146_v31  ;;  %v2397_v63 = vadd.f32 %v10668_v62, %v2194_v57  ;;  %v2602_v22 = vadd.f32 %v12771_v18, %v2433_v8  ;;  %v12778_v52 = vld [vmem:[#allocation79_spill] sm:$0xff] }
 0x2fe   : > { %v10822_v1 = vpop.f32.mrf.mxu0  ;;  %v10824_v11 = vpop.f32.mrf.mxu1  ;;  %v2542_v10 = vadd.f32 %v10670_v56, %v2373_v51  ;;  %v2445_v62 = vadd.f32 %v10688_v60, %v2258_v3  ;;  %v12770_v56 = vld [vmem:[#allocation72_spill] sm:$0xff]  ;;  %v2781_v4 = vadd.f32 %v12774_v53, %v12773_v19  ;;  %v12777_v60 = vld [vmem:[#allocation70_spill] sm:$0xff]  ;;  %v2791_v57 = vadd.f32 %v12780_v38, %v2554_v6  ;;  %v12783_v36 = vld [vmem:[#allocation83_spill] sm:$0xff] }
 0x2ff   : > { %v2530_v20 = vadd.f32 %v10664_v39, %v2361_v29  ;;  %v2409_v54 = vadd.f32 %v10674_v40, %v2210_v55  ;;  %v2566_v27 = vadd.f32 %v10682_v49, %v2397_v63  ;;  %v12769_v40 = vld [vmem:[#allocation73_spill] sm:$0xff]  ;;  %v2590_v43 = vadd.f32 %v12770_v56, %v2421_v48  ;;  %v12781_v55 = vld [vmem:[#allocation82_spill] sm:$0xff]  ;;  %v12782_v29 = vld [vmem:[#allocation71_spill] sm:$0xff] }
 0x300   : > { %v10834_v33 = vpop.f32.mrf.mxu0  ;;  %v10836_v44 = vpop.f32.mrf.mxu1  ;;  %v2761_v15 = vadd.f32 %v12769_v40, %v12768_v16  ;;  %v12775_v49 = vld [vmem:[#allocation77_spill] sm:$0xff]  ;;  %v2801_v34 = vadd.f32 %v12778_v52, %v12777_v60  ;;  %v2821_v26 = vadd.f32 %v12783_v36, %v12782_v29  ;;  %v12784_v51 = vld [vmem:[#allocation84_spill] sm:$0xff]  ;;  %v12787_v8 = vld [vmem:[#allocation87_spill] sm:$0xff] }
 0x301   : > { %v2578_v39 = vadd.f32 %v10686_v24, %v2409_v54  ;;  %v2751_v5 = vadd.f32 %v12772_v23, %v2530_v20  ;;  %v2614_v31 = vadd.f32 %v12775_v49, %v2445_v62  ;;  %v12776_v24 = vld [vmem:[#allocation78_spill] sm:$0xff]  ;;  %v3030_v25 = vadd.f32 %v12784_v51, %v2781_v4  ;;  %v12785_v63 = vld [vmem:[#allocation85_spill] sm:$0xff]  ;;  %v12788_v40 = vld [vmem:[#allocation88_spill] sm:$0xff] }
 0x302   : > { %v10846_v0 = vpop.f32.mrf.mxu0  ;;  %v10848_v32 = vpop.f32.mrf.mxu1  ;;  %v2771_v30 = vadd.f32 %v12776_v24, %v2542_v10  ;;  %v3018_v9 = vadd.f32 %v12779_v45, %v2761_v15  ;;  %v2811_v54 = vadd.f32 %v12785_v63, %v2566_v27  ;;  %v12786_v10 = vld [vmem:[#allocation86_spill] sm:$0xff]  ;;  %v3042_v62 = vadd.f32 %v12787_v8, %v2801_v34  ;;  %v12789_v15 = vld [vmem:[#allocation89_spill] sm:$0xff]  ;;  %v12790_v18 = vld [vmem:[#allocation91_spill] sm:$0xff] }
 0x303   : > { %v3012_v50 = vadd.f32 %v12781_v55, %v2751_v5  ;;  %v2831_v6 = vadd.f32 %v12788_v40, %v2578_v39  ;;  %v3036_v56 = vadd.f32 %v12789_v15, %v2791_v57  ;;  %v2851_v23 = vadd.f32 %v12790_v18, %v2590_v43  ;;  %v12791_v4 = vld [vmem:[#allocation90_spill] sm:$0xff]  ;;  %v12793_v43 = vld [vmem:[#allocation96_spill] sm:$0xff]  ;;  %v12802_v8 = vld [vmem:[#allocation105_spill] sm:$0xff] }
 0x304   : > { %v10860_v46 = vpop.f32.mrf.mxu1  ;;  %v8058_v42 = vpop.f32.mrf.mxu0  ;;  %v3024_v48 = vadd.f32 %v12786_v10, %v2771_v30  ;;  %v3197_v16 = vadd.f32 %v10744_v47, %v3018_v9  ;;  %v2871_v5 = vadd.f32 %v10734_v12, %v2602_v22  ;;  %v3054_v49 = vadd.f32 %v12791_v4, %v2821_v26  ;;  %v12792_v47 = vld [vmem:[#allocation92_spill] sm:$0xff]  ;;  %v12794_v9 = vld [vmem:[#allocation98_spill] sm:$0xff]  ;;  %v12804_v18 = vld [vmem:[#allocation107_spill] sm:$0xff] }
 0x305   : > { %v2891_v27 = vadd.f32 %v10740_v28, %v2614_v31  ;;  %v3190_v24 = vadd.f32 %v10750_v21, %v3012_v50  ;;  %v3048_v60 = vadd.f32 %v12792_v47, %v2811_v54  ;;  %v3060_v39 = vadd.f32 %v10736_v37, %v2831_v6  ;;  %v12795_v31 = vld [vmem:[#allocation99_spill] sm:$0xff]  ;;  %v12796_v57 = vld [vmem:[#allocation100_spill] sm:$0xff]  ;;  %v12797_v50 = vld [vmem:[#allocation101_spill] sm:$0xff] }
 0x306   : > { %v10872_v3 = vpop.f32.mrf.mxu1  ;;  %v3590_v20 = vpop.f32.mrf.mxu0  ;;  %v3384_v30 = vadd.f32 %v10762_v58, %v3197_v16  ;;  %v3072_v52 = vadd.f32 %v10742_v17, %v2851_v23  ;;  %v3084_v34 = vadd.f32 %v12793_v43, %v2871_v5  ;;  %v3211_v45 = vadd.f32 %v10752_v61, %v3030_v25  ;;  %v12798_v29 = vld [vmem:[#allocation102_spill] sm:$0xff]  ;;  %v10904_v51 = vld [vmem:[%s12382_s7] ss:$0 sm:$0xff]  ;;  %v12799_v25 = vld [vmem:[#allocation103_spill] sm:$0xff] }
 0x307   : > { %v3096_v38 = vadd.f32 %v12794_v9, %v2891_v27  ;;  %v3376_v28 = vadd.f32 %v10766_v2, %v3190_v24  ;;  %v3204_v58 = vadd.f32 %v12795_v31, %v3024_v48  ;;  %v3225_v55 = vadd.f32 %v12796_v57, %v3042_v62  ;;  %v12800_v54 = vld [vmem:[#allocation104_spill] sm:$0xff]  ;;  %v12801_v48 = vld [vmem:[#allocation93_spill] sm:$0xff]  ;;  %v12803_v16 = vld [vmem:[#allocation106_spill] sm:$0xff] }
 0x308   : > { %v10882_v19 = vpop.f32.mrf.mxu1  ;;  %v8061_v53 = vpop.f32.mrf.mxu0  ;;  %v3597_v21 = vadd.f32 %v8058_v42, %v3384_v30  ;;  %v3218_v37 = vadd.f32 %v12797_v50, %v3036_v56  ;;  %v3239_v17 = vadd.f32 %v12798_v29, %v3054_v49  ;;  %v3400_v61 = vadd.f32 %v10770_v59, %v3211_v45  ;;  %v12805_v49 = vld [vmem:[#allocation94_spill] sm:$0xff]  ;;  %v12807_v24 = vld [vmem:[#allocation109_spill] sm:$0xff] }
 0x309   : > { %v3232_v2 = vadd.f32 %v12799_v25, %v3048_v60  ;;  %v3591_v42 = vadd.f32 %v3590_v20, %v3376_v28  ;;  %v3392_v10 = vadd.f32 %v12800_v54, %v3204_v58  ;;  %v3253_v62 = vadd.f32 %v12802_v8, %v12801_v48  ;;  %v12806_v20 = vld [vmem:[#allocation108_spill] sm:$0xff] }
 0x30a   : > { %v10892_v12 = vpop.f32.mrf.mxu1  ;;  %v3602_v22 = vpop.f32.mrf.mxu0  ;;  %v3416_v40 = vadd.f32 %v12803_v16, %v3225_v55  ;;  %v3246_v6 = vadd.f32 %v10780_v7, %v3060_v39  ;;  %v3408_v23 = vadd.f32 %v12804_v18, %v3218_v37  ;;  %v3609_v5 = vadd.f32 %v8061_v53, %v3400_v61  ;;  %v12808_v7 = vld [vmem:[#allocation95_spill] sm:$0xff] }
 0x30b   : > { %v3267_v27 = vadd.f32 %v12806_v20, %v12805_v49  ;;  %v3432_v30 = vadd.f32 %v12807_v24, %v3239_v17  ;;  %v3260_v47 = vadd.f32 %v10794_v13, %v3072_v52  ;;  %v3424_v60 = vadd.f32 %v10796_v35, %v3232_v2  ;;  %v12809_v52 = vld [vmem:[#allocation97_spill] sm:$0xff]  ;;  %v12811_v49 = vld [vmem:[#allocation22_spill] sm:$0xff] }
 0x30c   : > { %v8064_v36 = vpop.f32.mrf.mxu0  ;;  %v8098_v26 = vpop.f32.mrf.mxu1  ;;  %v3281_v39 = vadd.f32 %v10809_v41, %v12808_v7  ;;  %v3274_v31 = vadd.f32 %v10822_v1, %v3084_v34  ;;  %v3440_v58 = vadd.f32 %v10824_v11, %v3246_v6  ;;  %v3603_v57 = vadd.f32 %v3602_v22, %v3392_v10 }
 0x30d   : > { %v3766_v63 = vadd.f32 %v8098_v26, %v3597_v21  ;;  %v3448_v21 = vadd.f32 %v10811_v14, %v3253_v62  ;;  %v3295_v35 = vadd.f32 %v10834_v33, %v12809_v52  ;;  %v3464_v29 = vadd.f32 %v10836_v44, %v3267_v27 }
 0x30e   : > { %v3614_v15 = vpop.f32.mrf.mxu0  ;;  %v3759_v56 = vpop.f32.mrf.mxu1  ;;  %v10933_v17 = vadd.f32 %v10846_v0, %v3096_v38  ;;  %v3621_v14 = vadd.f32 %v8064_v36, %v3416_v40  ;;  %v3456_v22 = vadd.f32 %v10848_v32, %v3260_v47  ;;  %v10942_v25 = vadd.f32 %v10860_v46, %v3281_v39  ;;  %v12812_v39 = vld [vmem:[#allocation25_spill] sm:$0xff] }
 0x30f   : > { %v3861_v59 = vadd.f32 %v10904_v51, %v3766_v63  ;;  %v3760_v4 = vadd.f32 %v3759_v56, %v3591_v42  ;;  %v3615_v2 = vadd.f32 %v3614_v15, %v3408_v23  ;;  %v10946_v42 = vadd.f32 %v10872_v3, %v3274_v31  ;;  %v12810_v56 = vld [vmem:[#allocation20_spill] sm:$0xff] }
 0x310   : > { %v8067_v43 = vpop.f32.mrf.mxu0  ;;  %v8101_v45 = vpop.f32.mrf.mxu1  ;;  %v10958_v3 = vadd.f32 %v10882_v19, %v3295_v35 }
 0x311   : > { %v3877_v9 = vmax.f32 %v3861_v59, 0.0  ;;  %v3860_v53 = vadd.f32 %v10904_v51, %v3760_v4  ;;  %v3778_v28 = vadd.f32 %v8101_v45, %v3609_v5  ;;  %v3633_v54 = vadd.f32 %v8067_v43, %v3432_v30 }
 0x312   : > { %v3626_v55 = vpop.f32.mrf.mxu0  ;;  %v3771_v13 = vpop.f32.mrf.mxu1 }
 0x313   : > { %v10928_v50 = vand.u32 4294901760, %v3877_v9  ;;  %v3876_v37 = vmax.f32 %v3860_v53, 0.0  ;;  %v3863_v41 = vadd.f32 %v10904_v51, %v3778_v28  ;;  %v3772_v1 = vadd.f32 %v3771_v13, %v3603_v57 }
 0x314   : > { %v8070_v34 = vpop.f32.mrf.mxu0  ;;  %v8104_v11 = vpop.f32.mrf.mxu1  ;;  %v3627_v40 = vadd.f32 %v3626_v55, %v3424_v60 }
 0x315   : > { %v10937_v26 = vsub.f32 %v3877_v9, %v10928_v50  ;;  %v10939_v33 = vand.u32 4294901760, %v3876_v37  ;;  %v3879_v61 = vmax.f32 %v3863_v41, 0.0  ;;  %v3862_v44 = vadd.f32 %v10904_v51, %v3772_v1 }
 0x316   : > { %v3790_v0 = vadd.f32 %v8104_v11, %v3621_v14  ;;  %v3638_v38 = vpop.f32.mrf.mxu0  ;;  %v3783_v36 = vpop.f32.mrf.mxu1  ;;  %v3645_v6 = vadd.f32 %v8070_v34, %v3448_v21  ;;  %v12813_v34 = vld [vmem:[#allocation28_spill] sm:$0xff] }
 0x317   : > { %v4008_v32 = vand.u32 4294901760, %v10937_v26  ;;  %v10950_v63 = vsub.f32 %v3876_v37, %v10939_v33  ;;  %8208 = vmatprep.mubr.f32.mxu1 %v10939_v33  ;;  %v10953_v10 = vand.u32 4294901760, %v3879_v61  ;;  %v3878_v46 = vmax.f32 %v3862_v44, 0.0 }
 0x318   : > { %v3865_v48 = vadd.f32 %v10904_v51, %v3790_v0  ;;  %v3784_v8 = vadd.f32 %v3783_v36, %v3615_v2  ;;  %v8073_v62 = vpop.f32.mrf.mxu0  ;;  %v8107_v16 = vpop.f32.mrf.mxu1  ;;  %8209 = vmatmul.mubr.f32.vlgmr.msra.gmra.mxu1 %v10928_v50  ;;  %v3639_v27 = vadd.f32 %v3638_v38, %v3440_v58 }
 0x319   : > { %v3802_v15 = vadd.f32 %v8107_v16, %v3633_v54  ;;  %8289 = vmatpush3.msra.mxu1 %v12810_v56  ;;  %v10961_v18 = vand.u32 4294901760, %v3878_v46  ;;  %v3998_v20 = vand.u32 4294901760, %v10950_v63  ;;  %v4009_v19 = vsub.f32 %v10937_v26, %v4008_v32 }
 0x31a   : > { %v3881_v23 = vmax.f32 %v3865_v48, 0.0  ;;  %v3864_v5 = vadd.f32 %v10904_v51, %v3784_v8  ;;  %v3650_v59 = vpop.f32.mrf.mxu0  ;;  %v3795_v4 = vpop.f32.mrf.mxu1  ;;  %8290 = vmatprep.subr.mxu1 %v12811_v49  ;;  %v10972_v47 = vsub.f32 %v3879_v61, %v10953_v10  ;;  %v3657_v57 = vadd.f32 %v8073_v62, %v3464_v29  ;;  %v12814_v48 = vld [vmem:[#allocation31_spill] sm:$0xff] }
 0x31b   : > { %v3867_v24 = vadd.f32 %v10904_v51, %v3802_v15  ;;  %v3796_v30 = vadd.f32 %v3795_v4, %v3627_v40  ;;  %8291 = vmatpush3.msra.mxu1 %v12811_v49  ;;  %v10975_v60 = vsub.f32 %v3878_v46, %v10961_v18  ;;  %8211 = vmatprep.mubr.f32.mxu1 %v10961_v18  ;;  %v4010_v35 = vand.u32 4294901760, %v4009_v19 }
 0x31c   : > { %v3880_v43 = vmax.f32 %v3864_v5, 0.0  ;;  %v8076_v45 = vpop.f32.mrf.mxu0  ;;  %v8110_v7 = vpop.f32.mrf.mxu1  ;;  %8292 = vmatprep.subr.mxu1 %v12812_v39  ;;  %v3999_v9 = vsub.f32 %v10950_v63, %v3998_v20  ;;  %v10982_v53 = vand.u32 4294901760, %v3881_v23  ;;  %8212 = vmatmul.mubr.f32.gmra.mxu1 %v10953_v10  ;;  %v3651_v37 = vadd.f32 %v3650_v59, %v3456_v22 }
 0x31d   : > { %v3883_v28 = vmax.f32 %v3867_v24, 0.0  ;;  %v3866_v21 = vadd.f32 %v10904_v51, %v3796_v30  ;;  %v3814_v31 = vadd.f32 %v8110_v7, %v3645_v6  ;;  %8293 = vmatpush3.msra.mxu1 %v12812_v39  ;;  %v4018_v52 = vand.u32 4294901760, %v10975_v60  ;;  %v12817_v24 = vld [vmem:[#allocation33_spill] sm:$0xff] }
 0x31e   : > { %v10986_v58 = vand.u32 4294901760, %v3880_v43  ;;  %v3807_v55 = vpop.f32.mrf.mxu1  ;;  %v4000_v13 = vand.u32 4294901760, %v3999_v9  ;;  %v3662_v1 = vpop.f32.mrf.mxu0  ;;  %8294 = vmatprep.subr.mxu1 %v12813_v34  ;;  %v4028_v22 = vand.u32 4294901760, %v10972_v47  ;;  %v11003_v44 = vsub.f32 %v3881_v23, %v10982_v53  ;;  %v12815_v23 = vld [vmem:[#allocation21_spill] sm:$0xff] }
 0x31f   : > { %v3882_v41 = vmax.f32 %v3866_v21, 0.0  ;;  %v10991_v14 = vadd.f32 %v10904_v51, %v3814_v31  ;;  %v3808_v61 = vadd.f32 %v3807_v55, %v3639_v27  ;;  %v4019_v2 = vsub.f32 %v10975_v60, %v4018_v52  ;;  %8295 = vmatpush3.msra.mxu1 %v12813_v34  ;;  %v12816_v27 = vld [vmem:[#allocation24_spill] sm:$0xff] }
 0x320   : > { %v10995_v11 = vsub.f32 %v3880_v43, %v10986_v58  ;;  %8152 = vmatprep.mubr.f32.mxu0 %v4000_v13  ;;  %8214 = vmatprep.mubr.f32.mxu1 %v10986_v58  ;;  %v8113_v29 = vpop.f32.mrf.mxu1  ;;  %v11005_v0 = vand.u32 4294901760, %v3883_v28  ;;  %v4029_v16 = vsub.f32 %v10972_v47, %v4028_v22  ;;  %v3669_v6 = vadd.f32 %v8076_v45, %v10942_v25  ;;  %v8079_v15 = vpop.f32.mrf.mxu0 }
 0x321   : > { %v11007_v38 = vand.u32 4294901760, %v3882_v41  ;;  %v3885_v36 = vmax.f32 %v10991_v14, 0.0  ;;  %8153 = vmatmul.mubr.f32.vlgmr.msra.gmra.mxu0 %v4010_v35  ;;  %v3868_v54 = vadd.f32 %v10904_v51, %v3808_v61  ;;  %v3826_v46 = vadd.f32 %v8113_v29, %v3657_v57  ;;  %8215 = vmatmul.mubr.f32.gmra.mxu1 %v10982_v53  ;;  %v12818_v29 = vld [vmem:[#allocation27_spill] sm:$0xff] }
 0x322   : > { %8296 = vmatprep.subr.mxu1 %v12814_v48  ;;  %v3819_v8 = vpop.f32.mrf.mxu1  ;;  %v4020_v62 = vand.u32 4294901760, %v4019_v2  ;;  %8233 = vmatpush3.msra.mxu0 %v12815_v23  ;;  %v3663_v59 = vadd.f32 %v3662_v1, %v10946_v42  ;;  %v4038_v43 = vand.u32 4294901760, %v10995_v11  ;;  %v11031_v25 = vsub.f32 %v3883_v28, %v11005_v0  ;;  %v3674_v55 = vpop.f32.mrf.mxu0  ;;  %v12819_v2 = vld [vmem:[#allocation36_spill] sm:$0xff] }
 0x323   : > { %v11018_v40 = vsub.f32 %v3882_v41, %v11007_v38  ;;  %8297 = vmatpush3.msra.mxu1 %v12814_v48  ;;  %v3820_v5 = vadd.f32 %v3819_v8, %v3651_v37  ;;  %v3884_v4 = vmax.f32 %v3868_v54, 0.0  ;;  %v11025_v19 = vadd.f32 %v10904_v51, %v3826_v46  ;;  %8234 = vmatprep.subr.mxu0 %v12816_v27  ;;  %v12821_v23 = vld [vmem:[#allocation40_spill] sm:$0xff] }
 0x324   : > { %8298 = vmatprep.subr.mxu1 %v12817_v24  ;;  %v8116_v30 = vpop.f32.mrf.mxu1  ;;  %8155 = vmatprep.mubr.f32.mxu0 %v4020_v62  ;;  %v4030_v42 = vand.u32 4294901760, %v4029_v16  ;;  %v4048_v7 = vand.u32 4294901760, %v11003_v44  ;;  %v11036_v9 = vand.u32 4294901760, %v3885_v36  ;;  %v4039_v28 = vsub.f32 %v10995_v11, %v4038_v43 }
 0x325   : > { %v3870_v45 = vadd.f32 %v10904_v51, %v3820_v5  ;;  %8217 = vmatprep.mubr.f32.mxu1 %v11007_v38  ;;  %v11038_v21 = vand.u32 4294901760, %v3884_v4  ;;  %8235 = vmatpush3.msra.mxu0 %v12816_v27  ;;  %v4058_v57 = vand.u32 4294901760, %v11018_v40  ;;  %v3838_v35 = vadd.f32 %v8116_v30, %v3669_v6  ;;  %v12820_v6 = vld [vmem:[#allocation30_spill] sm:$0xff] }
 0x326   : > { %8299 = vmatpush3.msra.mxu1 %v12817_v24  ;;  %v3831_v31 = vpop.f32.mrf.mxu1  ;;  %8156 = vmatmul.mubr.f32.gmra.mxu0 %v4030_v42  ;;  %v4049_v41 = vsub.f32 %v11003_v44, %v4048_v7  ;;  %v3488_v14 = vadd.f32 %v10892_v12, %v10933_v17  ;;  %v3887_v61 = vmax.f32 %v11025_v19, 0.0  ;;  %v4040_v54 = vand.u32 4294901760, %v4039_v28 }
 0x327   : > { %v3886_v13 = vmax.f32 %v3870_v45, 0.0  ;;  %8218 = vmatmul.mubr.f32.gmra.mxu1 %v11005_v0  ;;  %v3832_v37 = vadd.f32 %v3831_v31, %v3663_v59  ;;  %v11053_v1 = vsub.f32 %v3884_v4, %v11038_v21  ;;  %8236 = vmatprep.subr.mxu0 %v12818_v29  ;;  %v4059_v12 = vsub.f32 %v11018_v40, %v4058_v57 }
 0x328   : > { %8300 = vmatprep.subr.mxu1 %v12819_v2  ;;  %v8119_v46 = vpop.f32.mrf.mxu1  ;;  %8237 = vmatpush3.msra.mxu0 %v12818_v29  ;;  %v3681_v17 = vadd.f32 %v8079_v15, %v10958_v3  ;;  %v3675_v16 = vadd.f32 %v3674_v55, %v3488_v14  ;;  %v12527_v59 = vand.u32 4294901760, %v11031_v25  ;;  %v11071_v4 = vsub.f32 %v3885_v36, %v11036_v9  ;;  %v12822_v55 = vld [vmem:[#allocation34_spill] sm:$0xff] }
 0x329   : > { %v11058_v8 = vand.u32 4294901760, %v3886_v13  ;;  %8301 = vmatpush3.msra.mxu1 %v12819_v2  ;;  %v3872_v62 = vadd.f32 %v10904_v51, %v3832_v37  ;;  %8238 = vmatprep.subr.mxu0 %v12820_v6  ;;  %v3873_v19 = vadd.f32 %v10904_v51, %v3838_v35  ;;  %v4050_v30 = vand.u32 4294901760, %v4049_v41  ;;  %v12823_v35 = vld [vmem:[#allocation43_spill] sm:$0xff] }
 0x32a   : > { %8302 = vmatprep.subr.mxu1 %v12821_v23  ;;  %v3843_v5 = vpop.f32.mrf.mxu1  ;;  %8158 = vmatprep.mubr.f32.mxu0 %v4040_v54  ;;  %v11075_v45 = vand.u32 4294901760, %v3887_v61  ;;  %v12525_v15 = vand.u32 4294901760, %v11053_v1  ;;  %v3850_v36 = vadd.f32 %v8119_v46, %v3681_v17  ;;  %v4060_v31 = vand.u32 4294901760, %v4059_v12  ;;  %v12824_v46 = vld [vmem:[#allocation35_spill] sm:$0xff] }
 0x32b   : > { %v3888_v27 = vmax.f32 %v3872_v62, 0.0  ;;  %8220 = vmatprep.mubr.f32.mxu1 %v11038_v21  ;;  %8239 = vmatpush3.msra.mxu0 %v12820_v6  ;;  %v3844_v3 = vadd.f32 %v3843_v5, %v3675_v16  ;;  %v11081_v42 = vsub.f32 %v3886_v13, %v11058_v8  ;;  %v4069_v28 = vsub.f32 %v11031_v25, %v12527_v59  ;;  %v12825_v62 = vld [vmem:[#allocation46_spill] sm:$0xff] }
 0x32c   : > { %8303 = vmatpush3.msra.mxu1 %v12821_v23  ;;  %8159 = vmatmul.mubr.f32.gmra.mxu0 %v4050_v30  ;;  %v3889_v41 = vmax.f32 %v3873_v19, 0.0  ;;  %v4079_v13 = vsub.f32 %v11053_v1, %v12525_v15  ;;  %v12523_v29 = vand.u32 4294901760, %v11071_v4  ;;  %v11099_v54 = vsub.f32 %v3887_v61, %v11075_v45  ;;  %v12826_v30 = vld [vmem:[#allocation39_spill] sm:$0xff] }
 0x32d   : > { %8221 = vmatmul.mubr.f32.gmra.mxu1 %v11036_v9  ;;  %8240 = vmatprep.subr.mxu0 %v12822_v55  ;;  %v3874_v37 = vadd.f32 %v10904_v51, %v3844_v3  ;;  %v11090_v14 = vand.u32 4294901760, %v3888_v27  ;;  %v3875_v12 = vadd.f32 %v10904_v51, %v3850_v36  ;;  %v4070_v16 = vand.u32 4294901760, %v4069_v28  ;;  %v12827_v3 = vld [vmem:[#allocation48_spill] sm:$0xff] }
 0x32e   : > { %8304 = vmatprep.subr.mxu1 %v12823_v35  ;;  %8241 = vmatpush3.msra.mxu0 %v12822_v55  ;;  %v12521_v6 = vand.u32 4294901760, %v11081_v42  ;;  %v11108_v5 = vand.u32 4294901760, %v3889_v41  ;;  %v4080_v51 = vand.u32 4294901760, %v4079_v13  ;;  %v4089_v19 = vsub.f32 %v11071_v4, %v12523_v29  ;;  %v12828_v55 = vld [vmem:[#allocation42_spill] sm:$0xff] }
 0x32f   : > { %8305 = vmatpush3.msra.mxu1 %v12823_v35  ;;  %8242 = vmatprep.subr.mxu0 %v12824_v46  ;;  %v3890_v17 = vmax.f32 %v3874_v37, 0.0  ;;  %v11111_v61 = vsub.f32 %v3888_v27, %v11090_v14  ;;  %v3891_v36 = vmax.f32 %v3875_v12, 0.0  ;;  %v12522_v28 = vand.u32 4294901760, %v11099_v54  ;;  %v12829_v37 = vld [vmem:[#allocation51_spill] sm:$0xff] }
 0x330   : > { %8306 = vmatprep.subr.mxu1 %v12825_v62  ;;  %8161 = vmatprep.mubr.f32.mxu0 %v4060_v31  ;;  %v4099_v27 = vsub.f32 %v11081_v42, %v12521_v6  ;;  %v11130_v13 = vsub.f32 %v3889_v41, %v11108_v5  ;;  %v12831_v6 = vld [vmem:[#allocation55_spill] sm:$0xff] }
 0x331   : > { %8223 = vmatprep.mubr.f32.mxu1 %v11058_v8  ;;  %8243 = vmatpush3.msra.mxu0 %v12824_v46  ;;  %v11119_v31 = vand.u32 4294901760, %v3890_v17  ;;  %v4090_v46 = vand.u32 4294901760, %v4089_v19  ;;  %v12524_v12 = vand.u32 4294901760, %v11111_v61  ;;  %v12830_v19 = vld [vmem:[#allocation45_spill] sm:$0xff] }
 0x332   : > { %8307 = vmatpush3.msra.mxu1 %v12825_v62  ;;  %8162 = vmatmul.mubr.f32.gmra.mxu0 %v4070_v16  ;;  %v11136_v16 = vand.u32 4294901760, %v3891_v36  ;;  %v4100_v41 = vand.u32 4294901760, %v4099_v27  ;;  %v12833_v27 = vld [vmem:[#allocation58_spill] sm:$0xff] }
 0x333   : > { %8224 = vmatmul.mubr.f32.gmra.mxu1 %v11075_v45  ;;  %8244 = vmatprep.subr.mxu0 %v12826_v30 }
 0x334   : > { %8308 = vmatprep.subr.mxu1 %v12827_v3  ;;  %8245 = vmatpush3.msra.mxu0 %v12826_v30  ;;  %v11139_v30 = vsub.f32 %v3890_v17, %v11119_v31  ;;  %v4119_v17 = vsub.f32 %v11111_v61, %v12524_v12 }
 0x335   : > { %8309 = vmatpush3.msra.mxu1 %v12827_v3  ;;  %8246 = vmatprep.subr.mxu0 %v12828_v55 }
 0x336   : > { %8310 = vmatprep.subr.mxu1 %v12829_v37  ;;  %8164 = vmatprep.mubr.f32.mxu0 %v4080_v51  ;;  %v4109_v51 = vsub.f32 %v11099_v54, %v12522_v28  ;;  %v11156_v28 = vsub.f32 %v3891_v36, %v11136_v16  ;;  %v4120_v12 = vand.u32 4294901760, %v4119_v17  ;;  %v12834_v36 = vld [vmem:[#allocation50_spill] sm:$0xff] }
 0x337   : > { %8226 = vmatprep.mubr.f32.mxu1 %v11090_v14  ;;  %8247 = vmatpush3.msra.mxu0 %v12828_v55  ;;  %v12526_v55 = vand.u32 4294901760, %v11130_v13  ;;  %v12836_v17 = vld [vmem:[#allocation54_spill] sm:$0xff] }
 0x338   : > { %8311 = vmatpush3.msra.mxu1 %v12829_v37  ;;  %8165 = vmatmul.mubr.f32.gmra.mxu0 %v4090_v46  ;;  %v12832_v46 = vld [vmem:[#allocation49_spill] sm:$0xff]  ;;  %v4110_v29 = vand.u32 4294901760, %v4109_v51 }
 0x339   : > { %8227 = vmatmul.mubr.f32.gmra.mxu1 %v11108_v5  ;;  %8248 = vmatprep.subr.mxu0 %v12830_v19  ;;  %v4129_v15 = vsub.f32 %v11130_v13, %v12526_v55 }
 0x33a   : > { %8312 = vmatprep.subr.mxu1 %v12831_v6  ;;  %8249 = vmatpush3.msra.mxu0 %v12830_v19  ;;  %v12528_v19 = vand.u32 4294901760, %v11139_v30 }
 0x33b   : > { %8313 = vmatpush3.msra.mxu1 %v12831_v6  ;;  %8250 = vmatprep.subr.mxu0 %v12832_v46  ;;  %v4130_v55 = vand.u32 4294901760, %v4129_v15 }
 0x33c   : > { %8314 = vmatprep.subr.mxu1 %v12833_v27  ;;  %8167 = vmatprep.mubr.f32.mxu0 %v4100_v41  ;;  %v12835_v41 = vld [vmem:[#allocation61_spill] sm:$0xff]  ;;  %v4139_v51 = vsub.f32 %v11139_v30, %v12528_v19 }
 0x33d   : > { %8229 = vmatprep.mubr.f32.mxu1 %v11119_v31  ;;  %8251 = vmatpush3.msra.mxu0 %v12832_v46  ;;  %v12837_v46 = vld [vmem:[#allocation64_spill] sm:$0xff] }
 0x33e   : > { %8315 = vmatpush3.msra.mxu1 %v12833_v27  ;;  %8168 = vmatmul.mubr.f32.gmra.mxu0 %v4110_v29  ;;  %v4148_v29 = vand.u32 4294901760, %v11156_v28  ;;  %v4140_v59 = vand.u32 4294901760, %v4139_v51 }
 0x33f   : > { %8230 = vmatmul.mubr.f32.gmra.mxu1 %v11136_v16  ;;  %8252 = vmatprep.subr.mxu0 %v12834_v36 }
 0x340   : > { %8316 = vmatprep.subr.mxu1 %v12835_v41  ;;  %8253 = vmatpush3.msra.mxu0 %v12834_v36  ;;  %v12838_v36 = vld [vmem:[#allocation57_spill] sm:$0xff]  ;;  %v4149_v19 = vsub.f32 %v11156_v28, %v4148_v29 }
 0x341   : > { %8317 = vmatpush3.msra.mxu1 %v12835_v41  ;;  %8320 = vmatprep.mubr.f32.mxu1 %v3998_v20  ;;  %v12839_v20 = vld [vmem:[#allocation60_spill] sm:$0xff] }
 0x342   : > { %8254 = vmatprep.subr.mxu0 %v12836_v17  ;;  %8318 = vmatprep.subr.mxu1 %v12837_v46  ;;  %v4150_v15 = vand.u32 4294901760, %v4149_v19 }
 0x343   : > { %8170 = vmatprep.mubr.f32.mxu0 %v4120_v12  ;;  %8255 = vmatpush3.msra.mxu0 %v12836_v17 }
 0x344   : > { %8319 = vmatpush3.msra.mxu1 %v12837_v46  ;;  %8171 = vmatmul.mubr.f32.gmra.mxu0 %v4130_v55 }
 0x345   : > { %8256 = vmatprep.subr.mxu0 %v12838_v36  ;;  %8321 = vmatmul.mubr.f32.vlgmr.msra.gmra.mxu1 %v4008_v32  ;;  %v12840_v32 = vld [vmem:[#allocation63_spill] sm:$0xff] }
 0x346   : > { %8400 = vmatprep.subr.mxu1 %v12810_v56  ;;  %8257 = vmatpush3.msra.mxu0 %v12838_v36 }
 0x347   : > { %8323 = vmatprep.mubr.f32.mxu1 %v4018_v52  ;;  %8401 = vmatpush3.msra.mxu1 %v12810_v56  ;;  %v12841_v56 = vld [vmem:[#allocation66_spill] sm:$0xff]  ;;  %v12847_v52 = vld [vmem:[#allocation32_spill] sm:$0xff] }
 0x348   : > { %8258 = vmatprep.subr.mxu0 %v12839_v20  ;;  %8402 = vmatprep.subr.mxu1 %v12811_v49 }
 0x349   : > { %8173 = vmatprep.mubr.f32.mxu0 %v4140_v59  ;;  %8259 = vmatpush3.msra.mxu0 %v12839_v20  ;;  %v12863_v59 = vld [vmem:[#allocation62_spill] sm:$0xff] }
 0x34a   : > { %8403 = vmatpush3.msra.mxu1 %v12811_v49  ;;  %8174 = vmatmul.mubr.f32.gmra.mxu0 %v4150_v15  ;;  %v12842_v49 = vld [vmem:[#allocation23_spill] sm:$0xff] }
 0x34b   : > { %8260 = vmatprep.subr.mxu0 %v12840_v32  ;;  %8324 = vmatmul.mubr.f32.gmra.mxu1 %v4028_v22  ;;  %v12851_v22 = vld [vmem:[#allocation38_spill] sm:$0xff] }
 0x34c   : > { %8404 = vmatprep.subr.mxu1 %v12812_v39  ;;  %8261 = vmatpush3.msra.mxu0 %v12840_v32  ;;  %v5224_v32 = vld [vmem:[%s12385_s10 + $0x38] sm:$0xff] }
 0x34d   : > { %8264 = vmatprep.mubr.f32.mxu0 %v10950_v63  ;;  %8326 = vmatprep.mubr.f32.mxu1 %v4038_v43  ;;  %v12843_v63 = vld [vmem:[#allocation26_spill] sm:$0xff]  ;;  %v12856_v43 = vand.u32 4294901760, %v11130_v13 }
 0x34e   : > { %8405 = vmatpush3.msra.mxu1 %v12812_v39  ;;  %8262 = vmatprep.subr.mxu0 %v12841_v56  ;;  %v12846_v39 = vand.u32 4294901760, %v11053_v1 }
 0x34f   : > { %8406 = vmatprep.subr.mxu1 %v12813_v34  ;;  %8263 = vmatpush3.msra.mxu0 %v12841_v56 }
 0x350   : > { %8407 = vmatpush3.msra.mxu1 %v12813_v34  ;;  %8265 = vmatmul.mubr.f32.vlgmr.msra.gmra.mxu0 %v10937_v26  ;;  %v12844_v26 = vand.u32 4294901760, %v11031_v25  ;;  %v12849_v34 = vld [vmem:[#allocation37_spill] sm:$0xff] }
 0x351   : > { %8327 = vmatmul.mubr.f32.gmra.mxu1 %v4048_v7  ;;  %8344 = vmatprep.subr.mxu0 %v12842_v49  ;;  %v12858_v7 = vand.u32 4294901760, %v11139_v30 }
 0x352   : > { %8408 = vmatprep.subr.mxu1 %v12814_v48  ;;  %8267 = vmatprep.mubr.f32.mxu0 %v10975_v60  ;;  %v12845_v60 = vld [vmem:[#allocation29_spill] sm:$0xff] }
 0x353   : > { %8329 = vmatprep.mubr.f32.mxu1 %v4058_v57  ;;  %8345 = vmatpush3.msra.mxu0 %v12842_v49  ;;  %v12859_v57 = vld [vmem:[#allocation52_spill] sm:$0xff] }
 0x354   : > { %8409 = vmatpush3.msra.mxu1 %v12814_v48  ;;  %8346 = vmatprep.subr.mxu0 %v12843_v63  ;;  %v12853_v48 = vld [vmem:[#allocation41_spill] sm:$0xff] }
 0x355   : > { %8410 = vmatprep.subr.mxu1 %v12817_v24  ;;  %8347 = vmatpush3.msra.mxu0 %v12843_v63 }
 0x356   : > { %8411 = vmatpush3.msra.mxu1 %v12817_v24  ;;  %8268 = vmatmul.mubr.f32.gmra.mxu0 %v10972_v47  ;;  %v12848_v47 = vand.u32 4294901760, %v11071_v4  ;;  %v12855_v24 = vld [vmem:[#allocation44_spill] sm:$0xff] }
 0x357   : > { %8330 = vmatmul.mubr.f32.gmra.mxu1 %v12844_v26  ;;  %8348 = vmatprep.subr.mxu0 %v12845_v60  ;;  %v11446_v26 = vand.u32 4294901760, %v5224_v32 }
 0x358   : > { %8412 = vmatprep.subr.mxu1 %v12819_v2  ;;  %8270 = vmatprep.mubr.f32.mxu0 %v10995_v11  ;;  %v12850_v11 = vand.u32 4294901760, %v11081_v42 }
 0x359   : > { %8332 = vmatprep.mubr.f32.mxu1 %v12846_v39  ;;  %8349 = vmatpush3.msra.mxu0 %v12845_v60  ;;  %12887 = vst [vmem:[#allocation89_spill] sm:$0xff] %v11446_v26  ;;  %v5223_v39 = vld [vmem:[%s12385_s10 + $0x30] sm:$0xff] }
 0x35a   : > { %8413 = vmatpush3.msra.mxu1 %v12819_v2  ;;  %8350 = vmatprep.subr.mxu0 %v12847_v52  ;;  %v12861_v2 = vld [vmem:[#allocation56_spill] sm:$0xff] }
 0x35b   : > { %8414 = vmatprep.subr.mxu1 %v12821_v23  ;;  %8351 = vmatpush3.msra.mxu0 %v12847_v52 }
 0x35c   : > { %8415 = vmatpush3.msra.mxu1 %v12821_v23  ;;  %8271 = vmatmul.mubr.f32.gmra.mxu0 %v11003_v44  ;;  %v12852_v44 = vand.u32 4294901760, %v11099_v54  ;;  %v12862_v23 = vld [vmem:[#allocation59_spill] sm:$0xff] }
 0x35d   : > { %8333 = vmatmul.mubr.f32.gmra.mxu1 %v12848_v47  ;;  %8352 = vmatprep.subr.mxu0 %v12849_v34 }
 0x35e   : > { %8416 = vmatprep.subr.mxu1 %v12823_v35  ;;  %8273 = vmatprep.mubr.f32.mxu0 %v11018_v40  ;;  %v12854_v40 = vand.u32 4294901760, %v11111_v61 }
 0x35f   : > { %8335 = vmatprep.mubr.f32.mxu1 %v12850_v11  ;;  %8353 = vmatpush3.msra.mxu0 %v12849_v34  ;;  %v11459_v11 = vsub.f32 %v5224_v32, %v11446_v26 }
 0x360   : > { %8417 = vmatpush3.msra.mxu1 %v12823_v35  ;;  %8354 = vmatprep.subr.mxu0 %v12851_v22 }
 0x361   : > { %8418 = vmatprep.subr.mxu1 %v12825_v62  ;;  %8355 = vmatpush3.msra.mxu0 %v12851_v22  ;;  %12889 = vst [vmem:[#allocation90_spill] sm:$0xff] %v11459_v11  ;;  %v11462_v22 = vand.u32 4294901760, %v5223_v39 }
 0x362   : > { %8419 = vmatpush3.msra.mxu1 %v12825_v62  ;;  %8274 = vmatmul.mubr.f32.gmra.mxu0 %v11031_v25  ;;  %v12857_v25 = vld [vmem:[#allocation47_spill] sm:$0xff] }
 0x363   : > { %8336 = vmatmul.mubr.f32.gmra.mxu1 %v12852_v44  ;;  %8356 = vmatprep.subr.mxu0 %v12853_v48  ;;  %12890 = vst [vmem:[#allocation92_spill] sm:$0xff] %v11462_v22  ;;  %v5222_v44 = vld [vmem:[%s12385_s10 + $0x28] sm:$0xff] }
 0x364   : > { %8420 = vmatprep.subr.mxu1 %v12827_v3  ;;  %8276 = vmatprep.mubr.f32.mxu0 %v11053_v1  ;;  %v12860_v1 = vld [vmem:[#allocation53_spill] sm:$0xff] }
 0x365   : > { %8338 = vmatprep.mubr.f32.mxu1 %v12854_v40  ;;  %8357 = vmatpush3.msra.mxu0 %v12853_v48 }
 0x366   : > { %8421 = vmatpush3.msra.mxu1 %v12827_v3  ;;  %8358 = vmatprep.subr.mxu0 %v12855_v24 }
 0x367   : > { %8422 = vmatprep.subr.mxu1 %v12829_v37  ;;  %8359 = vmatpush3.msra.mxu0 %v12855_v24  ;;  %v11471_v24 = vand.u32 4294901760, %v11459_v11 }
 0x368   : > { %8423 = vmatpush3.msra.mxu1 %v12829_v37  ;;  %8277 = vmatmul.mubr.f32.gmra.mxu0 %v11071_v4  ;;  %v12864_v4 = vld [vmem:[#allocation65_spill] sm:$0xff] }
 0x369   : > { %8339 = vmatmul.mubr.f32.gmra.mxu1 %v12856_v43  ;;  %8360 = vmatprep.subr.mxu0 %v12857_v25  ;;  %12891 = vst [vmem:[#allocation96_spill] sm:$0xff] %v11471_v24  ;;  %v11473_v43 = vand.u32 4294901760, %v5222_v44 }
 0x36a   : > { %8424 = vmatprep.subr.mxu1 %v12831_v6  ;;  %8279 = vmatprep.mubr.f32.mxu0 %v11081_v42  ;;  %v12865_v42 = vld [vmem:[#allocation67_spill] sm:$0xff] }
 0x36b   : > { %8341 = vmatprep.mubr.f32.mxu1 %v12858_v7  ;;  %8361 = vmatpush3.msra.mxu0 %v12857_v25  ;;  %12892 = vst [vmem:[#allocation98_spill] sm:$0xff] %v11473_v43  ;;  %v11477_v25 = vsub.f32 %v5223_v39, %v11462_v22  ;;  %v5221_v7 = vld [vmem:[%s12385_s10 + $0x20] sm:$0xff] }
 0x36c   : > { %8425 = vmatpush3.msra.mxu1 %v12831_v6  ;;  %8362 = vmatprep.subr.mxu0 %v12859_v57 }
 0x36d   : > { %8426 = vmatprep.subr.mxu1 %v12833_v27  ;;  %8363 = vmatpush3.msra.mxu0 %v12859_v57  ;;  %12893 = vst [vmem:[#allocation99_spill] sm:$0xff] %v11477_v25 }
 0x36e   : > { %8427 = vmatpush3.msra.mxu1 %v12833_v27  ;;  %8280 = vmatmul.mubr.f32.gmra.mxu0 %v11099_v54  ;;  %v5228_v54 = vld [vmem:[%s12385_s10 + $0x58] sm:$0xff] }
 0x36f   : > { %8342 = vmatmul.mubr.f32.gmra.mxu1 %v4148_v29  ;;  %8364 = vmatprep.subr.mxu0 %v12860_v1  ;;  %v11388_v3 = vand.u32 4294901760, %v5228_v54  ;;  %v5225_v29 = vld [vmem:[%s12385_s10 + $0x40] sm:$0xff] }
 0x370   : > { %8428 = vmatprep.subr.mxu1 %v12835_v41  ;;  %8282 = vmatprep.mubr.f32.mxu0 %v11111_v61  ;;  %v11429_v20 = vand.u32 4294901760, %v5225_v29 }
 0x371   : > { %8365 = vmatpush3.msra.mxu0 %v12860_v1  ;;  %8429 = vmatpush3.msra.mxu1 %v12835_v41  ;;  %12875 = vst [vmem:[#allocation70_spill] sm:$0xff] %v11388_v3  ;;  %v5541_v1 = vsub.f32 %v11459_v11, %v11471_v24 }
 0x372   : > { %8432 = vmatprep.mubr.f32.mxu1 %v10939_v33  ;;  %8366 = vmatprep.subr.mxu0 %v12861_v2  ;;  %12884 = vst [vmem:[#allocation86_spill] sm:$0xff] %v11429_v20  ;;  %v11444_v63 = vsub.f32 %v5225_v29, %v11429_v20  ;;  %v5218_v29 = vld [vmem:[%s12385_s10 + $0x8] sm:$0xff] }
 0x373   : > { %8430 = vmatprep.subr.mxu1 %v12837_v46  ;;  %8367 = vmatpush3.msra.mxu0 %v12861_v2  ;;  %v11486_v2 = vsub.f32 %v5222_v44, %v11473_v43 }
 0x374   : > { %8431 = vmatpush3.msra.mxu1 %v12837_v46  ;;  %8283 = vmatmul.mubr.f32.gmra.mxu0 %v11130_v13  ;;  %12886 = vst [vmem:[#allocation88_spill] sm:$0xff] %v11444_v63  ;;  %v11456_v34 = vand.u32 4294901760, %v11444_v63 }
 0x375   : > { %8368 = vmatprep.subr.mxu0 %v12862_v23  ;;  %8433 = vmatmul.mubr.f32.vlgmr.msra.gmra.mxu1 %v10928_v50  ;;  %12894 = vst [vmem:[#allocation100_spill] sm:$0xff] %v11486_v2 }
 0x376   : > { %8285 = vmatprep.mubr.f32.mxu0 %v11139_v30  ;;  %8369 = vmatpush3.msra.mxu0 %v12862_v23  ;;  %v5226_v30 = vld [vmem:[%s12385_s10 + $0x48] sm:$0xff]  ;;  %12888 = vst [vmem:[#allocation91_spill] sm:$0xff] %v11456_v34  ;;  %v5534_v40 = vsub.f32 %v11444_v63, %v11456_v34  ;;  %v11488_v23 = vand.u32 4294901760, %v5221_v7 }
 0x377   : > { %8435 = vmatprep.mubr.f32.mxu1 %v10961_v18  ;;  %8370 = vmatprep.subr.mxu0 %v12863_v59  ;;  %v11413_v41 = vand.u32 4294901760, %v5226_v30 }
 0x378   : > { %8371 = vmatpush3.msra.mxu0 %v12863_v59  ;;  %v5535_v57 = vand.u32 4294901760, %v5534_v40  ;;  %12895 = vst [vmem:[#allocation101_spill] sm:$0xff] %v11488_v23  ;;  %v11492_v59 = vand.u32 4294901760, %v11477_v25 }
 0x379   : > { %8286 = vmatmul.mubr.f32.gmra.mxu0 %v11156_v28  ;;  %8372 = vmatprep.subr.mxu0 %v12864_v4  ;;  %12880 = vst [vmem:[#allocation71_spill] sm:$0xff] %v11413_v41  ;;  %v11427_v36 = vsub.f32 %v5226_v30, %v11413_v41 }
 0x37a   : > { %8436 = vmatmul.mubr.f32.gmra.mxu1 %v10953_v10  ;;  %8373 = vmatpush3.msra.mxu0 %v12864_v4  ;;  %12896 = vst [vmem:[#allocation102_spill] sm:$0xff] %v11492_v59  ;;  %v5220_v4 = vld [vmem:[%s12385_s10 + $0x18] sm:$0xff] }
 0x37b   : > { %8376 = vmatprep.mubr.f32.mxu0 %v10939_v33  ;;  %8438 = vmatprep.mubr.f32.mxu1 %v10986_v58  ;;  %12883 = vst [vmem:[#allocation85_spill] sm:$0xff] %v11427_v36  ;;  %v11441_v49 = vand.u32 4294901760, %v11427_v36 }
 0x37c   : > { %8374 = vmatprep.subr.mxu0 %v12865_v42 }
 0x37d   : > { %8375 = vmatpush3.msra.mxu0 %v12865_v42  ;;  %12885 = vst [vmem:[#allocation87_spill] sm:$0xff] %v11441_v49  ;;  %v5527_v47 = vsub.f32 %v11427_v36, %v11441_v49  ;;  %v5542_v42 = vand.u32 4294901760, %v5541_v1 }
 0x37e   : > { %8377 = vmatmul.mubr.f32.vlgmr.msra.gmra.mxu0 %v10928_v50  ;;  %8439 = vmatmul.mubr.f32.gmra.mxu1 %v10982_v53  ;;  %v5232_v50 = vld [vmem:[%s12385_s10 + $0x78] sm:$0xff] }
 0x37f   : > { %8379 = vmatprep.mubr.f32.mxu0 %v10961_v18  ;;  %8441 = vmatprep.mubr.f32.mxu1 %v11007_v38  ;;  %v11336_v33 = vand.u32 4294901760, %v5232_v50  ;;  %v5528_v48 = vand.u32 4294901760, %v5527_v47 }
 0x381   : > { %v11342_v18 = vsub.f32 %v5232_v50, %v11336_v33  ;;  %8456 = vmatprep.subr.mxu0 %v11336_v33  ;;  %v11499_v50 = vand.u32 4294901760, %v11486_v2 }
 0x382   : > { %8380 = vmatmul.mubr.f32.gmra.mxu0 %v10953_v10  ;;  %8442 = vmatmul.mubr.f32.gmra.mxu1 %v11005_v0  ;;  %v5231_v10 = vld [vmem:[%s12385_s10 + $0x70] sm:$0xff] }
 0x383   : > { %8382 = vmatprep.mubr.f32.mxu0 %v10986_v58  ;;  %8444 = vmatprep.mubr.f32.mxu1 %v11038_v21  ;;  %12866 = vst [vmem:[#allocation68_spill] sm:$0xff] %v11342_v18  ;;  %v5230_v58 = vld [vmem:[%s12385_s10 + $0x68] sm:$0xff]  ;;  %12897 = vst [vmem:[#allocation103_spill] sm:$0xff] %v11499_v50 }
 0x384   : > { %8457 = vmatpush3.msra.mxu0 %v11336_v33 }
 0x386   : > { %8383 = vmatmul.mubr.f32.gmra.mxu0 %v10982_v53  ;;  %8445 = vmatmul.mubr.f32.gmra.mxu1 %v11036_v9  ;;  %v11344_v53 = vand.u32 4294901760, %v5231_v10 }
 0x387   : > { %8385 = vmatprep.mubr.f32.mxu0 %v11007_v38  ;;  %8447 = vmatprep.mubr.f32.mxu1 %v11058_v8 }
 0x388   : > { %v11355_v38 = vsub.f32 %v5231_v10, %v11344_v53  ;;  %8458 = vmatprep.subr.mxu0 %v11344_v53  ;;  %v11502_v10 = vsub.f32 %v5221_v7, %v11488_v23 }
 0x389   : > { %8459 = vmatpush3.msra.mxu0 %v11344_v53 }
 0x38a   : > { %8386 = vmatmul.mubr.f32.gmra.mxu0 %v11005_v0  ;;  %8448 = vmatmul.mubr.f32.gmra.mxu1 %v11075_v45  ;;  %v11352_v0 = vand.u32 4294901760, %v11342_v18  ;;  %12868 = vst [vmem:[#allocation72_spill] sm:$0xff] %v11355_v38  ;;  %12898 = vst [vmem:[#allocation104_spill] sm:$0xff] %v11502_v10 }
 0x38b   : > { %8388 = vmatprep.mubr.f32.mxu0 %v11038_v21  ;;  %8450 = vmatprep.mubr.f32.mxu1 %v11090_v14  ;;  %v5229_v21 = vld [vmem:[%s12385_s10 + $0x60] sm:$0xff] }
 0x38c   : > { %12867 = vst [vmem:[#allocation73_spill] sm:$0xff] %v11352_v0 }
 0x38e   : > { %8389 = vmatmul.mubr.f32.gmra.mxu0 %v11036_v9  ;;  %8451 = vmatmul.mubr.f32.gmra.mxu1 %v11108_v5  ;;  %v11357_v9 = vand.u32 4294901760, %v5230_v58 }
 0x38f   : > { %8391 = vmatprep.mubr.f32.mxu0 %v11058_v8  ;;  %8453 = vmatprep.mubr.f32.mxu1 %v11119_v31  ;;  %v5485_v8 = vsub.f32 %v11342_v18, %v11352_v0 }
 0x390   : > { %12869 = vst [vmem:[#allocation74_spill] sm:$0xff] %v11357_v9  ;;  %v11370_v35 = vsub.f32 %v5230_v58, %v11357_v9  ;;  %8460 = vmatprep.subr.mxu0 %v11357_v9  ;;  %v11504_v58 = vand.u32 4294901760, %v5220_v4 }
 0x391   : > { %8461 = vmatpush3.msra.mxu0 %v11357_v9  ;;  %v5486_v62 = vand.u32 4294901760, %v5485_v8  ;;  %v5219_v8 = vld [vmem:[%s12385_s10 + $0x10] sm:$0xff] }
 0x392   : > { %8392 = vmatmul.mubr.f32.gmra.mxu0 %v11075_v45  ;;  %8454 = vmatmul.mubr.f32.gmra.mxu1 %v11136_v16  ;;  %v11367_v45 = vand.u32 4294901760, %v11355_v38  ;;  %12871 = vst [vmem:[#allocation69_spill] sm:$0xff] %v11370_v35  ;;  %12899 = vst [vmem:[#allocation93_spill] sm:$0xff] %v11504_v58 }
 0x393   : > { %8394 = vmatprep.mubr.f32.mxu0 %v11090_v14  ;;  %v11372_v14 = vand.u32 4294901760, %v5229_v21  ;;  %8512 = vmatprep.subr.mxu1 %v5486_v62 }
 0x394   : > { %12870 = vst [vmem:[#allocation75_spill] sm:$0xff] %v11367_v45  ;;  %v5492_v6 = vsub.f32 %v11355_v38, %v11367_v45  ;;  %8513 = vmatpush3.msra.mxu1 %v5486_v62  ;;  %v11516_v62 = vand.u32 4294901760, %v11502_v10 }
 0x395   : > { %12872 = vst [vmem:[#allocation76_spill] sm:$0xff] %v11372_v14  ;;  %v11385_v61 = vsub.f32 %v5229_v21, %v11372_v14  ;;  %8462 = vmatprep.subr.mxu0 %v11372_v14  ;;  %v5548_v21 = vsub.f32 %v11477_v25, %v11492_v59 }
 0x396   : > { %8395 = vmatmul.mubr.f32.gmra.mxu0 %v11108_v5  ;;  %v11382_v5 = vand.u32 4294901760, %v11370_v35  ;;  %v5493_v28 = vand.u32 4294901760, %v5492_v6  ;;  %12900 = vst [vmem:[#allocation105_spill] sm:$0xff] %v11516_v62  ;;  %v11519_v6 = vsub.f32 %v5220_v4, %v11504_v58  ;;  %v5562_v30 = vsub.f32 %v11502_v10, %v11516_v62  ;;  %v11614_v62 = vld [vmem:[%s12384_s9] ss:$0 sm:$0xff] }
 0x397   : > { %8397 = vmatprep.mubr.f32.mxu0 %v11119_v31  ;;  %12874 = vst [vmem:[#allocation78_spill] sm:$0xff] %v11385_v61  ;;  %v5227_v31 = vld [vmem:[%s12385_s10 + $0x50] sm:$0xff]  ;;  %8463 = vmatpush3.msra.mxu0 %v11372_v14  ;;  %v11397_v13 = vand.u32 4294901760, %v11385_v61 }
 0x398   : > { %12873 = vst [vmem:[#allocation77_spill] sm:$0xff] %v11382_v5  ;;  %v5499_v37 = vsub.f32 %v11370_v35, %v11382_v5  ;;  %v11399_v12 = vand.u32 4294901760, %v5227_v31  ;;  %8464 = vmatprep.subr.mxu0 %v11388_v3  ;;  %8514 = vmatprep.subr.mxu1 %v5493_v28  ;;  %12901 = vst [vmem:[#allocation106_spill] sm:$0xff] %v11519_v6 }
 0x399   : > { %12876 = vst [vmem:[#allocation79_spill] sm:$0xff] %v11397_v13  ;;  %v5506_v27 = vsub.f32 %v11385_v61, %v11397_v13  ;;  %8465 = vmatpush3.msra.mxu0 %v11388_v3  ;;  %8515 = vmatpush3.msra.mxu1 %v5493_v28  ;;  %v5549_v28 = vand.u32 4294901760, %v5548_v21 }
 0x39a   : > { %8398 = vmatmul.mubr.f32.gmra.mxu0 %v11136_v16  ;;  %12877 = vst [vmem:[#allocation80_spill] sm:$0xff] %v11399_v12  ;;  %v11402_v16 = vsub.f32 %v5228_v54, %v11388_v3  ;;  %v5500_v55 = vand.u32 4294901760, %v5499_v37  ;;  %v11411_v19 = vsub.f32 %v5227_v31, %v11399_v12  ;;  %8466 = vmatprep.subr.mxu0 %v11399_v12  ;;  %v11521_v31 = vand.u32 4294901760, %v5219_v8 }
 0x39b   : > { %v5507_v17 = vand.u32 4294901760, %v5506_v27  ;;  %8467 = vmatpush3.msra.mxu0 %v11399_v12  ;;  %v5555_v54 = vsub.f32 %v11486_v2, %v11499_v50 }
 0x39c   : > { %12878 = vst [vmem:[#allocation81_spill] sm:$0xff] %v11402_v16  ;;  %12879 = vst [vmem:[#allocation82_spill] sm:$0xff] %v11411_v19  ;;  %v11417_v51 = vand.u32 4294901760, %v11402_v16  ;;  %8516 = vmatprep.subr.mxu1 %v5500_v55  ;;  %v11424_v46 = vand.u32 4294901760, %v11411_v19  ;;  %8468 = vmatprep.subr.mxu0 %v11413_v41  ;;  %v11531_v27 = vsub.f32 %v5219_v8, %v11521_v31 }
 0x39d   : > { %8517 = vmatpush3.msra.mxu1 %v5500_v55  ;;  %8469 = vmatpush3.msra.mxu0 %v11413_v41  ;;  %12902 = vst [vmem:[#allocation107_spill] sm:$0xff] %v11521_v31  ;;  %v5556_v37 = vand.u32 4294901760, %v5555_v54  ;;  %v11528_v55 = vand.u32 4294901760, %v11519_v6 }
 0x39e   : > { %12881 = vst [vmem:[#allocation83_spill] sm:$0xff] %v11417_v51  ;;  %12882 = vst [vmem:[#allocation84_spill] sm:$0xff] %v11424_v46  ;;  %v5513_v15 = vsub.f32 %v11402_v16, %v11417_v51  ;;  %8518 = vmatprep.subr.mxu1 %v5507_v17  ;;  %v5520_v56 = vsub.f32 %v11411_v19, %v11424_v46  ;;  %8470 = vmatprep.subr.mxu0 %v11429_v20 }
 0x39f   : > { %8519 = vmatpush3.msra.mxu1 %v5507_v17  ;;  %8471 = vmatpush3.msra.mxu0 %v11429_v20  ;;  %12903 = vst [vmem:[#allocation94_spill] sm:$0xff] %v11528_v55  ;;  %12904 = vst [vmem:[#allocation108_spill] sm:$0xff] %v11531_v27  ;;  %v11537_v17 = vand.u32 4294901760, %v5218_v29  ;;  %v5569_v32 = vsub.f32 %v11519_v6, %v11528_v55 }
 0x3a0   : > { %v5514_v60 = vand.u32 4294901760, %v5513_v15  ;;  %v5521_v52 = vand.u32 4294901760, %v5520_v56  ;;  %8472 = vmatprep.subr.mxu0 %v11446_v26  ;;  %v5563_v15 = vand.u32 4294901760, %v5562_v30  ;;  %v11543_v56 = vand.u32 4294901760, %v11531_v27 }
 0x3a1   : > { %8473 = vmatpush3.msra.mxu0 %v11446_v26  ;;  %12905 = vst [vmem:[#allocation109_spill] sm:$0xff] %v11537_v17  ;;  %v11550_v39 = vsub.f32 %v5218_v29, %v11537_v17  ;;  %v5570_v47 = vand.u32 4294901760, %v5569_v32 }
 0x3a2   : > { %8520 = vmatprep.subr.mxu1 %v5514_v60  ;;  %8474 = vmatprep.subr.mxu0 %v11462_v22  ;;  %12906 = vst [vmem:[#allocation95_spill] sm:$0xff] %v11543_v56  ;;  %v5576_v44 = vsub.f32 %v11531_v27, %v11543_v56 }
 0x3a3   : > { %8521 = vmatpush3.msra.mxu1 %v5514_v60  ;;  %8475 = vmatpush3.msra.mxu0 %v11462_v22  ;;  %v5217_v60 = vld [vmem:[%s12385_s10] sm:$0xff]  ;;  %12907 = vst [vmem:[#allocation97_spill] sm:$0xff] %v11550_v39 }
 0x3a4   : > { %8522 = vmatprep.subr.mxu1 %v5521_v52  ;;  %8476 = vmatprep.subr.mxu0 %v11473_v43  ;;  %v5577_v7 = vand.u32 4294901760, %v5576_v44 }
 0x3a5   : > { %8523 = vmatpush3.msra.mxu1 %v5521_v52  ;;  %8477 = vmatpush3.msra.mxu0 %v11473_v43  ;;  %v11552_v52 = vand.u32 4294901760, %v5217_v60 }
 0x3a6   : > { %8524 = vmatprep.subr.mxu1 %v5528_v48  ;;  %8478 = vmatprep.subr.mxu0 %v11488_v23 }
 0x3a7   : > { %8525 = vmatpush3.msra.mxu1 %v5528_v48  ;;  %8479 = vmatpush3.msra.mxu0 %v11488_v23  ;;  %12908 = vst [vmem:[#allocation20_spill] sm:$0xff] %v11552_v52  ;;  %v11559_v48 = vand.u32 4294901760, %v11550_v39  ;;  %v11562_v40 = vsub.f32 %v5217_v60, %v11552_v52 }
 0x3a8   : > { %8526 = vmatprep.subr.mxu1 %v5535_v57  ;;  %8480 = vmatprep.subr.mxu0 %v11504_v58 }
 0x3a9   : > { %8527 = vmatpush3.msra.mxu1 %v5535_v57  ;;  %8481 = vmatpush3.msra.mxu0 %v11504_v58  ;;  %12909 = vst [vmem:[#allocation22_spill] sm:$0xff] %v11559_v48  ;;  %12910 = vst [vmem:[#allocation25_spill] sm:$0xff] %v11562_v40  ;;  %v5583_v57 = vsub.f32 %v11550_v39, %v11559_v48  ;;  %v11569_v1 = vand.u32 4294901760, %v11562_v40 }
 0x3aa   : > { %8528 = vmatprep.subr.mxu1 %v5542_v42  ;;  %8482 = vmatprep.subr.mxu0 %v11521_v31 }
 0x3ab   : > { %8529 = vmatpush3.msra.mxu1 %v5542_v42  ;;  %8483 = vmatpush3.msra.mxu0 %v11521_v31  ;;  %12911 = vst [vmem:[#allocation28_spill] sm:$0xff] %v11569_v1  ;;  %v5584_v4 = vand.u32 4294901760, %v5583_v57  ;;  %v5590_v42 = vsub.f32 %v11562_v40, %v11569_v1 }
 0x3ac   : > { %8530 = vmatprep.subr.mxu1 %v5549_v28  ;;  %8484 = vmatprep.subr.mxu0 %v11537_v17 }
 0x3ad   : > { %8531 = vmatpush3.msra.mxu1 %v5549_v28  ;;  %8485 = vmatpush3.msra.mxu0 %v11537_v17  ;;  %v5591_v21 = vand.u32 4294901760, %v5590_v42 }
 0x3ae   : > { %8532 = vmatprep.subr.mxu1 %v5556_v37  ;;  %8486 = vmatprep.subr.mxu0 %v11552_v52 }
 0x3af   : > { %8533 = vmatpush3.msra.mxu1 %v5556_v37  ;;  %8487 = vmatpush3.msra.mxu0 %v11552_v52 }
 0x3b0   : > { %8534 = vmatprep.subr.mxu1 %v5563_v15  ;;  %8568 = vmatprep.subr.mxu0 %v11342_v18 }
 0x3b1   : > { %8535 = vmatpush3.msra.mxu1 %v5563_v15 }
 0x3b2   : > { %8536 = vmatprep.subr.mxu1 %v5570_v47 }
 0x3b3   : > { %8537 = vmatpush3.msra.mxu1 %v5570_v47 }
 0x3b4   : > { %8538 = vmatprep.subr.mxu1 %v5577_v7 }
 0x3b5   : > { %8539 = vmatpush3.msra.mxu1 %v5577_v7 }
 0x3b6   : > { %8540 = vmatprep.subr.mxu1 %v5584_v4 }
 0x3b7   : > { %8541 = vmatpush3.msra.mxu1 %v5584_v4 }
 0x3b8   : > { %8542 = vmatprep.subr.mxu1 %v5591_v21 }
 0x3b9   : > { %8543 = vmatpush3.msra.mxu1 %v5591_v21 }
 0x3ba   : > { %8624 = vmatprep.subr.mxu1 %v11336_v33 }
 0x3d8   : > { %v11575_v8 = vpop.f32.mrf.mxu1 }
 0x3da   : > { %v11577_v54 = vpop.f32.mrf.mxu1 }
 0x3dc   : > { %v11579_v28 = vpop.f32.mrf.mxu1 }
 0x3de   : > { %v11581_v37 = vpop.f32.mrf.mxu1 }
 0x3e1   : > { %v11583_v30 = vpop.f32.mrf.mxu0  ;;  %v11585_v29 = vpop.f32.mrf.mxu1 }
 0x3e2   : > { %v4013_v35 = vadd.f32 %v11583_v30, %v11614_v62 }
 0x3e3   : > { %v11587_v15 = vpop.f32.mrf.mxu0  ;;  %v11589_v32 = vpop.f32.mrf.mxu1 }
 0x3e4   : > { %v4003_v12 = vadd.f32 %v11614_v62, %v11587_v15 }
 0x3e6   : > { %v11591_v60 = vpop.f32.mrf.mxu0  ;;  %v4304_v30 = vadd.f32 %v11577_v54, %v4003_v12 }
 0x3e7   : > { %v11593_v47 = vpop.f32.mrf.mxu1 }
 0x3e8   : > { %v11595_v44 = vpop.f32.mrf.mxu0 }
 0x3e9   : > { %v11597_v7 = vpop.f32.mrf.mxu1 }
 0x3ec   : > { %v11599_v57 = vpop.f32.mrf.mxu0 }
 0x3ed   : > { %v8222_v4 = vpop.f32.mrf.mxu1  ;;  %v4053_v15 = vadd.f32 %v11599_v57, %v11614_v62 }
 0x3ee   : > { %v11601_v42 = vpop.f32.mrf.mxu0 }
 0x3ef   : > { %v11603_v21 = vpop.f32.mrf.mxu1 }
 0x3f2   : > { %v11605_v1 = vpop.f32.mrf.mxu0 }
 0x3f3   : > { %v8225_v48 = vpop.f32.mrf.mxu1 }
 0x3f4   : > { %v11607_v56 = vpop.f32.mrf.mxu0 }
 0x3f5   : > { %v11609_v55 = vpop.f32.mrf.mxu1  ;;  %v4063_v12 = vadd.f32 %v11614_v62, %v11607_v56 }
 0x3f8   : > { %v8166_v50 = vpop.f32.mrf.mxu0 }
 0x3f9   : > { %v8228_v59 = vpop.f32.mrf.mxu1  ;;  %v4093_v24 = vadd.f32 %v8166_v50, %v11614_v62 }
 0x3fa   : > { %v11617_v34 = vpop.f32.mrf.mxu0 }
 0x3fb   : > { %v4375_v49 = vpop.f32.mrf.mxu1  ;;  %v11619_v46 = vadd.f32 %v8222_v4, %v4093_v24  ;;  %v4083_v57 = vadd.f32 %v11614_v62, %v11617_v34  ;;  %v4340_v34 = vadd.f32 %v11597_v7, %v4063_v12 }
 0x3fe   : > { %v8169_v51 = vpop.f32.mrf.mxu0 }
 0x3ff   : > { %v8231_v13 = vpop.f32.mrf.mxu1  ;;  %v4113_v5 = vadd.f32 %v8169_v51, %v11614_v62 }
 0x400   : > { %v11622_v45 = vpop.f32.mrf.mxu0 }
 0x401   : > { %v4387_v0 = vpop.f32.mrf.mxu1  ;;  %v11624_v40 = vadd.f32 %v8225_v48, %v4113_v5 }
 0x404   : > { %v8172_v39 = vpop.f32.mrf.mxu0 }
 0x405   : > { %v4133_v27 = vadd.f32 %v8172_v39, %v11614_v62  ;;  %v8322_v6 = vpop.f32.mrf.mxu1 }
 0x406   : > { %v4122_v52 = vpop.f32.mrf.mxu0 }
 0x407   : > { %v4123_v50 = vadd.f32 %v11614_v62, %v4122_v52  ;;  %v11628_v10 = vpop.f32.mrf.mxu1  ;;  %v11630_v24 = vadd.f32 %v8228_v59, %v4133_v27 }
 0x409   : > { %v11632_v4 = vadd.f32 %v4375_v49, %v4123_v50 }
 0x40a   : > { %v8175_v17 = vpop.f32.mrf.mxu0 }
 0x40b   : > { %12912 = vst [vmem:[#allocation31_spill] sm:$0xff] %v11632_v4  ;;  %v4153_v51 = vadd.f32 %v8175_v17, %v11614_v62  ;;  %v11635_v2 = vpop.f32.mrf.mxu1 }
 0x40c   : > { %v4142_v5 = vpop.f32.mrf.mxu0 }
 0x40d   : > { %v4143_v48 = vadd.f32 %v11614_v62, %v4142_v5  ;;  %v11638_v31 = vpop.f32.mrf.mxu1  ;;  %v11640_v39 = vadd.f32 %v8231_v13, %v4153_v51 }
 0x40f   : > { %12913 = vst [vmem:[#allocation21_spill] sm:$0xff] %v11640_v39  ;;  %v11642_v25 = vadd.f32 %v4387_v0, %v4143_v48 }
 0x410   : > { %v8266_v52 = vpop.f32.mrf.mxu0 }
 0x411   : > { %12914 = vst [vmem:[#allocation24_spill] sm:$0xff] %v11642_v25  ;;  %v11644_v58 = vpop.f32.mrf.mxu1 }
 0x412   : > { %v4497_v59 = vpop.f32.mrf.mxu0 }
 0x413   : > { %v11646_v49 = vpop.f32.mrf.mxu1  ;;  %v4498_v9 = vadd.f32 %v4497_v59, %v4304_v30 }
 0x415   : > { %v4692_v30 = vadd.f32 %v11628_v10, %v4498_v9 }
 0x416   : > { %v8269_v27 = vpop.f32.mrf.mxu0 }
 0x417   : > { %v11648_v50 = vpop.f32.mrf.mxu1 }
 0x418   : > { %v4511_v17 = vpop.f32.mrf.mxu0 }
 0x419   : > { %v11650_v11 = vpop.f32.mrf.mxu1 }
 0x41c   : > { %v8272_v23 = vpop.f32.mrf.mxu0 }
 0x41d   : > { %v11652_v5 = vpop.f32.mrf.mxu1 }
 0x41e   : > { %v4525_v63 = vpop.f32.mrf.mxu0 }
 0x41f   : > { %v11654_v13 = vpop.f32.mrf.mxu1 }
 0x422   : > { %v8275_v0 = vpop.f32.mrf.mxu0 }
 0x423   : > { %v11656_v51 = vpop.f32.mrf.mxu1 }
 0x424   : > { %v4539_v48 = vpop.f32.mrf.mxu0 }
 0x425   : > { %v11658_v43 = vpop.f32.mrf.mxu1 }
 0x428   : > { %v8278_v36 = vpop.f32.mrf.mxu0 }
 0x429   : > { %v11660_v22 = vpop.f32.mrf.mxu1  ;;  %v4561_v7 = vadd.f32 %v8278_v36, %v11619_v46 }
 0x42a   : > { %12915 = vst [vmem:[#allocation33_spill] sm:$0xff] %v11660_v22  ;;  %v4553_v19 = vpop.f32.mrf.mxu0 }
 0x42b   : > { %v11662_v26 = vpop.f32.mrf.mxu1 }
 0x42c   : > { %12916 = vst [vmem:[#allocation27_spill] sm:$0xff] %v11662_v26  ;;  %v4033_v26 = vadd.f32 %v11591_v60, %v11614_v62 }
 0x42e   : > { %v11664_v16 = vpop.f32.mrf.mxu0 }
 0x42f   : > { %v11666_v20 = vpop.f32.mrf.mxu1 }
 0x430   : > { %12917 = vst [vmem:[#allocation36_spill] sm:$0xff] %v11666_v20  ;;  %v11668_v61 = vpop.f32.mrf.mxu0  ;;  %v4310_v20 = vadd.f32 %v11575_v8, %v4013_v35  ;;  %v4043_v35 = vadd.f32 %v11614_v62, %v11601_v42  ;;  %v4073_v8 = vadd.f32 %v11605_v1, %v11614_v62 }
 0x431   : > { %v11670_v41 = vpop.f32.mrf.mxu1 }
 0x432   : > { %12918 = vst [vmem:[#allocation30_spill] sm:$0xff] %v11670_v41  ;;  %v4023_v41 = vadd.f32 %v11614_v62, %v11595_v44  ;;  %v4505_v3 = vadd.f32 %v8266_v52, %v4310_v20  ;;  %v4328_v56 = vadd.f32 %v11589_v32, %v4043_v35  ;;  %v4540_v35 = vadd.f32 %v4539_v48, %v4340_v34 }
 0x434   : > { %v11674_v25 = vpop.f32.mrf.mxu0  ;;  %v4316_v60 = vadd.f32 %v11581_v37, %v4023_v41  ;;  %v4700_v44 = vadd.f32 %v8322_v6, %v4505_v3  ;;  %v4346_v41 = vadd.f32 %v11593_v47, %v4073_v8 }
 0x435   : > { %v8434_v38 = vpop.f32.mrf.mxu1 }
 0x436   : > { %v11678_v39 = vpop.f32.mrf.mxu0  ;;  %v4512_v59 = vadd.f32 %v4511_v17, %v4316_v60 }
 0x437   : > { %12919 = vst [vmem:[#allocation40_spill] sm:$0xff] %v11678_v39  ;;  %v5107_v18 = vpop.f32.mrf.mxu1  ;;  %v4322_v39 = vadd.f32 %v11579_v28, %v4033_v26  ;;  %v4103_v26 = vadd.f32 %v11614_v62, %v11622_v45  ;;  %v4334_v28 = vadd.f32 %v11585_v29, %v4053_v15  ;;  %v4526_v62 = vadd.f32 %v4525_v63, %v4328_v56 }
 0x438   : > { %v4547_v29 = vadd.f32 %v8275_v0, %v4346_v41  ;;  %v4708_v47 = vadd.f32 %v11638_v31, %v4512_v59  ;;  %v4589_v41 = vadd.f32 %v11674_v25, %v11630_v24 }
 0x439   : > { %v11686_v22 = vpop.f32.mrf.mxu0  ;;  %v4519_v54 = vadd.f32 %v8269_v27, %v4322_v39  ;;  %v4352_v27 = vadd.f32 %v11603_v21, %v4083_v57  ;;  %v4364_v17 = vadd.f32 %v11609_v55, %v4103_v26  ;;  %v4724_v46 = vadd.f32 %v11646_v49, %v4526_v62 }
 0x43a   : > { %v8437_v14 = vpop.f32.mrf.mxu1 }
 0x43b   : > { %v11691_v4 = vpop.f32.mrf.mxu0  ;;  %v4716_v45 = vadd.f32 %v11635_v2, %v4519_v54  ;;  %v4568_v54 = vadd.f32 %v11668_v61, %v4364_v17  ;;  %v4764_v61 = vadd.f32 %v11652_v5, %v4561_v7 }
 0x43c   : > { %12920 = vst [vmem:[#allocation34_spill] sm:$0xff] %v11691_v4  ;;  %v5119_v20 = vpop.f32.mrf.mxu1  ;;  %v4533_v4 = vadd.f32 %v8272_v23, %v4334_v28 }
 0x43d   : > { %v11746_v5 = vadd.f32 %v11658_v43, %v4568_v54 }
 0x43e   : > { %v8378_v42 = vpop.f32.mrf.mxu0  ;;  %v8440_v52 = vpop.f32.mrf.mxu1  ;;  %v4732_v63 = vadd.f32 %v11644_v58, %v4533_v4 }
 0x43f   : > { %v4937_v1 = vadd.f32 %v8378_v42, %v4700_v44 }
 0x440   : > { %v4930_v3 = vpop.f32.mrf.mxu0  ;;  %v5131_v6 = vpop.f32.mrf.mxu1 }
 0x441   : > { %v5114_v37 = vadd.f32 %v8434_v38, %v4937_v1  ;;  %v4931_v39 = vadd.f32 %v4930_v3, %v4692_v30  ;;  %v4554_v38 = vadd.f32 %v4553_v19, %v4352_v27  ;;  %v4748_v19 = vadd.f32 %v11648_v50, %v4547_v29 }
 0x442   : > { %v8381_v9 = vpop.f32.mrf.mxu0  ;;  %v8443_v23 = vpop.f32.mrf.mxu1 }
 0x443   : > { %v5202_v10 = vmax.f32 %v5114_v37, 0.0  ;;  %v5108_v32 = vadd.f32 %v5107_v18, %v4931_v39  ;;  %v4949_v15 = vadd.f32 %v8381_v9, %v4716_v45  ;;  %v4575_v18 = vadd.f32 %v11664_v16, %v11624_v40  ;;  %v12921_v37 = vld [vmem:[#allocation31_spill] sm:$0xff]  ;;  %v12922_v39 = vld [vmem:[#allocation40_spill] sm:$0xff] }
 0x444   : > { %v4942_v8 = vpop.f32.mrf.mxu0  ;;  %v11714_v12 = vpop.f32.mrf.mxu1  ;;  %v4740_v16 = vadd.f32 %v11650_v11, %v4540_v35  ;;  %v4756_v40 = vadd.f32 %v11654_v13, %v4554_v38  ;;  %v4582_v45 = vadd.f32 %v12922_v39, %v12921_v37  ;;  %v12930_v39 = vld [vmem:[#allocation72_spill] sm:$0xff] }
 0x445   : > { %v11717_v2 = vand.u32 4294901760, %v5202_v10  ;;  %v5201_v21 = vmax.f32 %v5108_v32, 0.0  ;;  %v5126_v55 = vadd.f32 %v8437_v14, %v4949_v15  ;;  %v4943_v0 = vadd.f32 %v4942_v8, %v4708_v47 }
 0x446   : > { %v8384_v31 = vpop.f32.mrf.mxu0  ;;  %v8446_v48 = vpop.f32.mrf.mxu1  ;;  %v4780_v11 = vadd.f32 %v11656_v51, %v4575_v18 }
 0x447   : > { %v11725_v36 = vsub.f32 %v5202_v10, %v11717_v2  ;;  %v11727_v58 = vand.u32 4294901760, %v5201_v21  ;;  %v5204_v4 = vmax.f32 %v5126_v55, 0.0  ;;  %v5120_v60 = vadd.f32 %v5119_v20, %v4943_v0  ;;  %v12923_v10 = vld [vmem:[#allocation74_spill] sm:$0xff] }
 0x448   : > { %v4961_v14 = vadd.f32 %v8384_v31, %v4732_v63  ;;  %v4954_v44 = vpop.f32.mrf.mxu0  ;;  %v11729_v57 = vpop.f32.mrf.mxu1 }
 0x449   : > { %v5333_v49 = vand.u32 4294901760, %v11725_v36  ;;  %v11736_v50 = vsub.f32 %v5201_v21, %v11727_v58  ;;  %v11738_v26 = vand.u32 4294901760, %v5204_v4  ;;  %v5203_v28 = vmax.f32 %v5120_v60, 0.0  ;;  %8544 = vmatprep.mubr.f32.mxu1 %v11727_v58  ;;  %v12924_v21 = vld [vmem:[#allocation76_spill] sm:$0xff]  ;;  %v12925_v60 = vld [vmem:[#allocation33_spill] sm:$0xff] }
 0x44a   : > { %v5138_v20 = vadd.f32 %v8440_v52, %v4961_v14  ;;  %v4955_v42 = vadd.f32 %v4954_v44, %v4724_v46  ;;  %v8387_v59 = vpop.f32.mrf.mxu0  ;;  %v11741_v1 = vpop.f32.mrf.mxu1  ;;  %8545 = vmatmul.mubr.f32.vlgmr.msra.gmra.mxu1 %v11717_v2 }
 0x44b   : > { %v5334_v13 = vsub.f32 %v11725_v36, %v5333_v49  ;;  %v11752_v30 = vsub.f32 %v5204_v4, %v11738_v26  ;;  %v11754_v56 = vand.u32 4294901760, %v5203_v28  ;;  %v4973_v52 = vadd.f32 %v8387_v59, %v4748_v19  ;;  %8625 = vmatpush3.msra.mxu1 %v11336_v33 }
 0x44c   : > { %v5206_v3 = vmax.f32 %v5138_v20, 0.0  ;;  %v5132_v51 = vadd.f32 %v5131_v6, %v4955_v42  ;;  %v4966_v34 = vpop.f32.mrf.mxu0  ;;  %8626 = vmatprep.subr.mxu1 %v11344_v53  ;;  %v5323_v43 = vand.u32 4294901760, %v11736_v50  ;;  %v5167_v17 = vpop.f32.mrf.mxu1  ;;  %v12926_v20 = vld [vmem:[#allocation70_spill] sm:$0xff]  ;;  %v12927_v42 = vld [vmem:[#allocation68_spill] sm:$0xff] }
 0x44d   : > { %v5353_v62 = vand.u32 4294901760, %v11752_v30  ;;  %v11765_v29 = vsub.f32 %v5203_v28, %v11754_v56  ;;  %v5150_v27 = vadd.f32 %v8443_v23, %v4973_v52  ;;  %8547 = vmatprep.mubr.f32.mxu1 %v11754_v56  ;;  %8627 = vmatpush3.msra.mxu1 %v11344_v53  ;;  %v4967_v6 = vadd.f32 %v4966_v34, %v4740_v16  ;;  %v12928_v52 = vld [vmem:[#allocation27_spill] sm:$0xff] }
 0x44e   : > { %v11769_v25 = vand.u32 4294901760, %v5206_v3  ;;  %v5205_v24 = vmax.f32 %v5132_v51, 0.0  ;;  %v8390_v9 = vpop.f32.mrf.mxu0  ;;  %8548 = vmatmul.mubr.f32.gmra.mxu1 %v11738_v26  ;;  %8628 = vmatprep.subr.mxu1 %v12923_v10  ;;  %v5324_v32 = vsub.f32 %v11736_v50, %v5323_v43  ;;  %v5335_v15 = vand.u32 4294901760, %v5334_v13  ;;  %v12929_v51 = vld [vmem:[#allocation21_spill] sm:$0xff] }
 0x44f   : > { %v5208_v23 = vmax.f32 %v5150_v27, 0.0  ;;  %v4985_v47 = vadd.f32 %v8390_v9, %v4764_v61  ;;  %8629 = vmatpush3.msra.mxu1 %v12923_v10  ;;  %v5343_v35 = vand.u32 4294901760, %v11765_v29  ;;  %v5144_v8 = vadd.f32 %v11714_v12, %v4967_v6  ;;  %v11796_v12 = vpop.f32.mrf.mxu1  ;;  %v12931_v6 = vld [vmem:[#allocation80_spill] sm:$0xff] }
 0x450   : > { %v11779_v7 = vsub.f32 %v5206_v3, %v11769_v25  ;;  %v11781_v38 = vand.u32 4294901760, %v5205_v24  ;;  %v4978_v63 = vpop.f32.mrf.mxu0  ;;  %8630 = vmatprep.subr.mxu1 %v12924_v21  ;;  %v5325_v55 = vand.u32 4294901760, %v5324_v32  ;;  %v5354_v14 = vsub.f32 %v11752_v30, %v5353_v62  ;;  %v12932_v32 = vld [vmem:[#allocation24_spill] sm:$0xff] }
 0x451   : > { %v11785_v0 = vand.u32 4294901760, %v5208_v23  ;;  %v11787_v18 = vadd.f32 %v8446_v48, %v4985_v47  ;;  %v4979_v54 = vadd.f32 %v4978_v63, %v4756_v40  ;;  %8631 = vmatpush3.msra.mxu1 %v12924_v21  ;;  %v5344_v31 = vsub.f32 %v11765_v29, %v5343_v35 }
 0x452   : > { %v11794_v46 = vsub.f32 %v5205_v24, %v11781_v38  ;;  %v5207_v19 = vmax.f32 %v5144_v8, 0.0  ;;  %8488 = vmatprep.mubr.f32.mxu0 %v5325_v55  ;;  %8550 = vmatprep.mubr.f32.mxu1 %v11781_v38  ;;  %v8393_v4 = vpop.f32.mrf.mxu0  ;;  %v4796_v48 = vadd.f32 %v12925_v60, %v4589_v41  ;;  %v5373_v44 = vand.u32 4294901760, %v11779_v7 }
 0x453   : > { %v5210_v16 = vmax.f32 %v11787_v18, 0.0  ;;  %v5156_v61 = vadd.f32 %v11729_v57, %v4979_v54  ;;  %v4997_v40 = vadd.f32 %v8393_v4, %v4780_v11  ;;  %8489 = vmatmul.mubr.f32.vlgmr.msra.gmra.mxu0 %v5335_v15  ;;  %8551 = vmatmul.mubr.f32.gmra.mxu1 %v11769_v25  ;;  %v5345_v13 = vand.u32 4294901760, %v5344_v31  ;;  %v12933_v15 = vld [vmem:[#allocation34_spill] sm:$0xff] }
 0x454   : > { %v11807_v28 = vand.u32 4294901760, %v5207_v19  ;;  %8632 = vmatprep.subr.mxu1 %v12926_v20  ;;  %8569 = vmatpush3.msra.mxu0 %v12927_v42  ;;  %v4990_v59 = vpop.f32.mrf.mxu0  ;;  %v4788_v41 = vadd.f32 %v12928_v52, %v4582_v45  ;;  %v5363_v3 = vand.u32 4294901760, %v11794_v46  ;;  %v4603_v34 = vadd.f32 %v11686_v22, %v12929_v51  ;;  %v5179_v45 = vpop.f32.mrf.mxu1  ;;  %v12936_v52 = vld [vmem:[#allocation78_spill] sm:$0xff]  ;;  %v12937_v51 = vld [vmem:[#allocation36_spill] sm:$0xff] }
 0x455   : > { %v11816_v57 = vsub.f32 %v5208_v23, %v11785_v0  ;;  %v5209_v11 = vmax.f32 %v5156_v61, 0.0  ;;  %v11819_v37 = vadd.f32 %v11741_v1, %v4997_v40  ;;  %8633 = vmatpush3.msra.mxu1 %v12926_v20  ;;  %8570 = vmatprep.subr.mxu0 %v12930_v39  ;;  %v4991_v24 = vadd.f32 %v4990_v59, %v11746_v5  ;;  %v12935_v40 = vld [vmem:[#allocation71_spill] sm:$0xff] }
 0x456   : > { %v11824_v27 = vsub.f32 %v5207_v19, %v11807_v28  ;;  %8634 = vmatprep.subr.mxu1 %v12931_v6  ;;  %8491 = vmatprep.mubr.f32.mxu0 %v5345_v13  ;;  %v8396_v22 = vpop.f32.mrf.mxu0  ;;  %v5355_v9 = vand.u32 4294901760, %v5354_v14  ;;  %v5364_v1 = vsub.f32 %v11794_v46, %v5363_v3  ;;  %v4596_v23 = vadd.f32 %v12933_v15, %v12932_v32  ;;  %v12934_v14 = vld [vmem:[#allocation69_spill] sm:$0xff] }
 0x457   : > { %v11833_v47 = vand.u32 4294901760, %v5210_v16  ;;  %v11835_v8 = vand.u32 4294901760, %v5209_v11  ;;  %8553 = vmatprep.mubr.f32.mxu1 %v11807_v28  ;;  %8571 = vmatpush3.msra.mxu0 %v12930_v39  ;;  %v5374_v5 = vsub.f32 %v11779_v7, %v5373_v44  ;;  %v5168_v63 = vadd.f32 %v5167_v17, %v4991_v24  ;;  %v8455_v17 = vpop.f32.mrf.mxu1  ;;  %v12938_v39 = vld [vmem:[#allocation30_spill] sm:$0xff] }
 0x458   : > { %8635 = vmatpush3.msra.mxu1 %v12931_v6  ;;  %v5009_v55 = vadd.f32 %v8396_v22, %v4796_v48  ;;  %8492 = vmatmul.mubr.f32.gmra.mxu0 %v5355_v9  ;;  %v5002_v18 = vpop.f32.mrf.mxu0  ;;  %v5365_v54 = vand.u32 4294901760, %v5364_v1  ;;  %v5383_v31 = vand.u32 4294901760, %v11824_v27  ;;  %v5393_v19 = vand.u32 4294901760, %v11816_v57  ;;  %v12939_v1 = vld [vmem:[#allocation86_spill] sm:$0xff] }
 0x459   : > { %v11846_v4 = vsub.f32 %v5209_v11, %v11835_v8  ;;  %v5212_v60 = vmax.f32 %v11819_v37, 0.0  ;;  %8554 = vmatmul.mubr.f32.gmra.mxu1 %v11785_v0  ;;  %8572 = vmatprep.subr.mxu0 %v12934_v14  ;;  %v5211_v61 = vmax.f32 %v5168_v63, 0.0  ;;  %v5003_v48 = vadd.f32 %v5002_v18, %v4788_v41  ;;  %v12940_v18 = vld [vmem:[#allocation81_spill] sm:$0xff] }
 0x45a   : > { %8636 = vmatprep.subr.mxu1 %v12935_v40  ;;  %8573 = vmatpush3.msra.mxu0 %v12934_v14  ;;  %v8399_v42 = vpop.f32.mrf.mxu0  ;;  %v5384_v59 = vsub.f32 %v11824_v27, %v5383_v31  ;;  %v11857_v13 = vsub.f32 %v5210_v16, %v11833_v47  ;;  %v4812_v11 = vadd.f32 %v12937_v51, %v4603_v34  ;;  %v5375_v37 = vand.u32 4294901760, %v5374_v5 }
 0x45b   : > { %8637 = vmatpush3.msra.mxu1 %v12935_v40  ;;  %8574 = vmatprep.subr.mxu0 %v12936_v52  ;;  %v4804_v24 = vadd.f32 %v12938_v39, %v4596_v23  ;;  %v11863_v22 = vand.u32 4294901760, %v5211_v61  ;;  %v5186_v41 = vadd.f32 %v11796_v12, %v5009_v55  ;;  %v5180_v9 = vadd.f32 %v5179_v45, %v5003_v48  ;;  %v5191_v45 = vpop.f32.mrf.mxu1 }
 0x45c   : > { %8638 = vmatprep.subr.mxu1 %v12939_v1  ;;  %8494 = vmatprep.mubr.f32.mxu0 %v5365_v54  ;;  %v5014_v32 = vpop.f32.mrf.mxu0  ;;  %v12624_v16 = vand.u32 4294901760, %v11846_v4  ;;  %v11868_v15 = vand.u32 4294901760, %v5212_v60  ;;  %v5394_v23 = vsub.f32 %v11816_v57, %v5393_v19  ;;  %v5021_v63 = vadd.f32 %v8399_v42, %v4812_v11  ;;  %v12942_v42 = vld [vmem:[#allocation82_spill] sm:$0xff] }
 0x45d   : > { %8556 = vmatprep.mubr.f32.mxu1 %v11835_v8  ;;  %8575 = vmatpush3.msra.mxu0 %v12936_v52  ;;  %v5015_v34 = vadd.f32 %v5014_v32, %v4804_v24  ;;  %v11876_v12 = vsub.f32 %v5211_v61, %v11863_v22  ;;  %v5213_v5 = vmax.f32 %v5180_v9, 0.0  ;;  %v5385_v55 = vand.u32 4294901760, %v5384_v59  ;;  %v12941_v52 = vld [vmem:[#allocation89_spill] sm:$0xff] }
 0x45e   : > { %8639 = vmatpush3.msra.mxu1 %v12939_v1  ;;  %8495 = vmatmul.mubr.f32.gmra.mxu0 %v5375_v37  ;;  %v12622_v14 = vand.u32 4294901760, %v11857_v13  ;;  %v5214_v48 = vmax.f32 %v5186_v41, 0.0  ;;  %v5404_v61 = vsub.f32 %v11846_v4, %v12624_v16  ;;  %v11892_v59 = vsub.f32 %v5212_v60, %v11868_v15  ;;  %v12943_v37 = vld [vmem:[#allocation92_spill] sm:$0xff] }
 0x45f   : > { %8557 = vmatmul.mubr.f32.gmra.mxu1 %v11833_v47  ;;  %8576 = vmatprep.subr.mxu0 %v12940_v18  ;;  %v5192_v54 = vadd.f32 %v5191_v45, %v5015_v34  ;;  %v11887_v51 = vand.u32 4294901760, %v5213_v5  ;;  %v5198_v11 = vadd.f32 %v8455_v17, %v5021_v63  ;;  %v5395_v39 = vand.u32 4294901760, %v5394_v23  ;;  %v12944_v34 = vld [vmem:[#allocation85_spill] sm:$0xff]  ;;  %v12945_v63 = vld [vmem:[#allocation98_spill] sm:$0xff] }
 0x460   : > { %8640 = vmatprep.subr.mxu1 %v12941_v52  ;;  %8577 = vmatpush3.msra.mxu0 %v12940_v18  ;;  %v12620_v24 = vand.u32 4294901760, %v11876_v12  ;;  %v11898_v9 = vand.u32 4294901760, %v5214_v48  ;;  %v5405_v32 = vand.u32 4294901760, %v5404_v61  ;;  %v5414_v60 = vsub.f32 %v11857_v13, %v12622_v14  ;;  %v12947_v61 = vld [vmem:[#allocation101_spill] sm:$0xff] }
 0x461   : > { %8641 = vmatpush3.msra.mxu1 %v12941_v52  ;;  %8578 = vmatprep.subr.mxu0 %v12942_v42  ;;  %v5215_v41 = vmax.f32 %v5192_v54, 0.0  ;;  %v11905_v17 = vsub.f32 %v5213_v5, %v11887_v51  ;;  %v12621_v23 = vand.u32 4294901760, %v11892_v59  ;;  %v5216_v45 = vmax.f32 %v5198_v11, 0.0  ;;  %v12946_v5 = vld [vmem:[#allocation88_spill] sm:$0xff] }
 0x462   : > { %8642 = vmatprep.subr.mxu1 %v12943_v37  ;;  %8497 = vmatprep.mubr.f32.mxu0 %v5385_v55  ;;  %v5424_v55 = vsub.f32 %v11876_v12, %v12620_v24  ;;  %v11920_v54 = vsub.f32 %v5214_v48, %v11898_v9 }
 0x463   : > { %8559 = vmatprep.mubr.f32.mxu1 %v11863_v22  ;;  %8579 = vmatpush3.msra.mxu0 %v12942_v42  ;;  %v11915_v18 = vand.u32 4294901760, %v5215_v41  ;;  %v5415_v42 = vand.u32 4294901760, %v5414_v60  ;;  %v12623_v11 = vand.u32 4294901760, %v11905_v17  ;;  %v5434_v48 = vsub.f32 %v11892_v59, %v12621_v23  ;;  %v12951_v23 = vld [vmem:[#allocation107_spill] sm:$0xff] }
 0x464   : > { %8643 = vmatpush3.msra.mxu1 %v12943_v37  ;;  %8498 = vmatmul.mubr.f32.gmra.mxu0 %v5395_v39  ;;  %v11926_v39 = vand.u32 4294901760, %v5216_v45  ;;  %v12625_v60 = vand.u32 4294901760, %v11920_v54 }
 0x465   : > { %8560 = vmatmul.mubr.f32.gmra.mxu1 %v11868_v15  ;;  %8580 = vmatprep.subr.mxu0 %v12944_v34  ;;  %v11933_v24 = vsub.f32 %v5215_v41, %v11915_v18  ;;  %v5435_v14 = vand.u32 4294901760, %v5434_v48  ;;  %v12953_v48 = vld [vmem:[#allocation109_spill] sm:$0xff] }
 0x466   : > { %8644 = vmatprep.subr.mxu1 %v12945_v63  ;;  %8581 = vmatpush3.msra.mxu0 %v12944_v34  ;;  %v5425_v34 = vand.u32 4294901760, %v5424_v55  ;;  %v12950_v55 = vld [vmem:[#allocation99_spill] sm:$0xff]  ;;  %v11946_v41 = vsub.f32 %v5216_v45, %v11926_v39  ;;  %v12952_v45 = vld [vmem:[#allocation100_spill] sm:$0xff] }
 0x467   : > { %8645 = vmatpush3.msra.mxu1 %v12945_v63  ;;  %8582 = vmatprep.subr.mxu0 %v12946_v5 }
 0x468   : > { %8646 = vmatprep.subr.mxu1 %v12947_v61  ;;  %8500 = vmatprep.mubr.f32.mxu0 %v5405_v32  ;;  %v12948_v32 = vld [vmem:[#allocation90_spill] sm:$0xff] }
 0x469   : > { %8562 = vmatprep.mubr.f32.mxu1 %v11887_v51  ;;  %8583 = vmatpush3.msra.mxu0 %v12946_v5  ;;  %v12949_v5 = vld [vmem:[#allocation93_spill] sm:$0xff] }
 0x46a   : > { %8647 = vmatpush3.msra.mxu1 %v12947_v61  ;;  %8501 = vmatmul.mubr.f32.gmra.mxu0 %v5415_v42  ;;  %v5444_v42 = vsub.f32 %v11905_v17, %v12623_v11  ;;  %v5454_v11 = vsub.f32 %v11920_v54, %v12625_v60  ;;  %v12955_v60 = vld [vmem:[#allocation20_spill] sm:$0xff] }
 0x46b   : > { %8563 = vmatmul.mubr.f32.gmra.mxu1 %v11898_v9  ;;  %8584 = vmatprep.subr.mxu0 %v12948_v32 }
 0x46c   : > { %8648 = vmatprep.subr.mxu1 %v12949_v5  ;;  %8585 = vmatpush3.msra.mxu0 %v12948_v32  ;;  %v12626_v32 = vand.u32 4294901760, %v11933_v24  ;;  %v5445_v16 = vand.u32 4294901760, %v5444_v42  ;;  %v5455_v42 = vand.u32 4294901760, %v5454_v11 }
 0x46d   : > { %8649 = vmatpush3.msra.mxu1 %v12949_v5  ;;  %8586 = vmatprep.subr.mxu0 %v12950_v55 }
 0x46e   : > { %8650 = vmatprep.subr.mxu1 %v12951_v23  ;;  %8503 = vmatprep.mubr.f32.mxu0 %v5425_v34  ;;  %v5473_v34 = vand.u32 4294901760, %v11946_v41 }
 0x46f   : > { %8565 = vmatprep.mubr.f32.mxu1 %v11915_v18  ;;  %8587 = vmatpush3.msra.mxu0 %v12950_v55  ;;  %v12954_v55 = vld [vmem:[#allocation104_spill] sm:$0xff] }
 0x470   : > { %8651 = vmatpush3.msra.mxu1 %v12951_v23  ;;  %8504 = vmatmul.mubr.f32.gmra.mxu0 %v5435_v14  ;;  %v5464_v14 = vsub.f32 %v11933_v24, %v12626_v32 }
 0x471   : > { %8566 = vmatmul.mubr.f32.gmra.mxu1 %v11926_v39  ;;  %8588 = vmatprep.subr.mxu0 %v12952_v45 }
 0x472   : > { %8652 = vmatprep.subr.mxu1 %v12953_v48  ;;  %8589 = vmatpush3.msra.mxu0 %v12952_v45  ;;  %v5474_v45 = vsub.f32 %v11946_v41, %v5473_v34  ;;  %v5465_v32 = vand.u32 4294901760, %v5464_v14 }
 0x473   : > { %8653 = vmatpush3.msra.mxu1 %v12953_v48  ;;  %8656 = vmatprep.mubr.f32.mxu1 %v5323_v43  ;;  %v12956_v43 = vld [vmem:[#allocation106_spill] sm:$0xff] }
 0x474   : > { %8590 = vmatprep.subr.mxu0 %v12954_v55  ;;  %8654 = vmatprep.subr.mxu1 %v12955_v60  ;;  %v5475_v11 = vand.u32 4294901760, %v5474_v45 }
 0x475   : > { %8506 = vmatprep.mubr.f32.mxu0 %v5445_v16  ;;  %8591 = vmatpush3.msra.mxu0 %v12954_v55  ;;  %v12957_v16 = vld [vmem:[#allocation108_spill] sm:$0xff] }
 0x476   : > { %8655 = vmatpush3.msra.mxu1 %v12955_v60  ;;  %8507 = vmatmul.mubr.f32.gmra.mxu0 %v5455_v42 }
 0x477   : > { %8592 = vmatprep.subr.mxu0 %v12956_v43  ;;  %8657 = vmatmul.mubr.f32.vlgmr.msra.gmra.mxu1 %v5333_v49  ;;  %v12958_v49 = vld [vmem:[#allocation97_spill] sm:$0xff] }
 0x478   : > { %8736 = vmatprep.subr.mxu1 %v11336_v33  ;;  %8593 = vmatpush3.msra.mxu0 %v12956_v43 }
 0x479   : > { %8659 = vmatprep.mubr.f32.mxu1 %v5343_v35  ;;  %8737 = vmatpush3.msra.mxu1 %v11336_v33  ;;  %v12959_v33 = vld [vmem:[#allocation25_spill] sm:$0xff]  ;;  %v12967_v35 = vand.u32 4294901760, %v11876_v12 }
 0x47a   : > { %8594 = vmatprep.subr.mxu0 %v12957_v16  ;;  %8738 = vmatprep.subr.mxu1 %v11344_v53 }
 0x47b   : > { %8509 = vmatprep.mubr.f32.mxu0 %v5465_v32  ;;  %8595 = vmatpush3.msra.mxu0 %v12957_v16 }
 0x47c   : > { %8739 = vmatpush3.msra.mxu1 %v11344_v53  ;;  %8510 = vmatmul.mubr.f32.gmra.mxu0 %v5475_v11  ;;  %v12960_v53 = vld [vmem:[#allocation73_spill] sm:$0xff] }
 0x47d   : > { %8596 = vmatprep.subr.mxu0 %v12958_v49  ;;  %8660 = vmatmul.mubr.f32.gmra.mxu1 %v5353_v62  ;;  %v12963_v62 = vand.u32 4294901760, %v11846_v4 }
 0x47e   : > { %8740 = vmatprep.subr.mxu1 %v12923_v10  ;;  %8597 = vmatpush3.msra.mxu0 %v12958_v49 }
 0x47f   : > { %8600 = vmatprep.mubr.f32.mxu0 %v11736_v50  ;;  %8662 = vmatprep.mubr.f32.mxu1 %v5363_v3  ;;  %v12961_v50 = vld [vmem:[#allocation75_spill] sm:$0xff]  ;;  %v12973_v3 = vand.u32 4294901760, %v11920_v54 }
 0x480   : > { %8741 = vmatpush3.msra.mxu1 %v12923_v10  ;;  %8598 = vmatprep.subr.mxu0 %v12959_v33  ;;  %v12966_v10 = vld [vmem:[#allocation83_spill] sm:$0xff] }
 0x481   : > { %8742 = vmatprep.subr.mxu1 %v12924_v21  ;;  %8599 = vmatpush3.msra.mxu0 %v12959_v33 }
 0x482   : > { %8743 = vmatpush3.msra.mxu1 %v12924_v21  ;;  %8601 = vmatmul.mubr.f32.vlgmr.msra.gmra.mxu0 %v11725_v36  ;;  %v12962_v36 = vld [vmem:[#allocation77_spill] sm:$0xff]  ;;  %v12968_v21 = vld [vmem:[#allocation84_spill] sm:$0xff] }
 0x483   : > { %8663 = vmatmul.mubr.f32.gmra.mxu1 %v5373_v44  ;;  %8680 = vmatprep.subr.mxu0 %v12960_v53  ;;  %v12971_v44 = vand.u32 4294901760, %v11905_v17 }
 0x484   : > { %8744 = vmatprep.subr.mxu1 %v12926_v20  ;;  %8603 = vmatprep.mubr.f32.mxu0 %v11765_v29  ;;  %v12964_v29 = vld [vmem:[#allocation79_spill] sm:$0xff] }
 0x485   : > { %8665 = vmatprep.mubr.f32.mxu1 %v5383_v31  ;;  %8681 = vmatpush3.msra.mxu0 %v12960_v53  ;;  %v12977_v31 = vld [vmem:[#allocation103_spill] sm:$0xff] }
 0x486   : > { %8745 = vmatpush3.msra.mxu1 %v12926_v20  ;;  %8682 = vmatprep.subr.mxu0 %v12961_v50  ;;  %v12972_v20 = vld [vmem:[#allocation91_spill] sm:$0xff] }
 0x487   : > { %8746 = vmatprep.subr.mxu1 %v12931_v6  ;;  %8683 = vmatpush3.msra.mxu0 %v12961_v50 }
 0x488   : > { %8747 = vmatpush3.msra.mxu1 %v12931_v6  ;;  %8604 = vmatmul.mubr.f32.gmra.mxu0 %v11752_v30  ;;  %v12965_v30 = vand.u32 4294901760, %v11857_v13  ;;  %v12976_v6 = vld [vmem:[#allocation102_spill] sm:$0xff] }
 0x489   : > { %8666 = vmatmul.mubr.f32.gmra.mxu1 %v5393_v19  ;;  %8684 = vmatprep.subr.mxu0 %v12962_v36  ;;  %v12978_v19 = vld [vmem:[#allocation105_spill] sm:$0xff] }
 0x48a   : > { %8748 = vmatprep.subr.mxu1 %v12935_v40  ;;  %8606 = vmatprep.mubr.f32.mxu0 %v11794_v46  ;;  %v12970_v46 = vld [vmem:[#allocation87_spill] sm:$0xff] }
 0x48b   : > { %8668 = vmatprep.mubr.f32.mxu1 %v12963_v62  ;;  %8685 = vmatpush3.msra.mxu0 %v12962_v36 }
 0x48c   : > { %8749 = vmatpush3.msra.mxu1 %v12935_v40  ;;  %8686 = vmatprep.subr.mxu0 %v12964_v29  ;;  %v12980_v40 = vld [vmem:[#allocation95_spill] sm:$0xff] }
 0x48d   : > { %8750 = vmatprep.subr.mxu1 %v12939_v1  ;;  %8687 = vmatpush3.msra.mxu0 %v12964_v29 }
 0x48e   : > { %8751 = vmatpush3.msra.mxu1 %v12939_v1  ;;  %8607 = vmatmul.mubr.f32.gmra.mxu0 %v11779_v7  ;;  %v12969_v7 = vand.u32 4294901760, %v11892_v59  ;;  %v12982_v1 = vld [vmem:[#allocation28_spill] sm:$0xff] }
 0x48f   : > { %8669 = vmatmul.mubr.f32.gmra.mxu1 %v12965_v30  ;;  %8688 = vmatprep.subr.mxu0 %v12966_v10 }
 0x490   : > { %8752 = vmatprep.subr.mxu1 %v12941_v52  ;;  %8609 = vmatprep.mubr.f32.mxu0 %v11824_v27  ;;  %v12975_v27 = vand.u32 4294901760, %v11933_v24 }
 0x491   : > { %8671 = vmatprep.mubr.f32.mxu1 %v12967_v35  ;;  %8689 = vmatpush3.msra.mxu0 %v12966_v10 }
 0x492   : > { %8753 = vmatpush3.msra.mxu1 %v12941_v52  ;;  %8690 = vmatprep.subr.mxu0 %v12968_v21 }
 0x493   : > { %8754 = vmatprep.subr.mxu1 %v12943_v37  ;;  %8691 = vmatpush3.msra.mxu0 %v12968_v21 }
 0x494   : > { %8755 = vmatpush3.msra.mxu1 %v12943_v37  ;;  %8610 = vmatmul.mubr.f32.gmra.mxu0 %v11816_v57  ;;  %v12974_v57 = vld [vmem:[#allocation96_spill] sm:$0xff] }
 0x495   : > { %8672 = vmatmul.mubr.f32.gmra.mxu1 %v12969_v7  ;;  %8692 = vmatprep.subr.mxu0 %v12970_v46 }
 0x496   : > { %8756 = vmatprep.subr.mxu1 %v12945_v63  ;;  %8612 = vmatprep.mubr.f32.mxu0 %v11846_v4  ;;  %v12979_v4 = vld [vmem:[#allocation94_spill] sm:$0xff] }
 0x497   : > { %8674 = vmatprep.mubr.f32.mxu1 %v12971_v44  ;;  %8693 = vmatpush3.msra.mxu0 %v12970_v46 }
 0x498   : > { %8757 = vmatpush3.msra.mxu1 %v12945_v63  ;;  %8694 = vmatprep.subr.mxu0 %v12972_v20 }
 0x499   : > { %8758 = vmatprep.subr.mxu1 %v12947_v61  ;;  %8695 = vmatpush3.msra.mxu0 %v12972_v20 }
 0x49a   : > { %8759 = vmatpush3.msra.mxu1 %v12947_v61  ;;  %8613 = vmatmul.mubr.f32.gmra.mxu0 %v11857_v13  ;;  %v12981_v13 = vld [vmem:[#allocation22_spill] sm:$0xff] }
 0x49b   : > { %8675 = vmatmul.mubr.f32.gmra.mxu1 %v12973_v3  ;;  %8696 = vmatprep.subr.mxu0 %v12974_v57 }
 0x49c   : > { %8760 = vmatprep.subr.mxu1 %v12949_v5  ;;  %8615 = vmatprep.mubr.f32.mxu0 %v11876_v12 }
 0x49d   : > { %8677 = vmatprep.mubr.f32.mxu1 %v12975_v27  ;;  %8697 = vmatpush3.msra.mxu0 %v12974_v57 }
 0x49e   : > { %8761 = vmatpush3.msra.mxu1 %v12949_v5  ;;  %8698 = vmatprep.subr.mxu0 %v12976_v6 }
 0x49f   : > { %8762 = vmatprep.subr.mxu1 %v12951_v23  ;;  %8699 = vmatpush3.msra.mxu0 %v12976_v6 }
 0x4a0   : > { %8763 = vmatpush3.msra.mxu1 %v12951_v23  ;;  %8616 = vmatmul.mubr.f32.gmra.mxu0 %v11892_v59 }
 0x4a1   : > { %8678 = vmatmul.mubr.f32.gmra.mxu1 %v5473_v34  ;;  %8700 = vmatprep.subr.mxu0 %v12977_v31 }
 0x4a2   : > { %8764 = vmatprep.subr.mxu1 %v12953_v48  ;;  %8618 = vmatprep.mubr.f32.mxu0 %v11905_v17 }
 0x4a3   : > { %8701 = vmatpush3.msra.mxu0 %v12977_v31  ;;  %8765 = vmatpush3.msra.mxu1 %v12953_v48  ;;  %v12217_v31 = vld [vmem:[%s12386_s11] ss:$0 sm:$0xff] }
 0x4a4   : > { %8768 = vmatprep.mubr.f32.mxu1 %v11727_v58  ;;  %8702 = vmatprep.subr.mxu0 %v12978_v19 }
 0x4a5   : > { %8766 = vmatprep.subr.mxu1 %v12955_v60  ;;  %8703 = vmatpush3.msra.mxu0 %v12978_v19 }
 0x4a6   : > { %8767 = vmatpush3.msra.mxu1 %v12955_v60  ;;  %8619 = vmatmul.mubr.f32.gmra.mxu0 %v11920_v54 }
 0x4a7   : > { %8704 = vmatprep.subr.mxu0 %v12979_v4  ;;  %8769 = vmatmul.mubr.f32.vlgmr.msra.gmra.mxu1 %v11717_v2 }
 0x4a8   : > { %8621 = vmatprep.mubr.f32.mxu0 %v11933_v24  ;;  %8705 = vmatpush3.msra.mxu0 %v12979_v4 }
 0x4a9   : > { %8771 = vmatprep.mubr.f32.mxu1 %v11754_v56  ;;  %8706 = vmatprep.subr.mxu0 %v12980_v40 }
 0x4aa   : > { %8707 = vmatpush3.msra.mxu0 %v12980_v40 }
 0x4ab   : > { %8622 = vmatmul.mubr.f32.gmra.mxu0 %v11946_v41  ;;  %8708 = vmatprep.subr.mxu0 %v12981_v13 }
 0x4ac   : > { %8772 = vmatmul.mubr.f32.gmra.mxu1 %v11738_v26  ;;  %8709 = vmatpush3.msra.mxu0 %v12981_v13 }
 0x4ad   : > { %8712 = vmatprep.mubr.f32.mxu0 %v11727_v58  ;;  %8774 = vmatprep.mubr.f32.mxu1 %v11781_v38 }
 0x4ae   : > { %8710 = vmatprep.subr.mxu0 %v12982_v1 }
 0x4af   : > { %8711 = vmatpush3.msra.mxu0 %v12982_v1 }
 0x4b0   : > { %8713 = vmatmul.mubr.f32.vlgmr.msra.gmra.mxu0 %v11717_v2  ;;  %8775 = vmatmul.mubr.f32.gmra.mxu1 %v11769_v25 }
 0x4b1   : > { %8715 = vmatprep.mubr.f32.mxu0 %v11754_v56  ;;  %8777 = vmatprep.mubr.f32.mxu1 %v11807_v28 }
 0x4b4   : > { %8716 = vmatmul.mubr.f32.gmra.mxu0 %v11738_v26  ;;  %8778 = vmatmul.mubr.f32.gmra.mxu1 %v11785_v0 }
 0x4b5   : > { %8718 = vmatprep.mubr.f32.mxu0 %v11781_v38  ;;  %8780 = vmatprep.mubr.f32.mxu1 %v11835_v8 }
 0x4b8   : > { %8719 = vmatmul.mubr.f32.gmra.mxu0 %v11769_v25  ;;  %8781 = vmatmul.mubr.f32.gmra.mxu1 %v11833_v47 }
 0x4b9   : > { %8721 = vmatprep.mubr.f32.mxu0 %v11807_v28  ;;  %8783 = vmatprep.mubr.f32.mxu1 %v11863_v22 }
 0x4bc   : > { %8722 = vmatmul.mubr.f32.gmra.mxu0 %v11785_v0  ;;  %8784 = vmatmul.mubr.f32.gmra.mxu1 %v11868_v15 }
 0x4bd   : > { %8724 = vmatprep.mubr.f32.mxu0 %v11835_v8  ;;  %8786 = vmatprep.mubr.f32.mxu1 %v11887_v51 }
 0x4c0   : > { %8725 = vmatmul.mubr.f32.gmra.mxu0 %v11833_v47  ;;  %8787 = vmatmul.mubr.f32.gmra.mxu1 %v11898_v9 }
 0x4c1   : > { %8727 = vmatprep.mubr.f32.mxu0 %v11863_v22  ;;  %8789 = vmatprep.mubr.f32.mxu1 %v11915_v18 }
 0x4c4   : > { %8728 = vmatmul.mubr.f32.gmra.mxu0 %v11868_v15  ;;  %8790 = vmatmul.mubr.f32.gmra.mxu1 %v11926_v39 }
 0x4c5   : > { %8730 = vmatprep.mubr.f32.mxu0 %v11887_v51 }
 0x4c8   : > { %8731 = vmatmul.mubr.f32.gmra.mxu0 %v11898_v9 }
 0x4c9   : > { %8733 = vmatprep.mubr.f32.mxu0 %v11915_v18 }
 0x4cc   : > { %8734 = vmatmul.mubr.f32.gmra.mxu0 %v11926_v39 }
 0x50a   : > { %v12124_v2 = vpop.f32.mrf.mxu1 }
 0x50c   : > { %v12126_v58 = vpop.f32.mrf.mxu1 }
 0x50e   : > { %v12128_v26 = vpop.f32.mrf.mxu1 }
 0x510   : > { %v12130_v56 = vpop.f32.mrf.mxu1 }
 0x513   : > { %v8490_v25 = vpop.f32.mrf.mxu0  ;;  %v12132_v38 = vpop.f32.mrf.mxu1 }
 0x514   : > { %v5338_v40 = vadd.f32 %v8490_v25, %v12217_v31 }
 0x515   : > { %v5327_v0 = vpop.f32.mrf.mxu0  ;;  %v12134_v28 = vpop.f32.mrf.mxu1 }
 0x516   : > { %v5328_v1 = vadd.f32 %v12217_v31, %v5327_v0 }
 0x518   : > { %v8493_v47 = vpop.f32.mrf.mxu0 }
 0x519   : > { %v12136_v8 = vpop.f32.mrf.mxu1 }
 0x51a   : > { %v5347_v22 = vpop.f32.mrf.mxu0 }
 0x51b   : > { %v12138_v15 = vpop.f32.mrf.mxu1 }
 0x51e   : > { %v8496_v12 = vpop.f32.mrf.mxu0 }
 0x51f   : > { %v12140_v52 = vpop.f32.mrf.mxu1 }
 0x520   : > { %v12142_v51 = vpop.f32.mrf.mxu0 }
 0x521   : > { %v12144_v59 = vpop.f32.mrf.mxu1 }
 0x524   : > { %v12146_v37 = vpop.f32.mrf.mxu0 }
 0x525   : > { %v12148_v24 = vpop.f32.mrf.mxu1 }
 0x526   : > { %v12150_v9 = vpop.f32.mrf.mxu0 }
 0x527   : > { %v12152_v17 = vpop.f32.mrf.mxu1 }
 0x52a   : > { %v12154_v23 = vpop.f32.mrf.mxu0 }
 0x52b   : > { %v12156_v63 = vpop.f32.mrf.mxu1 }
 0x52c   : > { %v12158_v18 = vpop.f32.mrf.mxu0 }
 0x52d   : > { %v12160_v54 = vpop.f32.mrf.mxu1 }
 0x52e   : > { %12983 = vst [vmem:[#allocation43_spill] sm:$0xff] %v12160_v54  ;;  %v5629_v54 = vadd.f32 %v12126_v58, %v5328_v1  ;;  %v5398_v58 = vadd.f32 %v12146_v37, %v12217_v31 }
 0x530   : > { %v12162_v61 = vpop.f32.mrf.mxu0 }
 0x531   : > { %v12164_v39 = vpop.f32.mrf.mxu1 }
 0x532   : > { %12984 = vst [vmem:[#allocation35_spill] sm:$0xff] %v12164_v39  ;;  %v12166_v60 = vpop.f32.mrf.mxu0  ;;  %v5348_v39 = vadd.f32 %v12217_v31, %v5347_v22 }
 0x533   : > { %v12168_v5 = vpop.f32.mrf.mxu1 }
 0x534   : > { %12985 = vst [vmem:[#allocation46_spill] sm:$0xff] %v12168_v5  ;;  %v5635_v5 = vadd.f32 %v12124_v2, %v5338_v40  ;;  %v5641_v22 = vadd.f32 %v12130_v56, %v5348_v39 }
 0x536   : > { %v12170_v41 = vpop.f32.mrf.mxu0 }
 0x537   : > { %v8658_v32 = vpop.f32.mrf.mxu1 }
 0x538   : > { %v12172_v34 = vpop.f32.mrf.mxu0 }
 0x539   : > { %v6016_v48 = vpop.f32.mrf.mxu1 }
 0x53c   : > { %v12174_v14 = vpop.f32.mrf.mxu0 }
 0x53d   : > { %v12176_v55 = vpop.f32.mrf.mxu1 }
 0x53e   : > { %v12178_v42 = vpop.f32.mrf.mxu0 }
 0x53f   : > { %12986 = vst [vmem:[#allocation39_spill] sm:$0xff] %v12178_v42  ;;  %v12180_v45 = vpop.f32.mrf.mxu1 }
 0x542   : > { %v8602_v43 = vpop.f32.mrf.mxu0 }
 0x543   : > { %v12182_v16 = vpop.f32.mrf.mxu1 }
 0x544   : > { %v5822_v11 = vpop.f32.mrf.mxu0 }
 0x545   : > { %v12184_v49 = vpop.f32.mrf.mxu1  ;;  %v5823_v42 = vadd.f32 %v5822_v11, %v5629_v54  ;;  %v5388_v11 = vadd.f32 %v12217_v31, %v12150_v9 }
 0x547   : > { %v6017_v54 = vadd.f32 %v6016_v48, %v5823_v42 }
 0x548   : > { %v8605_v33 = vpop.f32.mrf.mxu0 }
 0x549   : > { %v12186_v53 = vpop.f32.mrf.mxu1 }
 0x54a   : > { %v5836_v50 = vpop.f32.mrf.mxu0 }
 0x54b   : > { %v12188_v36 = vpop.f32.mrf.mxu1 }
 0x54e   : > { %v8608_v62 = vpop.f32.mrf.mxu0 }
 0x54f   : > { %v12190_v29 = vpop.f32.mrf.mxu1 }
 0x550   : > { %v5850_v30 = vpop.f32.mrf.mxu0 }
 0x551   : > { %v12192_v10 = vpop.f32.mrf.mxu1 }
 0x552   : > { %12987 = vst [vmem:[#allocation48_spill] sm:$0xff] %v12192_v10 }
 0x554   : > { %v12194_v35 = vpop.f32.mrf.mxu0 }
 0x555   : > { %v12196_v21 = vpop.f32.mrf.mxu1 }
 0x556   : > { %12988 = vst [vmem:[#allocation42_spill] sm:$0xff] %v12196_v21  ;;  %v12198_v7 = vpop.f32.mrf.mxu0  ;;  %v5830_v21 = vadd.f32 %v8602_v43, %v5635_v5 }
 0x557   : > { %v12200_v46 = vpop.f32.mrf.mxu1 }
 0x558   : > { %12989 = vst [vmem:[#allocation51_spill] sm:$0xff] %v12200_v46  ;;  %v6025_v5 = vadd.f32 %v8658_v32, %v5830_v21 }
 0x55a   : > { %v12202_v44 = vpop.f32.mrf.mxu0 }
 0x55b   : > { %v12204_v20 = vpop.f32.mrf.mxu1 }
 0x55c   : > { %12990 = vst [vmem:[#allocation45_spill] sm:$0xff] %v12204_v20  ;;  %v12206_v3 = vpop.f32.mrf.mxu0 }
 0x55d   : > { %v12208_v57 = vpop.f32.mrf.mxu1 }
 0x55e   : > { %12991 = vst [vmem:[#allocation55_spill] sm:$0xff] %v12208_v57 }
 0x560   : > { %v12210_v27 = vpop.f32.mrf.mxu0 }
 0x561   : > { %v12212_v6 = vpop.f32.mrf.mxu1 }
 0x562   : > { %12992 = vst [vmem:[#allocation49_spill] sm:$0xff] %v12212_v6  ;;  %v12219_v19 = vpop.f32.mrf.mxu0  ;;  %v5358_v6 = vadd.f32 %v8493_v47, %v12217_v31  ;;  %v5368_v47 = vadd.f32 %v12217_v31, %v12142_v51 }
 0x563   : > { %v12221_v4 = vpop.f32.mrf.mxu1 }
 0x564   : > { %12993 = vst [vmem:[#allocation58_spill] sm:$0xff] %v12221_v4  ;;  %v5647_v0 = vadd.f32 %v12128_v26, %v5358_v6  ;;  %v5653_v51 = vadd.f32 %v12134_v28, %v5368_v47 }
 0x566   : > { %v12224_v13 = vpop.f32.mrf.mxu0  ;;  %v5844_v40 = vadd.f32 %v8605_v33, %v5647_v0  ;;  %v5851_v42 = vadd.f32 %v5850_v30, %v5653_v51 }
 0x567   : > { %12994 = vst [vmem:[#allocation50_spill] sm:$0xff] %v12224_v13  ;;  %v8770_v57 = vpop.f32.mrf.mxu1  ;;  %v5378_v13 = vadd.f32 %v8496_v12, %v12217_v31 }
 0x568   : > { %v12227_v20 = vpop.f32.mrf.mxu0  ;;  %v6041_v37 = vadd.f32 %v12176_v55, %v5844_v40 }
 0x569   : > { %v6432_v46 = vpop.f32.mrf.mxu1  ;;  %v5659_v12 = vadd.f32 %v12132_v38, %v5378_v13  ;;  %v5671_v38 = vadd.f32 %v12136_v8, %v5398_v58 }
 0x56b   : > { %v12233_v4 = vpop.f32.mrf.mxu0  ;;  %v5858_v56 = vadd.f32 %v8608_v62, %v5659_v12  ;;  %v5408_v62 = vadd.f32 %v12217_v31, %v12158_v18 }
 0x56c   : > { %12995 = vst [vmem:[#allocation61_spill] sm:$0xff] %v12233_v4  ;;  %v8773_v25 = vpop.f32.mrf.mxu1  ;;  %v5837_v4 = vadd.f32 %v5836_v50, %v5641_v22  ;;  %v5418_v50 = vadd.f32 %v12154_v23, %v12217_v31  ;;  %v5872_v23 = vadd.f32 %v12194_v35, %v5671_v38  ;;  %v6049_v35 = vadd.f32 %v12184_v49, %v5851_v42  ;;  %v12998_v38 = vld [vmem:[#allocation43_spill] sm:$0xff] }
 0x56d   : > { %v12237_v10 = vpop.f32.mrf.mxu0  ;;  %v6057_v30 = vadd.f32 %v12182_v16, %v5858_v56  ;;  %v5677_v16 = vadd.f32 %v12144_v59, %v5408_v62 }
 0x56e   : > { %v6444_v2 = vpop.f32.mrf.mxu1  ;;  %v6033_v28 = vadd.f32 %v12180_v45, %v5837_v4  ;;  %v5683_v45 = vadd.f32 %v12140_v52, %v5418_v50 }
 0x570   : > { %v8714_v43 = vpop.f32.mrf.mxu0  ;;  %v8776_v1 = vpop.f32.mrf.mxu1 }
 0x571   : > { %v6262_v26 = vadd.f32 %v8714_v43, %v6025_v5 }
 0x572   : > { %v6255_v33 = vpop.f32.mrf.mxu0  ;;  %v6456_v6 = vpop.f32.mrf.mxu1 }
 0x573   : > { %v6439_v39 = vadd.f32 %v8770_v57, %v6262_v26  ;;  %v6256_v32 = vadd.f32 %v6255_v33, %v6017_v54  ;;  %v5665_v57 = vadd.f32 %v12138_v15, %v5388_v11  ;;  %v5478_v33 = vadd.f32 %v12174_v14, %v12217_v31 }
 0x574   : > { %v8717_v21 = vpop.f32.mrf.mxu0  ;;  %v8779_v48 = vpop.f32.mrf.mxu1 }
 0x575   : > { %6527 = vst [vmem:[%s9199_s24 + $0x8] sm:$0xff] %v6439_v39  ;;  %v6433_v9 = vadd.f32 %v6432_v46, %v6256_v32  ;;  %v6274_v13 = vadd.f32 %v8717_v21, %v6041_v37  ;;  %v5438_v46 = vadd.f32 %v12162_v61, %v12217_v31  ;;  %v5865_v18 = vadd.f32 %v12198_v7, %v5665_v57  ;;  %v12997_v37 = vld [vmem:[#allocation39_spill] sm:$0xff] }
 0x576   : > { %v6267_v55 = vpop.f32.mrf.mxu0  ;;  %v6468_v0 = vpop.f32.mrf.mxu1  ;;  %v5886_v61 = vadd.f32 %v12202_v44, %v5683_v45  ;;  %v6073_v7 = vadd.f32 %v12186_v53, %v5872_v23  ;;  %v5468_v50 = vadd.f32 %v12217_v31, %v12997_v37  ;;  %v13002_v23 = vld [vmem:[#allocation51_spill] sm:$0xff]  ;;  %v13004_v45 = vld [vmem:[#allocation61_spill] sm:$0xff] }
 0x577   : > { %6526 = vst [vmem:[%s9199_s24] sm:$0xff] %v6433_v9  ;;  %v6451_v8 = vadd.f32 %v8773_v25, %v6274_v13  ;;  %v6268_v47 = vadd.f32 %v6267_v55, %v6033_v28  ;;  %v5428_v25 = vadd.f32 %v12217_v31, %v12166_v60  ;;  %v5695_v49 = vadd.f32 %v12148_v24, %v5438_v46  ;;  %v13000_v9 = vld [vmem:[#allocation42_spill] sm:$0xff]  ;;  %v13001_v13 = vld [vmem:[#allocation35_spill] sm:$0xff] }
 0x578   : > { %v8720_v4 = vpop.f32.mrf.mxu0  ;;  %v8782_v40 = vpop.f32.mrf.mxu1  ;;  %v5879_v60 = vadd.f32 %v12206_v3, %v5677_v16  ;;  %v6065_v44 = vadd.f32 %v12188_v36, %v5865_v18  ;;  %v6089_v3 = vadd.f32 %v12190_v29, %v5886_v61  ;;  %v5719_v28 = vadd.f32 %v13001_v13, %v5478_v33 }
 0x579   : > { %6529 = vst [vmem:[%s9199_s24 + $0x18] sm:$0xff] %v6451_v8  ;;  %v6445_v15 = vadd.f32 %v6444_v2, %v6268_v47  ;;  %v6286_v22 = vadd.f32 %v8720_v4, %v6057_v30  ;;  %v5458_v2 = vadd.f32 %v12170_v41, %v12217_v31  ;;  %v5689_v53 = vadd.f32 %v12152_v17, %v5428_v25  ;;  %v13003_v47 = vld [vmem:[#allocation46_spill] sm:$0xff] }
 0x57a   : > { %v6279_v5 = vpop.f32.mrf.mxu0  ;;  %v6480_v58 = vpop.f32.mrf.mxu1  ;;  %v5900_v41 = vadd.f32 %v12210_v27, %v5695_v49  ;;  %v12996_v27 = vld [vmem:[#allocation48_spill] sm:$0xff]  ;;  %v5713_v30 = vadd.f32 %v13003_v47, %v5468_v50  ;;  %v5928_v4 = vadd.f32 %v13004_v45, %v5719_v28 }
 0x57b   : > { %6528 = vst [vmem:[%s9199_s24 + $0x10] sm:$0xff] %v6445_v15  ;;  %v6463_v52 = vadd.f32 %v8776_v1, %v6286_v22  ;;  %v6280_v43 = vadd.f32 %v6279_v5, %v6049_v35  ;;  %v5448_v1 = vadd.f32 %v12217_v31, %v12172_v34  ;;  %v5893_v34 = vadd.f32 %v12219_v19, %v5689_v53  ;;  %v13005_v15 = vld [vmem:[#allocation45_spill] sm:$0xff] }
 0x57c   : > { %v8723_v12 = vpop.f32.mrf.mxu0  ;;  %v8785_v26 = vpop.f32.mrf.mxu1  ;;  %v6081_v32 = vadd.f32 %v12996_v27, %v5879_v60  ;;  %v6105_v19 = vadd.f32 %v13000_v9, %v5900_v41 }
 0x57d   : > { %6531 = vst [vmem:[%s9199_s24 + $0x28] sm:$0xff] %v6463_v52  ;;  %v6457_v59 = vadd.f32 %v6456_v6, %v6280_v43  ;;  %v6298_v54 = vadd.f32 %v8723_v12, %v6073_v7  ;;  %v5707_v6 = vadd.f32 %v12156_v63, %v5458_v2  ;;  %v5701_v29 = vadd.f32 %v12998_v38, %v5448_v1  ;;  %v13007_v2 = vld [vmem:[#allocation49_spill] sm:$0xff] }
 0x57e   : > { %v6291_v11 = vpop.f32.mrf.mxu0  ;;  %v6492_v36 = vpop.f32.mrf.mxu1  ;;  %v6097_v8 = vadd.f32 %v13002_v23, %v5893_v34  ;;  %v6137_v49 = vadd.f32 %v13007_v2, %v5928_v4 }
 0x57f   : > { %6530 = vst [vmem:[%s9199_s24 + $0x20] sm:$0xff] %v6457_v59  ;;  %v6475_v24 = vadd.f32 %v8779_v48, %v6298_v54  ;;  %v6292_v51 = vadd.f32 %v6291_v11, %v6065_v44  ;;  %v12999_v48 = vld [vmem:[#allocation50_spill] sm:$0xff]  ;;  %v5907_v55 = vadd.f32 %v12227_v20, %v5701_v29  ;;  %v5921_v20 = vadd.f32 %v12237_v10, %v5713_v30 }
 0x580   : > { %v8726_v56 = vpop.f32.mrf.mxu0  ;;  %v5914_v14 = vadd.f32 %v12999_v48, %v5707_v6  ;;  %v8788_v62 = vpop.f32.mrf.mxu1  ;;  %v13008_v10 = vld [vmem:[#allocation58_spill] sm:$0xff] }
 0x581   : > { %6533 = vst [vmem:[%s9199_s24 + $0x38] sm:$0xff] %v6475_v24  ;;  %v6469_v17 = vadd.f32 %v6468_v0, %v6292_v51  ;;  %v6310_v39 = vadd.f32 %v8726_v56, %v6089_v3  ;;  %v6129_v54 = vadd.f32 %v13008_v10, %v5921_v20 }
 0x582   : > { %v6303_v21 = vpop.f32.mrf.mxu0  ;;  %v6121_v22 = vadd.f32 %v13005_v15, %v5914_v14  ;;  %v6504_v35 = vpop.f32.mrf.mxu1 }
 0x583   : > { %6532 = vst [vmem:[%s9199_s24 + $0x30] sm:$0xff] %v6469_v17  ;;  %v6487_v63 = vadd.f32 %v8782_v40, %v6310_v39  ;;  %v6304_v42 = vadd.f32 %v6303_v21, %v6081_v32 }
 0x584   : > { %v8729_v57 = vpop.f32.mrf.mxu0  ;;  %v8791_v12 = vpop.f32.mrf.mxu1 }
 0x585   : > { %6535 = vst [vmem:[%s9199_s24 + $0x48] sm:$0xff] %v6487_v63  ;;  %v6481_v31 = vadd.f32 %v6480_v58, %v6304_v42  ;;  %v6322_v0 = vadd.f32 %v8729_v57, %v6105_v19  ;;  %v13006_v58 = vld [vmem:[#allocation55_spill] sm:$0xff] }
 0x586   : > { %v6315_v46 = vpop.f32.mrf.mxu0  ;;  %v6113_v61 = vadd.f32 %v13006_v58, %v5907_v55  ;;  %v6516_v11 = vpop.f32.mrf.mxu1 }
 0x587   : > { %6534 = vst [vmem:[%s9199_s24 + $0x40] sm:$0xff] %v6481_v31  ;;  %v6499_v40 = vadd.f32 %v8785_v26, %v6322_v0  ;;  %v6316_v18 = vadd.f32 %v6315_v46, %v6097_v8 }
 0x588   : > { %v8732_v25 = vpop.f32.mrf.mxu0 }
 0x589   : > { %6537 = vst [vmem:[%s9199_s24 + $0x58] sm:$0xff] %v6499_v40  ;;  %v6493_v16 = vadd.f32 %v6492_v36, %v6316_v18  ;;  %v6334_v5 = vadd.f32 %v8732_v25, %v6121_v22 }
 0x58a   : > { %v6327_v52 = vpop.f32.mrf.mxu0 }
 0x58b   : > { %6536 = vst [vmem:[%s9199_s24 + $0x50] sm:$0xff] %v6493_v16  ;;  %v6511_v43 = vadd.f32 %v8788_v62, %v6334_v5  ;;  %v6328_v7 = vadd.f32 %v6327_v52, %v6113_v61 }
 0x58c   : > { %v8735_v26 = vpop.f32.mrf.mxu0 }
 0x58d   : > { %6539 = vst [vmem:[%s9199_s24 + $0x68] sm:$0xff] %v6511_v43  ;;  %v6505_v60 = vadd.f32 %v6504_v35, %v6328_v7  ;;  %v6346_v59 = vadd.f32 %v8735_v26, %v6137_v49 }
 0x58e   : > { %v6339_v44 = vpop.f32.mrf.mxu0 }
 0x58f   : > { %6538 = vst [vmem:[%s9199_s24 + $0x60] sm:$0xff] %v6505_v60  ;;  %v6523_v1 = vadd.f32 %v8791_v12, %v6346_v59  ;;  %v6340_v53 = vadd.f32 %v6339_v44, %v6129_v54 }
 0x591   : > { %6541 = vst [vmem:[%s9199_s24 + $0x78] sm:$0xff] %v6523_v1  ;;  %v6517_v41 = vadd.f32 %v6516_v11, %v6340_v53 }
 0x593   : > { %6540 = vst [vmem:[%s9199_s24 + $0x70] sm:$0xff] %v6517_v41 }
 0x594 PF: > { %s6839_s0 = sshll.u32 %s9007_s15, 11  ;;  %s6556_s17 = sshll.u32 %s9199_s24, 4  ;;  %s12321_s17 = int_to_ptr.vmem [resolvable:$true] %s6556_s17 }
 0x595   : > { %s12318_s19 = scalar_lea.hbm %s12387_s12, %s6839_s0  ;;  %s13009_s14 = sand.u32 1, %s8995_s30  }
 0x596   : > { %s12325_s21 = scalar_lea.sflag [#allocation8], %s13009_s14  ;;  %s8925_s22 = scalar_lea.vmem %s12321_s17, 2048 }
 0x597   : > { %p8926_p6 = scmp.ne.s32.totalorder %s12321_s17, %s8925_s22  ;;  %s9025_s15 = smov [#allocation7]  }
 0x598   : > { %s8929_s20 = sshll.u32 %s9025_s15, 4  ;;  %s8930_s20 = int_to_ptr.vmem [resolvable:$false] %s8929_s20 }
 0x599   : > { %p8927_p7 = pnand %p8926_p6, %p9148_p13  ;;  %s8931_s25 = scalar_lea.vmem %s8930_s20, 4096 }
 0x59a   : > { %p8932_p9 = scmp.lt.s32.totalorder %s12321_s17, %s8930_s20  ;;  %p8933_p10 = scmp.lt.s32.totalorder %s8931_s25, %s8925_s22 }
 0x59b   : > { %p8928_p8 = pneg %p8927_p7 }
 0x59c   : > { %p8934_p11 = por %p8933_p10, %p8932_p9 }
 0x59e   : > { %p8935_p12 = pnand %p8934_p11, %p8928_p8 }
 0x5a0   : > { %8938 = shalt.err (!%p8935_p12)
}
 0x5a1   : > { %s8939_s24 = scalar_lea.hbm %s12318_s19, 2048  ;;  %s8943_s18 = scalar_lea.hbm %s12387_s12, 8192 }
 0x5a2   : > { %p8940_p0 = scmp.ne.s32.totalorder %s12318_s19, %s8939_s24  ;;  %p8944_p3 = scmp.lt.s32.totalorder %s12318_s19, %s12387_s12 }
 0x5a3   : > { %p8945_p4 = scmp.lt.s32.totalorder %s8943_s18, %s8939_s24 }
 0x5a4   : > { %p8941_p1 = pnand %p8940_p0, %p9148_p13 }
 0x5a5   : > { %p8946_p6 = por %p8945_p4, %p8944_p3 }
 0x5a6   : > { %p8942_p2 = pneg %p8941_p1 }
 0x5a8   : > { %p8947_p7 = pnand %p8946_p6, %p8942_p2 }
 0x5aa   : > { %8950 = shalt.err (!%p8947_p7)
}
 0x5ab   : > { %s9026_s16 = smov 128   ;;  %s9027_s1 = smov 8  }
 0x5ac   : > { %8792 = dma.vmem_to_hbm [thread:$0]  (%p9148_p13), %s12321_s17, 2048, %s12318_s19, %s12325_s21, %s9026_s16, %s9026_s16, %s9027_s1  }
 0x5ad PF: > { %s13010_s0 = sld [smem:[#allocation15_spill]] }
 0x5ae   : > { %s13011_s26 = sld [smem:[#allocation11_spill]] }
 0x5b3   : > { %p8798_p8 = scmp.ge.s32.totalorder %s13010_s0, 2 }
 0x5b4   : > { %s6571_s14 = sand.u32 1, %s13011_s26  }
 0x5b5   : > { %p8795_p9 = pnand %p8798_p8, %p9158_p5  ;;  %s6572_s22 = scalar_lea.sflag [#allocation8], %s6571_s14 }
 0x5b7   : > { %p8796_p10 = pneg %p8795_p9 }
 0x5b9   : > { %8986 = dma.done.wait (%p8796_p10), %s6572_s22, 2048  }
 0x5ba   : > { %8988 = vsyncadd (%p8796_p10), %s6572_s22, 4294965248  ;;  %s35_s18 = sadd.s32 1, %s13010_s0   ;;  %s13013_s15 = sld [smem:[#allocation12_spill]] }
 0x5bb   : > { %p32_p11 = scmp.ge.s32.totalorder %s35_s18, 14   ;;  %s13014_s13 = sld [smem:[#allocation19_spill]] }
 0x5bc   : > { %s13015_s14 = sld [smem:[#allocation13_spill]]  ;;  %s13019_s1 = smov %s8995_s30 }
 0x5bd   : > { %s13016_s23 = sld [smem:[#allocation14_spill]] }
 0x5be   : > { %s13017_s16 = sld [smem:[#allocation16_spill]] }
 0x5bf   : > { %s13018_s17 = sld [smem:[#allocation17_spill]]  ;;  %34 = sbr.rel (!%p32_p11) target bundleno = 31 (0x1f), region = 113 }
 0x5c0   : > { %s13020_s30 = smov %s13013_s15 }
 0x5c3   : > { %s13021_s15 = smov %s13016_s23 }
 0x5c4   :  { %6577 = vsyncpa [#allocation8], 1 }
 0x5c5   :  { %6579 = vsyncpa [#allocation8 + $0x1], 1 }

</bundles_post_ra>
